<compile_context>
chip_gen: v5e
topology: v5e:2x2
jax: 0.10.0
libtpu: 0.0.40
codegen_flags: <defaults>
</compile_context>

<pallas_src>
import functools

import jax
import jax.numpy as jnp
from jax.experimental import pallas as pl
from jax.experimental.pallas import tpu as pltpu

LN_EPS = 1e-5


def _layernorm(y, gamma, beta):
    # y: [M, H] f32, gamma/beta: [1, H] f32
    mean = jnp.mean(y, axis=-1, keepdims=True)
    var = jnp.mean((y - mean) ** 2, axis=-1, keepdims=True)
    return (y - mean) * jax.lax.rsqrt(var + LN_EPS) * gamma + beta


def encoder_layer_kernel(x_ref, wqkv_ref, bqkv_ref, wo_ref, bo_ref,
                         g1_ref, be1_ref, w1_ref, b1_ref, w2_ref, b2_ref,
                         g2_ref, be2_ref, out_ref, acc_ref, xc_ref,
                         *, batch_block, seq_len, n_local_heads, k_size, v_size,
                         compute_dtype, approx_recip):
    f32 = jnp.float32
    g = pl.program_id(1)                        # head-group index (reduction axis)
    head_w = 2 * k_size + v_size

    @pl.when(g == 0)
    def _init():
        acc_ref[...] = jnp.zeros_like(acc_ref)
        # Hoisted cast: x -> compute dtype once, reused by every head-group step.
        xc_ref[...] = x_ref[...].astype(xc_ref.dtype)

    xc = xc_ref[...]                            # [M, H] compute dtype (resident)

    # Single fused projection matmul for all heads in this group
    # (Wq pre-scaled by 1/sqrt(dk); biases added after f32 accumulation).
    proj = jnp.dot(xc, wqkv_ref[...], preferred_element_type=f32) + bqkv_ref[...]

    wo_blk = wo_ref[...]                        # [G*dv, H] compute dtype
    ctxs = []
    for j in range(n_local_heads):              # static, tiny (1 or 2)
        base = j * head_w
        q = proj[:, base:base + k_size]                               # [M, dk] f32
        k = proj[:, base + k_size:base + 2 * k_size]                  # [M, dk]
        v = proj[:, base + 2 * k_size:base + 2 * k_size + v_size]     # [M, dv]
        qb = q.reshape(batch_block, seq_len, k_size).astype(compute_dtype)
        kb = k.reshape(batch_block, seq_len, k_size).astype(compute_dtype)
        vb = v.reshape(batch_block, seq_len, v_size).astype(compute_dtype)

        # scores = q @ k^T per sequence (contract last dims; no materialized transpose).
        s = jax.lax.dot_general(qb, kb, (((2,), (2,)), ((0,), (0,))),
                                preferred_element_type=f32)            # [Bblk, S, S]
        s = s - jnp.max(s, axis=-1, keepdims=True)
        p = jnp.exp(s)
        p = p * pl.reciprocal(jnp.sum(p, axis=-1, keepdims=True), approx=approx_recip)

        ctx = jax.lax.dot_general(p.astype(compute_dtype), vb,
                                  (((2,), (1,)), ((0,), (0,))),
                                  preferred_element_type=f32)          # [Bblk, S, dv]
        ctxs.append(ctx.reshape(batch_block * seq_len, v_size))

    # One Wo-accumulate matmul per step with K = G*dv (256 with 2 heads/step).
    ctx_all = ctxs[0] if n_local_heads == 1 else jnp.concatenate(ctxs, axis=-1)
    acc_ref[...] += jnp.dot(ctx_all.astype(compute_dtype), wo_blk,
                            preferred_element_type=f32)                # [M, H]

    @pl.when(g == pl.num_programs(1) - 1)
    def _finalize():
        x = x_ref[...]                                                  # f32 residual
        # Residual + LayerNorm 1 (f32 statistics).
        attn = _layernorm(acc_ref[...] + bo_ref[...] + x, g1_ref[...], be1_ref[...])
        # Position-wise FFN: Conv1d(kernel_size=1) == per-position Linear.
        hid = jnp.dot(attn.astype(compute_dtype), w1_ref[...],
                      preferred_element_type=f32) + b1_ref[...]         # [M, 4H]
        hid = jnp.maximum(hid, 0.0)
        ffn = jnp.dot(hid.astype(compute_dtype), w2_ref[...],
                      preferred_element_type=f32) + b2_ref[...]         # [M, H]
        out_ref[...] = _layernorm(ffn + attn, g2_ref[...],
                                  be2_ref[...]).astype(out_ref.dtype)


def _default_batch_block(B, S, target_rows=256):
    # Largest divisor of B whose row block fits the target, keeping >=2 grid steps
    # on the parallel batch axis (megacore / 2 TCs) when B allows it.
    cands = [d for d in range(1, B + 1) if B % d == 0 and d * S <= target_rows]
    if not cands:
        return 1
    two_step = [d for d in cands if B // d >= 2]
    return max(two_step) if two_step else max(cands)


def _vmem_capacity_bytes():
    try:
        info = pltpu.get_tpu_info()
        for attr in ("vmem_capacity_bytes", "vmem_bytes", "vmem_size_bytes"):
            val = getattr(info, attr, None)
            if val:
                return int(val)
    except Exception:
        pass
    return 64 * 1024 * 1024   # conservative fallback (v7x per-TensorCore)


def encoder_layer(x, params, *, n_heads, k_size, v_size,
                  compute_dtype=jnp.bfloat16, batch_block=None, heads_per_step=None):
    B, S, H = x.shape
    inner = 4 * H
    # Lane/sublane alignment for the streamed blocks and the [M, H] slab.
    assert H % 128 == 0 and k_size % 128 == 0 and v_size % 128 == 0 and S % 8 == 0, (
        "choose/pad H, k_size, v_size to multiples of 128 and S to a multiple of 8")

    if heads_per_step is None:
        # 2 heads/step fills the 256-wide v6e/v7x MXU; use 1 on v5e (128x128 MXU).
        heads_per_step = 2 if n_heads % 2 == 0 else 1
    assert n_heads % heads_per_step == 0
    n_groups = n_heads // heads_per_step

    if batch_block is None:
        batch_block = _default_batch_block(B, S)
    assert B % batch_block == 0
    M = batch_block * S

    f32 = jnp.float32
    scale = 1.0 / jnp.sqrt(jnp.float32(k_size))
    # Fold the softmax scale into the Q projection and fuse per-head Wq/Wk/Wv into one
    # [H, n_heads*(2k+v)] matrix laid out group-contiguously.  Matmul weights go to the
    # compute dtype (bf16 halves weight DMA, keeps the MXU fast); biases / LN params
    # stay in f32 (added after f32 accumulation / VPU math).
    wq = params["wq"] * scale
    bq = params["bq"] * scale
    wk, bk = params["wk"], params["bk"]
    wv, bv = params["wv"], params["bv"]

    wqkv = jnp.concatenate(
        [jnp.concatenate([wq[:, h * k_size:(h + 1) * k_size],
                          wk[:, h * k_size:(h + 1) * k_size],
                          wv[:, h * v_size:(h + 1) * v_size]], axis=1)
         for h in range(n_heads)], axis=1).astype(compute_dtype)     # [H, n_heads*(2k+v)]
    bqkv = jnp.concatenate(
        [jnp.concatenate([bq[:, h * k_size:(h + 1) * k_size],
                          bk[:, h * k_size:(h + 1) * k_size],
                          bv[:, h * v_size:(h + 1) * v_size]], axis=1)
         for h in range(n_heads)], axis=1).astype(f32)               # [1, n_heads*(2k+v)]

    wo = params["wo"].astype(compute_dtype)
    bo = params["bo"].astype(f32)
    w1 = params["w1"].astype(compute_dtype)
    b1 = params["b1"].astype(f32)
    w2 = params["w2"].astype(compute_dtype)
    b2 = params["b2"].astype(f32)
    g1 = params["g1"].astype(f32)
    be1 = params["be1"].astype(f32)
    g2 = params["g2"].astype(f32)
    be2 = params["be2"].astype(f32)

    x2d = x.reshape(B * S, H)                   # lane-dense [M, H] row blocks

    head_w = 2 * k_size + v_size
    group_w = heads_per_step * head_w

    kernel = functools.partial(
        encoder_layer_kernel,
        batch_block=batch_block, seq_len=S, n_local_heads=heads_per_step,
        k_size=k_size, v_size=v_size,
        compute_dtype=compute_dtype,
        approx_recip=(compute_dtype != jnp.float32))

    def const2d(shape):
        # Constant block index across the whole grid: fetched once, stays resident.
        return pl.BlockSpec(shape, lambda b, g: (0, 0))

    in_specs = [
        pl.BlockSpec((M, H), lambda b, g: (b, 0)),                       # x (f32)
        pl.BlockSpec((H, group_w), lambda b, g: (0, g)),                 # fused Wqkv
        pl.BlockSpec((1, group_w), lambda b, g: (0, g)),                 # fused bqkv
        pl.BlockSpec((heads_per_step * v_size, H), lambda b, g: (g, 0)), # Wo rows
        const2d((1, H)),                                                 # bo
        const2d((1, H)), const2d((1, H)),                                # g1, be1
        const2d((H, inner)), const2d((1, inner)),                        # w1, b1
        const2d((inner, H)), const2d((1, H)),                            # w2, b2
        const2d((1, H)), const2d((1, H)),                                # g2, be2
    ]
    out_spec = pl.BlockSpec((M, H), lambda b, g: (b, 0))

    # VMEM budget: double-buffered input/output blocks + scratch, clamped per generation.
    cd_b = jnp.dtype(compute_dtype).itemsize
    in_block_bytes = (M * H * 4                                  # x
                      + H * group_w * cd_b + group_w * 4         # wqkv, bqkv
                      + heads_per_step * v_size * H * cd_b       # wo
                      + 5 * H * 4                                # bo, g1, be1, g2, be2
                      + H * inner * cd_b + inner * 4             # w1, b1
                      + inner * H * cd_b + H * 4)                # w2, b2
    out_block_bytes = M * H * jnp.dtype(x.dtype).itemsize
    scratch_bytes = M * H * 4 + M * H * cd_b
    needed = 2 * (in_block_bytes + out_block_bytes) + scratch_bytes
    vmem_limit = int(min(max(needed * 1.5 + (4 << 20), 32 << 20),
                         0.75 * _vmem_capacity_bytes()))

    out2d = pl.pallas_call(
        kernel,
        out_shape=jax.ShapeDtypeStruct((B * S, H), x.dtype),
        grid_spec=pltpu.PrefetchScalarGridSpec(
            num_scalar_prefetch=0,
            grid=(B // batch_block, n_groups),   # head-group axis = reduction, iterated last
            in_specs=in_specs,
            out_specs=out_spec,
            scratch_shapes=[pltpu.VMEM((M, H), jnp.float32),      # acc (sum_h ctx_h @ Wo_h)
                            pltpu.VMEM((M, H), compute_dtype)],   # hoisted x cast
        ),
        compiler_params=pltpu.CompilerParams(
            dimension_semantics=("parallel", "arbitrary"),
            vmem_limit_bytes=vmem_limit),
    )(x2d, wqkv, bqkv, wo, bo, g1, be1, w1, b1, w2, b2, g2, be2)

    return out2d.reshape(B, S, H)


def init_params(key, h_size, n_heads, k_size, v_size):
    inner = h_size * 4
    keys = jax.random.split(key, 8)

    def dense(k, fan_in, fan_out):
        w = jax.random.normal(k, (fan_in, fan_out), jnp.float32) * (1.0 / jnp.sqrt(fan_in))
        b = jnp.zeros((1, fan_out), jnp.float32)
        return w, b

    wq, bq = dense(keys[0], h_size, n_heads * k_size)
    wk, bk = dense(keys[1], h_size, n_heads * k_size)
    wv, bv = dense(keys[2], h_size, n_heads * v_size)
    wo, bo = dense(keys[3], n_heads * v_size, h_size)
    w1, b1 = dense(keys[4], h_size, inner)
    w2, b2 = dense(keys[5], inner, h_size)
    return dict(
        wq=wq, bq=bq, wk=wk, bk=bk, wv=wv, bv=bv, wo=wo, bo=bo,
        g1=jnp.ones((1, h_size), jnp.float32), be1=jnp.zeros((1, h_size), jnp.float32),
        w1=w1, b1=b1, w2=w2, b2=b2,
        g2=jnp.ones((1, h_size), jnp.float32), be2=jnp.zeros((1, h_size), jnp.float32),
    )


def encoder_layer_ref(x, p, *, n_heads, k_size, v_size):
    # Pure-JAX f32 reference (matches the PyTorch forward semantics, eval mode).
    B, S, H = x.shape
    q = x @ p["wq"] + p["bq"]
    k = x @ p["wk"] + p["bk"]
    v = x @ p["wv"] + p["bv"]
    q = q.reshape(B, S, n_heads, k_size).transpose(0, 2, 1, 3)
    k = k.reshape(B, S, n_heads, k_size).transpose(0, 2, 1, 3)
    v = v.reshape(B, S, n_heads, v_size).transpose(0, 2, 1, 3)
    s = jnp.einsum("bhqd,bhkd->bhqk", q, k) / jnp.sqrt(jnp.float32(k_size))
    a = jax.nn.softmax(s, axis=-1)
    ctx = jnp.einsum("bhqk,bhkd->bhqd", a, v).transpose(0, 2, 1, 3).reshape(B, S, -1)
    attn = ctx @ p["wo"] + p["bo"]

    def ln(y, g, b):
        m = y.mean(-1, keepdims=True)
        var = ((y - m) ** 2).mean(-1, keepdims=True)
        return (y - m) / jnp.sqrt(var + LN_EPS) * g + b

    attn = ln(attn + x, p["g1"], p["be1"])
    ffn = jnp.maximum(attn @ p["w1"] + p["b1"], 0.0) @ p["w2"] + p["b2"]
    return ln(ffn + attn, p["g2"], p["be2"])


if __name__ == "__main__":
    # Small but TPU-tile-aligned shapes: H, k_size, v_size multiples of 128, S multiple
    # of 8.  B=16 so the default batch_block=8 gives M=128 rows per MXU matmul and still
    # leaves 2 parallel batch-axis steps for v7x's two TensorCores.
    B, S, H = 16, 16, 128
    n_heads, k_size, v_size = 4, 128, 128

    key = jax.random.PRNGKey(0)
    kx, kp = jax.random.split(key)
    x = jax.random.normal(kx, (B, S, H), jnp.float32)
    params = init_params(kp, H, n_heads, k_size, v_size)

    ref = encoder_layer_ref(x, params, n_heads=n_heads, k_size=k_size, v_size=v_size)

    # f32 validation path (exact softmax reciprocal) -- tight check.
    out_f32 = jax.block_until_ready(
        encoder_layer(x, params, n_heads=n_heads, k_size=k_size, v_size=v_size,
                      compute_dtype=jnp.float32))
    assert out_f32.shape == (B, S, H)
    assert jnp.allclose(out_f32, ref, atol=2e-3, rtol=2e-3), "f32 kernel mismatch vs reference"

    # bf16 fast path (bf16 MXU operands, f32 accumulation, approx EUP reciprocal);
    # tolerance reflects bf16 operand rounding.
    out_bf16 = jax.block_until_ready(
        encoder_layer(x, params, n_heads=n_heads, k_size=k_size, v_size=v_size,
                      compute_dtype=jnp.bfloat16))
    assert out_bf16.shape == (B, S, H)
    assert jnp.allclose(out_bf16, ref, atol=1e-1, rtol=1e-1), "bf16 kernel mismatch vs reference"

    print("KERNEL_OK")
</pallas_src>

<mosaic_0001>
module attributes {stable_mosaic.version = 11 : i64} {
  func.func @encoder_layer_kernel(%arg0: i32, %arg1: i32, %arg2: memref<128x128xf32, #tpu.memory_space<vmem>>, %arg3: memref<128x768xf32, #tpu.memory_space<vmem>>, %arg4: memref<1x768xf32, #tpu.memory_space<vmem>>, %arg5: memref<256x128xf32, #tpu.memory_space<vmem>>, %arg6: memref<1x128xf32, #tpu.memory_space<vmem>>, %arg7: memref<1x128xf32, #tpu.memory_space<vmem>>, %arg8: memref<1x128xf32, #tpu.memory_space<vmem>>, %arg9: memref<128x512xf32, #tpu.memory_space<vmem>>, %arg10: memref<1x512xf32, #tpu.memory_space<vmem>>, %arg11: memref<512x128xf32, #tpu.memory_space<vmem>>, %arg12: memref<1x128xf32, #tpu.memory_space<vmem>>, %arg13: memref<1x128xf32, #tpu.memory_space<vmem>>, %arg14: memref<1x128xf32, #tpu.memory_space<vmem>>, %arg15: memref<128x128xf32, #tpu.memory_space<vmem>>, %arg16: memref<128x128xf32, #tpu.memory_space<vmem>>, %arg17: memref<128x128xf32, #tpu.memory_space<vmem>>) attributes {dimension_semantics = [#tpu.dimension_semantics<parallel>, #tpu.dimension_semantics<arbitrary>], iteration_bounds = array<i64: 2, 2>, scalar_prefetch = 0 : i64, scratch_operands = 2 : i64, tpu.core_type = #tpu.core_type<tc>, window_params = [{transform_indices = @transform_0, window_bounds = array<i64: 128, 128>}, {transform_indices = @transform_1, window_bounds = array<i64: 128, 768>}, {transform_indices = @transform_2, window_bounds = array<i64: 1, 768>}, {transform_indices = @transform_3, window_bounds = array<i64: 256, 128>}, {pipeline_mode = #tpu.pipeline_mode<synchronous>, transform_indices = @transform_4, window_bounds = array<i64: 1, 128>}, {pipeline_mode = #tpu.pipeline_mode<synchronous>, transform_indices = @transform_5, window_bounds = array<i64: 1, 128>}, {pipeline_mode = #tpu.pipeline_mode<synchronous>, transform_indices = @transform_6, window_bounds = array<i64: 1, 128>}, {pipeline_mode = #tpu.pipeline_mode<synchronous>, transform_indices = @transform_7, window_bounds = array<i64: 128, 512>}, {pipeline_mode = #tpu.pipeline_mode<synchronous>, transform_indices = @transform_8, window_bounds = array<i64: 1, 512>}, {pipeline_mode = #tpu.pipeline_mode<synchronous>, transform_indices = @transform_9, window_bounds = array<i64: 512, 128>}, {pipeline_mode = #tpu.pipeline_mode<synchronous>, transform_indices = @transform_10, window_bounds = array<i64: 1, 128>}, {pipeline_mode = #tpu.pipeline_mode<synchronous>, transform_indices = @transform_11, window_bounds = array<i64: 1, 128>}, {pipeline_mode = #tpu.pipeline_mode<synchronous>, transform_indices = @transform_12, window_bounds = array<i64: 1, 128>}, {transform_indices = @transform_13, window_bounds = array<i64: 128, 128>}]} {
    %c0_i32 = arith.constant 0 : i32
    %0 = arith.cmpi eq, %arg1, %c0_i32 : i32
    %1 = arith.extui %0 : i1 to i32
    %c0_i32_0 = arith.constant 0 : i32
    %2 = arith.cmpi ne, %1, %c0_i32_0 : i32
    scf.if %2 {
      %cst_22 = arith.constant 0.000000e+00 : f32
      %56 = vector.broadcast %cst_22 : f32 to vector<128x128xf32>
      %c0_23 = arith.constant 0 : index
      %c0_24 = arith.constant 0 : index
      %57 = vector.load %arg16[%c0_23, %c0_24] : memref<128x128xf32, #tpu.memory_space<vmem>>, vector<128x128xf32>
      tpu.vector_store %arg16[%c0_23, %c0_24], %56 {strides = array<i32>} : memref<128x128xf32, #tpu.memory_space<vmem>>, vector<128x128xf32>,
      %c0_25 = arith.constant 0 : index
      %c0_26 = arith.constant 0 : index
      %58 = vector.load %arg2[%c0_25, %c0_26] : memref<128x128xf32, #tpu.memory_space<vmem>>, vector<128x128xf32>
      %c0_27 = arith.constant 0 : index
      %c0_28 = arith.constant 0 : index
      %59 = vector.load %arg17[%c0_27, %c0_28] : memref<128x128xf32, #tpu.memory_space<vmem>>, vector<128x128xf32>
      tpu.vector_store %arg17[%c0_27, %c0_28], %58 {strides = array<i32>} : memref<128x128xf32, #tpu.memory_space<vmem>>, vector<128x128xf32>,
    } else {
    }
    %c0 = arith.constant 0 : index
    %c0_1 = arith.constant 0 : index
    %3 = vector.load %arg17[%c0, %c0_1] : memref<128x128xf32, #tpu.memory_space<vmem>>, vector<128x128xf32>
    %c0_2 = arith.constant 0 : index
    %c0_3 = arith.constant 0 : index
    %4 = vector.load %arg3[%c0_2, %c0_3] : memref<128x768xf32, #tpu.memory_space<vmem>>, vector<128x768xf32>
    %cst = arith.constant dense<0.000000e+00> : vector<128x768xf32>
    %5 = tpu.matmul %3, %4, %cst {dimension_numbers = #tpu.dot_dimension_numbers<[1], [0], [0], [1], [0, 0, 1, 1], [], []>} : vector<128x128xf32>, vector<128x768xf32>, vector<128x768xf32> -> vector<128x768xf32>
    %c0_4 = arith.constant 0 : index
    %c0_5 = arith.constant 0 : index
    %6 = vector.load %arg4[%c0_4, %c0_5] : memref<1x768xf32, #tpu.memory_space<vmem>>, vector<1x768xf32>
    %7 = vector.broadcast %6 : vector<1x768xf32> to vector<128x768xf32>
    %8 = arith.addf %5, %7 : vector<128x768xf32>
    %c0_6 = arith.constant 0 : index
    %c0_7 = arith.constant 0 : index
    %9 = vector.load %arg5[%c0_6, %c0_7] : memref<256x128xf32, #tpu.memory_space<vmem>>, vector<256x128xf32>
    %10 = vector.extract_strided_slice %8 {offsets = [0, 0], sizes = [128, 128], strides = [1, 1]} : vector<128x768xf32> to vector<128x128xf32>
    %11 = vector.extract_strided_slice %8 {offsets = [0, 128], sizes = [128, 128], strides = [1, 1]} : vector<128x768xf32> to vector<128x128xf32>
    %12 = vector.extract_strided_slice %8 {offsets = [0, 256], sizes = [128, 128], strides = [1, 1]} : vector<128x768xf32> to vector<128x128xf32>
    %13 = vector.shape_cast %10 : vector<128x128xf32> to vector<8x16x128xf32>
    %14 = vector.shape_cast %11 : vector<128x128xf32> to vector<8x16x128xf32>
    %15 = vector.shape_cast %12 : vector<128x128xf32> to vector<8x16x128xf32>
    %cst_8 = arith.constant dense<0.000000e+00> : vector<8x16x16xf32>
    %16 = tpu.matmul %13, %14, %cst_8 {dimension_numbers = #tpu.dot_dimension_numbers<[2], [2], [1], [1], [0, 0, 0, 1, 1, 1], [0], [0]>} : vector<8x16x128xf32>, vector<8x16x128xf32>, vector<8x16x16xf32> -> vector<8x16x16xf32>
    %cst_9 = arith.constant dense<0xFF800000> : vector<8x16xf32>
    %17 = vector.multi_reduction <maximumf>, %16, %cst_9 [2] : vector<8x16x16xf32> to vector<8x16xf32>
    %18 = vector.shape_cast %17 : vector<8x16xf32> to vector<8x16x1xf32>
    %19 = vector.broadcast %18 : vector<8x16x1xf32> to vector<8x16x16xf32>
    %20 = arith.subf %16, %19 : vector<8x16x16xf32>
    %21 = math.exp %20 : vector<8x16x16xf32>
    %cst_10 = arith.constant dense<0.000000e+00> : vector<8x16xf32>
    %22 = vector.multi_reduction <add>, %21, %cst_10 [2] : vector<8x16x16xf32> to vector<8x16xf32>
    %23 = vector.shape_cast %22 : vector<8x16xf32> to vector<8x16x1xf32>
    %24 = tpu.reciprocal %23 : vector<8x16x1xf32> -> vector<8x16x1xf32>
    %25 = vector.broadcast %24 : vector<8x16x1xf32> to vector<8x16x16xf32>
    %26 = arith.mulf %21, %25 : vector<8x16x16xf32>
    %cst_11 = arith.constant dense<0.000000e+00> : vector<8x16x128xf32>
    %27 = tpu.matmul %26, %15, %cst_11 {dimension_numbers = #tpu.dot_dimension_numbers<[2], [1], [1], [2], [0, 0, 0, 1, 1, 2], [0], [0]>} : vector<8x16x16xf32>, vector<8x16x128xf32>, vector<8x16x128xf32> -> vector<8x16x128xf32>
    %28 = vector.shape_cast %27 : vector<8x16x128xf32> to vector<128x128xf32>
    %29 = vector.extract_strided_slice %8 {offsets = [0, 384], sizes = [128, 128], strides = [1, 1]} : vector<128x768xf32> to vector<128x128xf32>
    %30 = vector.extract_strided_slice %8 {offsets = [0, 512], sizes = [128, 128], strides = [1, 1]} : vector<128x768xf32> to vector<128x128xf32>
    %31 = vector.extract_strided_slice %8 {offsets = [0, 640], sizes = [128, 128], strides = [1, 1]} : vector<128x768xf32> to vector<128x128xf32>
    %32 = vector.shape_cast %29 : vector<128x128xf32> to vector<8x16x128xf32>
    %33 = vector.shape_cast %30 : vector<128x128xf32> to vector<8x16x128xf32>
    %34 = vector.shape_cast %31 : vector<128x128xf32> to vector<8x16x128xf32>
    %cst_12 = arith.constant dense<0.000000e+00> : vector<8x16x16xf32>
    %35 = tpu.matmul %32, %33, %cst_12 {dimension_numbers = #tpu.dot_dimension_numbers<[2], [2], [1], [1], [0, 0, 0, 1, 1, 1], [0], [0]>} : vector<8x16x128xf32>, vector<8x16x128xf32>, vector<8x16x16xf32> -> vector<8x16x16xf32>
    %cst_13 = arith.constant dense<0xFF800000> : vector<8x16xf32>
    %36 = vector.multi_reduction <maximumf>, %35, %cst_13 [2] : vector<8x16x16xf32> to vector<8x16xf32>
    %37 = vector.shape_cast %36 : vector<8x16xf32> to vector<8x16x1xf32>
    %38 = vector.broadcast %37 : vector<8x16x1xf32> to vector<8x16x16xf32>
    %39 = arith.subf %35, %38 : vector<8x16x16xf32>
    %40 = math.exp %39 : vector<8x16x16xf32>
    %cst_14 = arith.constant dense<0.000000e+00> : vector<8x16xf32>
    %41 = vector.multi_reduction <add>, %40, %cst_14 [2] : vector<8x16x16xf32> to vector<8x16xf32>
    %42 = vector.shape_cast %41 : vector<8x16xf32> to vector<8x16x1xf32>
    %43 = tpu.reciprocal %42 : vector<8x16x1xf32> -> vector<8x16x1xf32>
    %44 = vector.broadcast %43 : vector<8x16x1xf32> to vector<8x16x16xf32>
    %45 = arith.mulf %40, %44 : vector<8x16x16xf32>
    %cst_15 = arith.constant dense<0.000000e+00> : vector<8x16x128xf32>
    %46 = tpu.matmul %45, %34, %cst_15 {dimension_numbers = #tpu.dot_dimension_numbers<[2], [1], [1], [2], [0, 0, 0, 1, 1, 2], [0], [0]>} : vector<8x16x16xf32>, vector<8x16x128xf32>, vector<8x16x128xf32> -> vector<8x16x128xf32>
    %47 = vector.shape_cast %46 : vector<8x16x128xf32> to vector<128x128xf32>
    %48 = tpu.concatenate %28, %47 in 1 : vector<128x128xf32>, vector<128x128xf32> -> vector<128x256xf32>
    %c0_16 = arith.constant 0 : index
    %c0_17 = arith.constant 0 : index
    %49 = vector.load %arg16[%c0_16, %c0_17] : memref<128x128xf32, #tpu.memory_space<vmem>>, vector<128x128xf32>
    %cst_18 = arith.constant dense<0.000000e+00> : vector<128x128xf32>
    %50 = tpu.matmul %48, %9, %cst_18 {dimension_numbers = #tpu.dot_dimension_numbers<[1], [0], [0], [1], [0, 0, 1, 1], [], []>} : vector<128x256xf32>, vector<256x128xf32>, vector<128x128xf32> -> vector<128x128xf32>
    %51 = arith.addf %49, %50 : vector<128x128xf32>
    %c0_19 = arith.constant 0 : index
    %c0_20 = arith.constant 0 : index
    %52 = vector.load %arg16[%c0_19, %c0_20] : memref<128x128xf32, #tpu.memory_space<vmem>>, vector<128x128xf32>
    tpu.vector_store %arg16[%c0_19, %c0_20], %51 {strides = array<i32>} : memref<128x128xf32, #tpu.memory_space<vmem>>, vector<128x128xf32>,
    %c1_i32 = arith.constant 1 : i32
    %53 = arith.cmpi eq, %arg1, %c1_i32 : i32
    %54 = arith.extui %53 : i1 to i32
    %c0_i32_21 = arith.constant 0 : i32
    %55 = arith.cmpi ne, %54, %c0_i32_21 : i32
    scf.if %55 {
      %c0_22 = arith.constant 0 : index
      %c0_23 = arith.constant 0 : index
      %56 = vector.load %arg2[%c0_22, %c0_23] : memref<128x128xf32, #tpu.memory_space<vmem>>, vector<128x128xf32>
      %c0_24 = arith.constant 0 : index
      %c0_25 = arith.constant 0 : index
      %57 = vector.load %arg16[%c0_24, %c0_25] : memref<128x128xf32, #tpu.memory_space<vmem>>, vector<128x128xf32>
      %c0_26 = arith.constant 0 : index
      %c0_27 = arith.constant 0 : index
      %58 = vector.load %arg6[%c0_26, %c0_27] : memref<1x128xf32, #tpu.memory_space<vmem>>, vector<1x128xf32>
      %59 = vector.broadcast %58 : vector<1x128xf32> to vector<128x128xf32>
      %60 = arith.addf %57, %59 : vector<128x128xf32>
      %61 = arith.addf %60, %56 : vector<128x128xf32>
      %c0_28 = arith.constant 0 : index
      %c0_29 = arith.constant 0 : index
      %62 = vector.load %arg7[%c0_28, %c0_29] : memref<1x128xf32, #tpu.memory_space<vmem>>, vector<1x128xf32>
      %c0_30 = arith.constant 0 : index
      %c0_31 = arith.constant 0 : index
      %63 = vector.load %arg8[%c0_30, %c0_31] : memref<1x128xf32, #tpu.memory_space<vmem>>, vector<1x128xf32>
      %cst_32 = arith.constant dense<0.000000e+00> : vector<128xf32>
      %64 = vector.multi_reduction <add>, %61, %cst_32 [1] : vector<128x128xf32> to vector<128xf32>
      %65 = vector.shape_cast %64 : vector<128xf32> to vector<128x1xf32>
      %cst_33 = arith.constant 1.280000e+02 : f32
      %66 = vector.broadcast %cst_33 : f32 to vector<128x1xf32>
      %67 = arith.divf %65, %66 : vector<128x1xf32>
      %68 = vector.broadcast %67 : vector<128x1xf32> to vector<128x128xf32>
      %69 = arith.subf %61, %68 : vector<128x128xf32>
      %70 = arith.mulf %69, %69 : vector<128x128xf32>
      %cst_34 = arith.constant dense<0.000000e+00> : vector<128xf32>
      %71 = vector.multi_reduction <add>, %70, %cst_34 [1] : vector<128x128xf32> to vector<128xf32>
      %72 = vector.shape_cast %71 : vector<128xf32> to vector<128x1xf32>
      %cst_35 = arith.constant 1.280000e+02 : f32
      %73 = vector.broadcast %cst_35 : f32 to vector<128x1xf32>
      %74 = arith.divf %72, %73 : vector<128x1xf32>
      %75 = vector.broadcast %67 : vector<128x1xf32> to vector<128x128xf32>
      %76 = arith.subf %61, %75 : vector<128x128xf32>
      %cst_36 = arith.constant 9.99999974E-6 : f32
      %77 = vector.broadcast %cst_36 : f32 to vector<128x1xf32>
      %78 = arith.addf %74, %77 : vector<128x1xf32>
      %79 = math.rsqrt %78 : vector<128x1xf32>
      %80 = vector.broadcast %79 : vector<128x1xf32> to vector<128x128xf32>
      %81 = arith.mulf %76, %80 : vector<128x128xf32>
      %82 = vector.broadcast %62 : vector<1x128xf32> to vector<128x128xf32>
      %83 = arith.mulf %81, %82 : vector<128x128xf32>
      %84 = vector.broadcast %63 : vector<1x128xf32> to vector<128x128xf32>
      %85 = arith.addf %83, %84 : vector<128x128xf32>
      %c0_37 = arith.constant 0 : index
      %c0_38 = arith.constant 0 : index
      %86 = vector.load %arg9[%c0_37, %c0_38] : memref<128x512xf32, #tpu.memory_space<vmem>>, vector<128x512xf32>
      %cst_39 = arith.constant dense<0.000000e+00> : vector<128x512xf32>
      %87 = tpu.matmul %85, %86, %cst_39 {dimension_numbers = #tpu.dot_dimension_numbers<[1], [0], [0], [1], [0, 0, 1, 1], [], []>} : vector<128x128xf32>, vector<128x512xf32>, vector<128x512xf32> -> vector<128x512xf32>
      %c0_40 = arith.constant 0 : index
      %c0_41 = arith.constant 0 : index
      %88 = vector.load %arg10[%c0_40, %c0_41] : memref<1x512xf32, #tpu.memory_space<vmem>>, vector<1x512xf32>
      %89 = vector.broadcast %88 : vector<1x512xf32> to vector<128x512xf32>
      %90 = arith.addf %87, %89 : vector<128x512xf32>
      %cst_42 = arith.constant 0.000000e+00 : f32
      %91 = vector.broadcast %cst_42 : f32 to vector<128x512xf32>
      %92 = arith.maximumf %90, %91 : vector<128x512xf32>
      %c0_43 = arith.constant 0 : index
      %c0_44 = arith.constant 0 : index
      %93 = vector.load %arg11[%c0_43, %c0_44] : memref<512x128xf32, #tpu.memory_space<vmem>>, vector<512x128xf32>
      %cst_45 = arith.constant dense<0.000000e+00> : vector<128x128xf32>
      %94 = tpu.matmul %92, %93, %cst_45 {dimension_numbers = #tpu.dot_dimension_numbers<[1], [0], [0], [1], [0, 0, 1, 1], [], []>} : vector<128x512xf32>, vector<512x128xf32>, vector<128x128xf32> -> vector<128x128xf32>
      %c0_46 = arith.constant 0 : index
      %c0_47 = arith.constant 0 : index
      %95 = vector.load %arg12[%c0_46, %c0_47] : memref<1x128xf32, #tpu.memory_space<vmem>>, vector<1x128xf32>
      %96 = vector.broadcast %95 : vector<1x128xf32> to vector<128x128xf32>
      %97 = arith.addf %94, %96 : vector<128x128xf32>
      %98 = arith.addf %97, %85 : vector<128x128xf32>
      %c0_48 = arith.constant 0 : index
      %c0_49 = arith.constant 0 : index
      %99 = vector.load %arg13[%c0_48, %c0_49] : memref<1x128xf32, #tpu.memory_space<vmem>>, vector<1x128xf32>
      %c0_50 = arith.constant 0 : index
      %c0_51 = arith.constant 0 : index
      %100 = vector.load %arg14[%c0_50, %c0_51] : memref<1x128xf32, #tpu.memory_space<vmem>>, vector<1x128xf32>
      %cst_52 = arith.constant dense<0.000000e+00> : vector<128xf32>
      %101 = vector.multi_reduction <add>, %98, %cst_52 [1] : vector<128x128xf32> to vector<128xf32>
      %102 = vector.shape_cast %101 : vector<128xf32> to vector<128x1xf32>
      %cst_53 = arith.constant 1.280000e+02 : f32
      %103 = vector.broadcast %cst_53 : f32 to vector<128x1xf32>
      %104 = arith.divf %102, %103 : vector<128x1xf32>
      %105 = vector.broadcast %104 : vector<128x1xf32> to vector<128x128xf32>
      %106 = arith.subf %98, %105 : vector<128x128xf32>
      %107 = arith.mulf %106, %106 : vector<128x128xf32>
      %cst_54 = arith.constant dense<0.000000e+00> : vector<128xf32>
      %108 = vector.multi_reduction <add>, %107, %cst_54 [1] : vector<128x128xf32> to vector<128xf32>
      %109 = vector.shape_cast %108 : vector<128xf32> to vector<128x1xf32>
      %cst_55 = arith.constant 1.280000e+02 : f32
      %110 = vector.broadcast %cst_55 : f32 to vector<128x1xf32>
      %111 = arith.divf %109, %110 : vector<128x1xf32>
      %112 = vector.broadcast %104 : vector<128x1xf32> to vector<128x128xf32>
      %113 = arith.subf %98, %112 : vector<128x128xf32>
      %cst_56 = arith.constant 9.99999974E-6 : f32
      %114 = vector.broadcast %cst_56 : f32 to vector<128x1xf32>
      %115 = arith.addf %111, %114 : vector<128x1xf32>
      %116 = math.rsqrt %115 : vector<128x1xf32>
      %117 = vector.broadcast %116 : vector<128x1xf32> to vector<128x128xf32>
      %118 = arith.mulf %113, %117 : vector<128x128xf32>
      %119 = vector.broadcast %99 : vector<1x128xf32> to vector<128x128xf32>
      %120 = arith.mulf %118, %119 : vector<128x128xf32>
      %121 = vector.broadcast %100 : vector<1x128xf32> to vector<128x128xf32>
      %122 = arith.addf %120, %121 : vector<128x128xf32>
      %c0_57 = arith.constant 0 : index
      %c0_58 = arith.constant 0 : index
      %123 = vector.load %arg15[%c0_57, %c0_58] : memref<128x128xf32, #tpu.memory_space<vmem>>, vector<128x128xf32>
      tpu.vector_store %arg15[%c0_57, %c0_58], %122 {strides = array<i32>} : memref<128x128xf32, #tpu.memory_space<vmem>>, vector<128x128xf32>,
    } else {
    }
    return
  }
  func.func @transform_0(%arg0: i32, %arg1: i32) -> (i32, i32) {
    %c0_i32 = arith.constant 0 : i32
    %c0_i32_0 = arith.constant 0 : i32
    return %arg0, %c0_i32 : i32, i32
  }
  func.func @transform_1(%arg0: i32, %arg1: i32) -> (i32, i32) {
    %c0_i32 = arith.constant 0 : i32
    %c0_i32_0 = arith.constant 0 : i32
    return %c0_i32, %arg1 : i32, i32
  }
  func.func @transform_2(%arg0: i32, %arg1: i32) -> (i32, i32) {
    %c0_i32 = arith.constant 0 : i32
    %c0_i32_0 = arith.constant 0 : i32
    return %c0_i32, %arg1 : i32, i32
  }
  func.func @transform_3(%arg0: i32, %arg1: i32) -> (i32, i32) {
    %c0_i32 = arith.constant 0 : i32
    %c0_i32_0 = arith.constant 0 : i32
    return %arg1, %c0_i32 : i32, i32
  }
  func.func @transform_4(%arg0: i32, %arg1: i32) -> (i32, i32) {
    %c0_i32 = arith.constant 0 : i32
    %c0_i32_0 = arith.constant 0 : i32
    %c0_i32_1 = arith.constant 0 : i32
    return %c0_i32, %c0_i32_0 : i32, i32
  }
  func.func @transform_5(%arg0: i32, %arg1: i32) -> (i32, i32) {
    %c0_i32 = arith.constant 0 : i32
    %c0_i32_0 = arith.constant 0 : i32
    %c0_i32_1 = arith.constant 0 : i32
    return %c0_i32, %c0_i32_0 : i32, i32
  }
  func.func @transform_6(%arg0: i32, %arg1: i32) -> (i32, i32) {
    %c0_i32 = arith.constant 0 : i32
    %c0_i32_0 = arith.constant 0 : i32
    %c0_i32_1 = arith.constant 0 : i32
    return %c0_i32, %c0_i32_0 : i32, i32
  }
  func.func @transform_7(%arg0: i32, %arg1: i32) -> (i32, i32) {
    %c0_i32 = arith.constant 0 : i32
    %c0_i32_0 = arith.constant 0 : i32
    %c0_i32_1 = arith.constant 0 : i32
    return %c0_i32, %c0_i32_0 : i32, i32
  }
  func.func @transform_8(%arg0: i32, %arg1: i32) -> (i32, i32) {
    %c0_i32 = arith.constant 0 : i32
    %c0_i32_0 = arith.constant 0 : i32
    %c0_i32_1 = arith.constant 0 : i32
    return %c0_i32, %c0_i32_0 : i32, i32
  }
  func.func @transform_9(%arg0: i32, %arg1: i32) -> (i32, i32) {
    %c0_i32 = arith.constant 0 : i32
    %c0_i32_0 = arith.constant 0 : i32
    %c0_i32_1 = arith.constant 0 : i32
    return %c0_i32, %c0_i32_0 : i32, i32
  }
  func.func @transform_10(%arg0: i32, %arg1: i32) -> (i32, i32) {
    %c0_i32 = arith.constant 0 : i32
    %c0_i32_0 = arith.constant 0 : i32
    %c0_i32_1 = arith.constant 0 : i32
    return %c0_i32, %c0_i32_0 : i32, i32
  }
  func.func @transform_11(%arg0: i32, %arg1: i32) -> (i32, i32) {
    %c0_i32 = arith.constant 0 : i32
    %c0_i32_0 = arith.constant 0 : i32
    %c0_i32_1 = arith.constant 0 : i32
    return %c0_i32, %c0_i32_0 : i32, i32
  }
  func.func @transform_12(%arg0: i32, %arg1: i32) -> (i32, i32) {
    %c0_i32 = arith.constant 0 : i32
    %c0_i32_0 = arith.constant 0 : i32
    %c0_i32_1 = arith.constant 0 : i32
    return %c0_i32, %c0_i32_0 : i32, i32
  }
  func.func @transform_13(%arg0: i32, %arg1: i32) -> (i32, i32) {
    %c0_i32 = arith.constant 0 : i32
    %c0_i32_0 = arith.constant 0 : i32
    return %arg0, %c0_i32 : i32, i32
  }
}

</mosaic_0001>

<bundles_post_ra>
// kernel: tpu_custom_call.1
= control target key start
LH: loop header
LB: loop body
LE: loop exit
PB: predicated region body
PF: predicated region fallthrough
CT: control target
= control target key end

     0   :  { %s7857_s0 = inlined_call_operand.hbm [shape: f32[256,128], index: 0, kind: input, shape index: {}]   ;;  %s7858_s1 = inlined_call_operand.hbm [shape: f32[128,1536], index: 1, kind: input, shape index: {}]   ;;  %s7859_s2 = inlined_call_operand.hbm [shape: f32[1,1536], index: 2, kind: input, shape index: {}]   ;;  %s7860_s3 = inlined_call_operand.hbm [shape: f32[512,128], index: 3, kind: input, shape index: {}]   ;;  %s7861_s4 = inlined_call_operand.vmem [shape: f32[1,128], index: 4, kind: input, shape index: {}]   ;;  %s7862_s5 = inlined_call_operand.vmem [shape: f32[1,128], index: 5, kind: input, shape index: {}]   ;;  %s7863_s6 = inlined_call_operand.vmem [shape: f32[1,128], index: 6, kind: input, shape index: {}]   ;;  %s7864_s7 = inlined_call_operand.hbm [shape: f32[128,512], index: 7, kind: input, shape index: {}]   ;;  %s7865_s8 = inlined_call_operand.vmem [shape: f32[1,512], index: 8, kind: input, shape index: {}]   ;;  %s7866_s9 = inlined_call_operand.hbm [shape: f32[512,128], index: 9, kind: input, shape index: {}]   ;;  %s7867_s10 = inlined_call_operand.vmem [shape: f32[1,128], index: 10, kind: input, shape index: {}]   ;;  %s7868_s11 = inlined_call_operand.vmem [shape: f32[1,128], index: 11, kind: input, shape index: {}]   ;;  %s7869_s12 = inlined_call_operand.vmem [shape: f32[1,128], index: 12, kind: input, shape index: {}]   ;;  %s7870_s13 = inlined_call_operand.hbm [shape: f32[256,128], index: 13, kind: output, shape index: {}]  }
   0x1   :  { %7890 = sst [smem:[#allocation49_spill]] %s7857_s0 }
   0x2   :  { %7891 = sst [smem:[#allocation50_spill]] %s7858_s1 }
   0x3   :  { %7892 = sst [smem:[#allocation51_spill]] %s7861_s4 }
   0x4   :  { %7893 = sst [smem:[#allocation52_spill]] %s7862_s5 }
   0x5   :  { %7894 = sst [smem:[#allocation53_spill]] %s7863_s6 }
   0x6   :  { %7895 = sst [smem:[#allocation54_spill]] %s7864_s7 }
   0x7   :  { %7896 = sst [smem:[#allocation55_spill]] %s7865_s8 }
   0x8   :  { %7897 = sst [smem:[#allocation56_spill]] %s7866_s9 }
   0x9   :  { %7898 = sst [smem:[#allocation57_spill]] %s7867_s10 }
   0xa   :  { %7899 = sst [smem:[#allocation58_spill]] %s7868_s11 }
   0xb   :  { %7900 = sst [smem:[#allocation59_spill]] %s7869_s12 }
   0xc   :  { %7901 = sst [smem:[#allocation60_spill]] %s7870_s13 }
   0xd   :  { %18 = vsyncpa [#allocation5], 0 }
   0xe   :  { %20 = vsyncpa [#allocation5 + $0x1], 0 }
   0xf   :  { %21 = vsyncpa [#allocation8], 0 }
  0x10   :  { %23 = vsyncpa [#allocation8 + $0x1], 0 }
  0x11   :  { %24 = vsyncpa [#allocation11], 0 }
  0x12   :  { %26 = vsyncpa [#allocation11 + $0x1], 0 }
  0x13   :  { %27 = vsyncpa [#allocation14], 0 }
  0x14   :  { %28 = vsyncpa [#allocation6], 0 }
  0x15   :  { %30 = vsyncpa [#allocation6 + $0x1], 0  ;;  %s5602_s25 = smov 0   ;;  %s5604_s26 = smov 0  }
  0x16   :  { %s5606_s27 = smov 0   ;;  %s5608_s28 = smov 0  }
  0x17   :  { %s5610_s29 = smov 0   ;;  %s5612_s30 = smov 0  }
  0x18   :  { %s5614_s14 = smov 0   ;;  %s5616_s15 = smov 0  }
  0x19   :  { %s5618_s16 = smov 0   ;;  %s5620_s17 = smov 0  }
  0x1a   :  { %s5622_s18 = smov 0  }
  0x1b LB: > { %7902 = sst [smem:[#allocation22_spill]] %s5485_s27  ;;  %s5656_s19 = sadd.s32 4294967295, %s5517_s18   ;;  %s5517_s18 = sphi %s5622_s18, %s36_s18   ;;  %s5513_s17 = sphi %s5620_s17, %s8015_s17   ;;  %s5509_s16 = sphi %s5618_s16, %s8022_s16   ;;  %s5505_s15 = sphi %s5616_s15, %s8021_s15   ;;  %s5501_s14 = sphi %s5614_s14, %s8020_s14   ;;  %s5497_s30 = sphi %s5612_s30, %s8012_s30   ;;  %s5493_s29 = sphi %s5610_s29, %s8019_s29   ;;  %s5489_s28 = sphi %s5608_s28, %s8018_s28   ;;  %s5485_s27 = sphi %s5606_s27, %s8010_s27   ;;  %s5481_s26 = sphi %s5604_s26, %s8017_s26   ;;  %s5477_s25 = sphi %s5602_s25, %s8016_s25  }
  0x1c   : > { %7903 = sst [smem:[#allocation23_spill]] %s5489_s28  ;;  %p94_p0 = scmp.ne.s32.totalorder %s5481_s26, %s5477_s25 }
  0x1d   : > { %7904 = sst [smem:[#allocation24_spill]] %s5497_s30  ;;  %p7874_p1 = scmp.eq.s32.totalorder %s5656_s19, 0 }
  0x1e   : > { %7905 = sst [smem:[#allocation25_spill]] %s5501_s14  ;;  %p359_p2 = scmp.eq.s32.totalorder %s5656_s19, 3 }
  0x1f   : > { %7906 = sst [smem:[#allocation26_spill]] %s5505_s15  ;;  %p4754_p3 = scmp.ge.s32.totalorder %s5517_s18, 1 }
  0x20   : > { %7907 = sst [smem:[#allocation27_spill]] %s5513_s17  ;;  %p372_p4 = scmp.lt.s32.totalorder %s5517_s18, 5 }
  0x21   : > { %p5665_p5 = por %p94_p0, %p7874_p1  ;;  %s7911_s7 = sld [smem:[#allocation54_spill]] }
  0x22   : > { %p5669_p6 = pnand %p4754_p3, %p372_p4  ;;  %s5519_s25 = smov [#allocation12]  }
  0x23   : > { %s7908_s20 = scalar_select %p5665_p5, 1, 0 }
  0x24   : > { %p4868_p7 = pneg %p5669_p6  ;;  %s394_s13 = sshll.u32 %s5519_s25, 4  ;;  %s395_s13 = int_to_ptr.vmem [resolvable:$true] %s394_s13 }
  0x25   : > { %7909 = sst [smem:[#allocation28_spill]] %s7908_s20  ;;  %s5520_s12 = smov 512  }
  0x26   : > { %p5680_p8 = pnand %p4868_p7, %p7874_p1  ;;  %s5521_s22 = smov 32  }
  0x27   : > { %s392_s24 = sshll.u32 %s7911_s7, 4  ;;  %p63_p9 = scmp.eq.s32.totalorder %s5517_s18, 0  ;;  %s393_s24 = int_to_ptr.hbm [resolvable:$true] %s392_s24 }
  0x28   : > { %4871 = dma.hbm_to_vmem [thread:$0]  (!%p5680_p8), %s393_s24, 8192, %s395_s13, [#allocation11], %s5520_s12, %s5520_s12, %s5521_s22  }
  0x29   : > { %p88_p10 = scmp.ne.s32.totalorder %s5485_s27, %s5481_s26  ;;  %p4894_p11 = scmp.lt.s32.totalorder %s5517_s18, 4 }
  0x2a   : > { %s5693_s11 = sand.u32 1, %s5485_s27   ;;  %s4811_s10 = smul.u32 48, %s5509_s16 }
  0x2b   : > { %p90_p12 = por %p88_p10, %p63_p9  ;;  %s4846_s25 = smul.u32 768, %s5693_s11 }
  0x2c   : > { %s7914_s1 = sld [smem:[#allocation50_spill]]  ;;  %s7916_s14 = sand.u32 1, %s5517_s18  }
  0x2d   : > { %p5701_p13 = pnand %p4894_p11, %p90_p12  ;;  %s460_s24 = scalar_lea.vmem [#allocation7], %s4846_s25 }
  0x2e   : > { %s468_s22 = sshll.u32 %s460_s24, 4  ;;  %s7915_s9 = sld [smem:[#allocation56_spill]]  ;;  %s469_s22 = int_to_ptr.vmem [resolvable:$true] %s468_s22 }
  0x2f   : > { %s5713_s20 = scalar_lea.sflag [#allocation8], %s7916_s14  ;;  %s5522_s6 = smov 1536  }
  0x30   : > { %s5524_s25 = smov 48   ;;  %s5525_s5 = smov [#allocation13]  }
  0x31   : > { %s411_s7 = sshll.u32 %s5525_s5, 4  ;;  %s7875_s14 = smov 128   ;;  %s412_s7 = int_to_ptr.vmem [resolvable:$true] %s411_s7 }
  0x32   : > { %s465_s13 = scalar_lea.hbm %s7914_s1, %s4811_s10  ;;  %s5523_s10 = smov 768  }
  0x33   : > { %s466_s23 = sshll.u32 %s465_s13, 4  ;;  %s7877_s12 = smov 8   ;;  %s467_s23 = int_to_ptr.hbm [resolvable:$true] %s466_s23 }
  0x34   : > { %s409_s4 = sshll.u32 %s7915_s9, 4  ;;  %s45_s13 = sadd.s32 1, %s5509_s16  ;;  %s410_s4 = int_to_ptr.hbm [resolvable:$true] %s409_s4 }
  0x35   : > { %4881 = dma.hbm_to_vmem [thread:$0]  (!%p5701_p13), %s467_s23, 12288, %s469_s22, %s5713_s20, %s5522_s6, %s5523_s10, %s5524_s25  }
  0x36   : > { %4874 = dma.hbm_to_vmem [thread:$0]  (!%p5680_p8), %s410_s4, 8192, %s412_s7, [#allocation14], %s7875_s14, %s7875_s14, %s7877_s12  }
  0x37   : > { %s4753_s23 = sadd.s32 4294967294, %s5517_s18   ;;  %p46_p0 = scmp.ge.s32.totalorder %s45_s13, 2 }
  0x38   : > { %s48_s24 = sadd.s32 1, %s5513_s17  ;;  %s55_s22 = sadd.s32 1, %s5497_s30 }
  0x39   : > { %p62_p3 = scmp.ne.s32.totalorder %s5497_s30, %s5493_s29  ;;  %s8024_s13 = smov (%p46_p0, %s45_s13), 0 }
  0x3a   : > { %7917 = sst [smem:[#allocation29_spill]] %s8024_s13  ;;  %s8026_s24 = smov (!%p46_p0, %s48_s24), %s5513_s17 }
  0x3b   : > { %p5734_p4 = por %p63_p9, %p62_p3  ;;  %p68_p7 = scmp.ne.s32.totalorder %s5493_s29, %s5489_s28 }
  0x3c   : > { %p50_p8 = scmp.ge.s32.totalorder %s8026_s24, 2  ;;  %s78_s15 = ssub.s32 %s5509_s16, %s8024_s13 }
  0x3d   : > { %p5747_p10 = por %p7874_p1, %p68_p7  ;;  %p79_p12 = scmp.eq.s32.totalorder %s78_s15, 0 }
  0x3e   : > { %s8028_s24 = smov (%p50_p8, %s8026_s24), 0  ;;  %s7921_s10 = sadd.s32 1, %s5485_s27 }
  0x3f   : > { %7920 = sst [smem:[#allocation30_spill]] %s8028_s24  ;;  %s52_s5 = ssub.s32 %s5513_s17, %s8028_s24 }
  0x40   : > { %s5756_s25 = scalar_select %p79_p12, %s5485_s27, %s7921_s10  }
  0x41   : > { %p5762_p9 = por %p359_p2, %p62_p3  ;;  %p53_p0 = scmp.eq.s32.totalorder %s52_s5, 0 }
  0x42   : > { %7922 = sst [smem:[#allocation31_spill]] %s5756_s25  ;;  %p365_p1 = scmp.eq.s32.totalorder %s4753_s23, 3 }
  0x43   : > { %s434_s14 = sand.u32 1, %s5497_s30   ;;  %s4810_s15 = sshll.u32 %s5513_s17, 7 }
  0x44   : > { %s5769_s12 = scalar_select %p53_p0, %s5497_s30, %s55_s22  }
  0x45   : > { %p5774_p8 = por %p365_p1, %p68_p7  ;;  %s4758_s1 = sshll.u32 %s434_s14, 7 }
  0x46   : > { %7924 = sst [smem:[#allocation32_spill]] %s5769_s12  ;;  %s438_s23 = scalar_lea.vmem [#allocation4], %s4758_s1 }
  0x47   : > { %s7925_s10 = scalar_select %p5774_p8, 1, 0 }
  0x48   : > { %s7927_s0 = sld [smem:[#allocation49_spill]]  ;;  %s446_s5 = sshll.u32 %s438_s23, 4  ;;  %s447_s5 = int_to_ptr.vmem [resolvable:$true] %s446_s5 }
  0x49   : > { %7926 = sst [smem:[#allocation33_spill]] %s7925_s10  ;;  %p4876_p1 = pnand %p4894_p11, %p5734_p4 }
  0x4a   : > { %s4847_s22 = smul.u32 6, %s5693_s11  ;;  %s435_s12 = scalar_lea.sflag [#allocation5], %s434_s14 }
  0x4b   : > { %s483_s17 = smul.u32 6, %s5509_s16  ;;  %s7928_s30 = smov 8  }
  0x4c   : > { %s7929_s27 = smov 128   ;;  %s4762_s4 = sshll.u32 %s5693_s11, 8 }
  0x4d   : > { %s486_s24 = scalar_lea.hbm %s7859_s2, %s483_s17  ;;  %s7930_s17 = sand.u32 1, %s5517_s18  }
  0x4e   : > { %s443_s13 = scalar_lea.hbm %s7927_s0, %s4810_s15  ;;  %s488_s1 = sshll.u32 %s486_s24, 4  ;;  %s489_s1 = int_to_ptr.hbm [resolvable:$true] %s488_s1 }
  0x4f   : > { %s444_s25 = sshll.u32 %s443_s13, 4  ;;  %s482_s15 = scalar_lea.vmem [#allocation9], %s4847_s22  ;;  %s445_s25 = int_to_ptr.hbm [resolvable:$true] %s444_s25 }
  0x50   : > { %4878 = dma.hbm_to_vmem [thread:$0]  (!%p4876_p1), %s445_s25, 2048, %s447_s5, %s435_s12, %s7929_s27, %s7929_s27, %s7928_s30  }
  0x51   : > { %s490_s23 = sshll.u32 %s482_s15, 4  ;;  %s4812_s0 = sshll.u32 %s5509_s16, 8  ;;  %s491_s23 = int_to_ptr.vmem [resolvable:$true] %s490_s23 }
  0x52   : > { %4884 = dma.hbm_to_vmem [thread:$0]  (!%p5701_p13), %s489_s1, 96, %s491_s23, %s5713_s20  }
  0x53   : > { %s506_s28 = scalar_lea.hbm %s7860_s3, %s4812_s0  ;;  %s501_s25 = scalar_lea.vmem [#allocation10], %s4762_s4 }
  0x54   : > { %s507_s12 = sshll.u32 %s506_s28, 4  ;;  %s509_s5 = sshll.u32 %s501_s25, 4  ;;  %s508_s12 = int_to_ptr.hbm [resolvable:$true] %s507_s12  ;;  %s510_s5 = int_to_ptr.vmem [resolvable:$true] %s509_s5 }
  0x55   : > { %s498_s9 = scalar_lea.sflag [#allocation11], %s7930_s17  ;;  %521 = sbr.rel (%p5669_p6) target bundleno = 2775 (0xad7), region = 72 }
  0x56   : > { %4887 = dma.hbm_to_vmem [thread:$0]  (!%p5701_p13), %s508_s12, 4096, %s510_s5, %s498_s9, %s7929_s27, %s7929_s27, %s7928_s30  }
  0x5a   : > { %s5811_s11 = sand.u32 1, %s5493_s29  }
  0x5b   : > { %s4766_s0 = sshll.u32 %s5811_s11, 7  ;;  %s524_s28 = scalar_lea.sflag [#allocation5], %s5811_s11 }
  0x5c   : > { %s5815_s20 = scalar_lea.vmem [#allocation4], %s4766_s0 }
  0x5d   : > { %5452 = dma.done.wait (%p5747_p10), %s524_s28, 2048  }
  0x5e   : > { %5454 = vsyncadd (%p5747_p10), %s524_s28, 4294965248  ;;  %s533_s27 = sand.u32 1, %s5656_s19   ;;  %s535_s30 = sand.u32 1, %s5481_s26  }
  0x5f   : > { %s4848_s21 = smul.u32 768, %s535_s30  ;;  %s534_s10 = scalar_lea.sflag [#allocation8], %s533_s27 }
  0x61   : > { %s5823_s22 = scalar_lea.vmem [#allocation7], %s4848_s21 }
  0x62   : > { %5456 = dma.done.wait (%p5665_p5), %s534_s10, 12384  }
  0x63   : > { %5458 = vsyncadd (%p5665_p5), %s534_s10, 4294954912  ;;  %s4849_s13 = smul.u32 6, %s535_s30  ;;  %s4767_s24 = sshll.u32 %s535_s30, 8 }
  0x64   : > { %s554_s6 = scalar_lea.sflag [#allocation11], %s533_s27  ;;  %s5831_s15 = scalar_lea.vmem [#allocation10], %s4767_s24 }
  0x65   : > { %s5829_s1 = scalar_lea.vmem [#allocation9], %s4849_s13 }
  0x66   : > { %5460 = dma.done.wait (%p5665_p5), %s554_s6, 4096  }
  0x67   : > { %5462 = vsyncadd (%p5665_p5), %s554_s6, 4294963200  ;;  %p7932_p2 = scmp.eq.s32.totalorder %s5656_s19, 0 }
  0x69   : > { %5464 = dma.done.wait (%p7932_p2), [#allocation11], 8192   ;;  %p7933_p6 = pmov %p7932_p2 }
  0x6a   : > { %p7934_p11 = pmov %p7932_p2 }
  0x6b   : > { %5466 = vsyncadd (%p7933_p6), [#allocation11], 4294959104 }
  0x6c   : > { %5468 = dma.done.wait (%p7934_p11), [#allocation14], 8192   ;;  %p7935_p13 = pmov %p7932_p2 }
  0x6d   : > { %s5845_s23 = scalar_lea.vmem [#allocation15], %s4766_s0  ;;  %s7936_s4 = sld [smem:[#allocation25_spill]] }
  0x6e   : > { %5470 = vsyncadd (%p7935_p13), [#allocation14], 4294959104 }
  0x73   : > { %p4771_p3 = scmp.ne.s32.totalorder %s7936_s4, 0 }
  0x75   : > { %634 = sbr.rel (%p4771_p3) target bundleno = 155 (0x9b), region = 100 }
  0x7a   : > { %v5528_v0 = vmov 0.0   ;;  %v651_v1 = vld [vmem:[%s5815_s20] sm:$0xff]  ;;  %v652_v2 = vld [vmem:[%s5815_s20 + $0x8] sm:$0xff]  ;;  %v653_v3 = vld [vmem:[%s5815_s20 + $0x10] sm:$0xff] }
  0x7b   : > { %635 = vst [vmem:[#allocation2 + $0x30] sm:$0xff] %v5528_v0  ;;  %v654_v4 = vld [vmem:[%s5815_s20 + $0x18] sm:$0xff]  ;;  %v655_v5 = vld [vmem:[%s5815_s20 + $0x20] sm:$0xff]  ;;  %v656_v6 = vld [vmem:[%s5815_s20 + $0x28] sm:$0xff] }
  0x7c   : > { %636 = vst [vmem:[#allocation2] sm:$0xff] %v5528_v0  ;;  %v657_v7 = vld [vmem:[%s5815_s20 + $0x30] sm:$0xff]  ;;  %v658_v8 = vld [vmem:[%s5815_s20 + $0x38] sm:$0xff]  ;;  %v659_v9 = vld [vmem:[%s5815_s20 + $0x40] sm:$0xff] }
  0x7d   : > { %637 = vst [vmem:[#allocation2 + $0x58] sm:$0xff] %v5528_v0  ;;  %v660_v10 = vld [vmem:[%s5815_s20 + $0x48] sm:$0xff]  ;;  %v661_v11 = vld [vmem:[%s5815_s20 + $0x50] sm:$0xff]  ;;  %v662_v12 = vld [vmem:[%s5815_s20 + $0x58] sm:$0xff] }
  0x7e   : > { %638 = vst [vmem:[#allocation2 + $0x18] sm:$0xff] %v5528_v0  ;;  %v663_v13 = vld [vmem:[%s5815_s20 + $0x60] sm:$0xff]  ;;  %v664_v14 = vld [vmem:[%s5815_s20 + $0x68] sm:$0xff]  ;;  %v665_v15 = vld [vmem:[%s5815_s20 + $0x70] sm:$0xff] }
  0x7f   : > { %639 = vst [vmem:[#allocation2 + $0x50] sm:$0xff] %v5528_v0  ;;  %v666_v16 = vld [vmem:[%s5815_s20 + $0x78] sm:$0xff] }
  0x80   : > { %640 = vst [vmem:[#allocation2 + $0x68] sm:$0xff] %v5528_v0 }
  0x81   : > { %641 = vst [vmem:[#allocation2 + $0x8] sm:$0xff] %v5528_v0 }
  0x82   : > { %642 = vst [vmem:[#allocation2 + $0x48] sm:$0xff] %v5528_v0 }
  0x83   : > { %643 = vst [vmem:[#allocation2 + $0x40] sm:$0xff] %v5528_v0 }
  0x84   : > { %644 = vst [vmem:[#allocation2 + $0x20] sm:$0xff] %v5528_v0 }
  0x85   : > { %645 = vst [vmem:[#allocation2 + $0x10] sm:$0xff] %v5528_v0 }
  0x86   : > { %646 = vst [vmem:[#allocation2 + $0x38] sm:$0xff] %v5528_v0 }
  0x87   : > { %647 = vst [vmem:[#allocation2 + $0x60] sm:$0xff] %v5528_v0 }
  0x88   : > { %648 = vst [vmem:[#allocation2 + $0x70] sm:$0xff] %v5528_v0 }
  0x89   : > { %649 = vst [vmem:[#allocation2 + $0x78] sm:$0xff] %v5528_v0 }
  0x8a   : > { %650 = vst [vmem:[#allocation2 + $0x28] sm:$0xff] %v5528_v0 }
  0x8b   : > { %667 = vst [vmem:[#allocation3 + $0x28] sm:$0xff] %v651_v1 }
  0x8c   : > { %668 = vst [vmem:[#allocation3 + $0x68] sm:$0xff] %v652_v2 }
  0x8d   : > { %669 = vst [vmem:[#allocation3 + $0x10] sm:$0xff] %v653_v3 }
  0x8e   : > { %670 = vst [vmem:[#allocation3 + $0x40] sm:$0xff] %v654_v4 }
  0x8f   : > { %671 = vst [vmem:[#allocation3 + $0x48] sm:$0xff] %v655_v5 }
  0x90   : > { %672 = vst [vmem:[#allocation3 + $0x30] sm:$0xff] %v656_v6 }
  0x91   : > { %673 = vst [vmem:[#allocation3 + $0x70] sm:$0xff] %v657_v7 }
  0x92   : > { %674 = vst [vmem:[#allocation3 + $0x38] sm:$0xff] %v658_v8 }
  0x93   : > { %675 = vst [vmem:[#allocation3 + $0x20] sm:$0xff] %v659_v9 }
  0x94   : > { %676 = vst [vmem:[#allocation3 + $0x78] sm:$0xff] %v660_v10 }
  0x95   : > { %677 = vst [vmem:[#allocation3 + $0x18] sm:$0xff] %v661_v11 }
  0x96   : > { %678 = vst [vmem:[#allocation3 + $0x58] sm:$0xff] %v662_v12 }
  0x97   : > { %679 = vst [vmem:[#allocation3] sm:$0xff] %v663_v13 }
  0x98   : > { %680 = vst [vmem:[#allocation3 + $0x8] sm:$0xff] %v664_v14 }
  0x99   : > { %681 = vst [vmem:[#allocation3 + $0x60] sm:$0xff] %v665_v15 }
  0x9a   : > { %682 = vst [vmem:[#allocation3 + $0x50] sm:$0xff] %v666_v16 }
  0x9b PF: > { %v789_v17 = vld [vmem:[%s5823_s22 + $0x2d0] sm:$0xff]  ;;  %v790_v18 = vld [vmem:[%s5823_s22 + $0x2d8] sm:$0xff]  ;;  %v783_v19 = vld [vmem:[%s5823_s22 + $0x2a0] sm:$0xff]  ;;  %vm1415_vm0 = vcmask 130048   ;;  %s7983_s19 = sld [smem:[#allocation25_spill]] }
  0x9c   : > { %4814 = vmatpush.msra.mxu2 %v789_v17  ;;  %874 = vmatpush.msra.mxu1 %v790_v18  ;;  %v784_v20 = vld [vmem:[%s5823_s22 + $0x2a8] sm:$0xff]  ;;  %v777_v21 = vld [vmem:[%s5823_s22 + $0x270] sm:$0xff]  ;;  %v778_v22 = vld [vmem:[%s5823_s22 + $0x278] sm:$0xff] }
  0x9d   : > { %4830 = vmatpush.msra.mxu3 %v790_v18  ;;  %809 = vmatpush.msra.mxu0 %v789_v17  ;;  %v771_v23 = vld [vmem:[%s5823_s22 + $0x240] sm:$0xff]  ;;  %v772_v24 = vld [vmem:[%s5823_s22 + $0x248] sm:$0xff]  ;;  %v765_v25 = vld [vmem:[%s5823_s22 + $0x210] sm:$0xff] }
  0x9e   : > { %4815 = vmatpush.msra.mxu2 %v783_v19  ;;  %875 = vmatpush.msra.mxu1 %v784_v20  ;;  %v766_v26 = vld [vmem:[%s5823_s22 + $0x218] sm:$0xff]  ;;  %v759_v27 = vld [vmem:[%s5823_s22 + $0x1e0] sm:$0xff]  ;;  %v760_v28 = vld [vmem:[%s5823_s22 + $0x1e8] sm:$0xff] }
  0x9f   : > { %4831 = vmatpush.msra.mxu3 %v784_v20  ;;  %810 = vmatpush.msra.mxu0 %v783_v19  ;;  %v753_v29 = vld [vmem:[%s5823_s22 + $0x1b0] sm:$0xff]  ;;  %v754_v30 = vld [vmem:[%s5823_s22 + $0x1b8] sm:$0xff]  ;;  %v747_v31 = vld [vmem:[%s5823_s22 + $0x180] sm:$0xff] }
  0xa0   : > { %4816 = vmatpush.msra.mxu2 %v777_v21  ;;  %876 = vmatpush.msra.mxu1 %v778_v22  ;;  %v748_v32 = vld [vmem:[%s5823_s22 + $0x188] sm:$0xff]  ;;  %v741_v33 = vld [vmem:[%s5823_s22 + $0x150] sm:$0xff]  ;;  %v742_v34 = vld [vmem:[%s5823_s22 + $0x158] sm:$0xff] }
  0xa1   : > { %4832 = vmatpush.msra.mxu3 %v778_v22  ;;  %811 = vmatpush.msra.mxu0 %v777_v21  ;;  %v735_v35 = vld [vmem:[%s5823_s22 + $0x120] sm:$0xff]  ;;  %v736_v36 = vld [vmem:[%s5823_s22 + $0x128] sm:$0xff]  ;;  %v729_v37 = vld [vmem:[%s5823_s22 + $0xf0] sm:$0xff]  ;;  %p4804_p5 = scmp.ne.s32.totalorder %s7983_s19, 1 }
  0xa2   : > { %4817 = vmatpush.msra.mxu2 %v771_v23  ;;  %877 = vmatpush.msra.mxu1 %v772_v24  ;;  %v730_v38 = vld [vmem:[%s5823_s22 + $0xf8] sm:$0xff]  ;;  %v723_v39 = vld [vmem:[%s5823_s22 + $0xc0] sm:$0xff]  ;;  %v724_v40 = vld [vmem:[%s5823_s22 + $0xc8] sm:$0xff]  ;;  %s7984_s25 = sld [smem:[#allocation51_spill]] (!%p4804_p5) }
  0xa3   : > { %4833 = vmatpush.msra.mxu3 %v772_v24  ;;  %812 = vmatpush.msra.mxu0 %v771_v23  ;;  %v717_v41 = vld [vmem:[%s5823_s22 + $0x90] sm:$0xff]  ;;  %v718_v42 = vld [vmem:[%s5823_s22 + $0x98] sm:$0xff]  ;;  %v711_v43 = vld [vmem:[%s5823_s22 + $0x60] sm:$0xff]  ;;  %s7985_s9 = sld [smem:[#allocation52_spill]] (!%p4804_p5) }
  0xa4   : > { %4818 = vmatpush.msra.mxu2 %v765_v25  ;;  %878 = vmatpush.msra.mxu1 %v766_v26  ;;  %v712_v44 = vld [vmem:[%s5823_s22 + $0x68] sm:$0xff]  ;;  %v705_v45 = vld [vmem:[%s5823_s22 + $0x30] sm:$0xff]  ;;  %v706_v46 = vld [vmem:[%s5823_s22 + $0x38] sm:$0xff]  ;;  %s7986_s8 = sld [smem:[#allocation53_spill]] (!%p4804_p5) }
  0xa5   : > { %4834 = vmatpush.msra.mxu3 %v766_v26  ;;  %813 = vmatpush.msra.mxu0 %v765_v25  ;;  %v699_v47 = vld [vmem:[%s5823_s22] sm:$0xff]  ;;  %v700_v48 = vld [vmem:[%s5823_s22 + $0x8] sm:$0xff]  ;;  %v5896_v49 = vld [vmem:[#allocation3 + $0x38] sm:$0xff]  ;;  %s8001_s30 = sld [smem:[#allocation55_spill]] (!%p4804_p5) }
  0xa6   : > { %4819 = vmatpush.msra.mxu2 %v759_v27  ;;  %879 = vmatpush.msra.mxu1 %v760_v28  ;;  %v5898_v50 = vld [vmem:[#allocation3 + $0x28] sm:$0xff]  ;;  %v5904_v51 = vld [vmem:[#allocation3 + $0x20] sm:$0xff]  ;;  %v785_v55 = vld [vmem:[%s5823_s22 + $0x2b0] sm:$0xff]  ;;  %s8004_s4 = sld [smem:[#allocation59_spill]] (!%p4804_p5) }
  0xa7   : > { %4835 = vmatpush.msra.mxu3 %v760_v28  ;;  %814 = vmatpush.msra.mxu0 %v759_v27  ;;  %v5906_v52 = vld [vmem:[#allocation3 + $0x68] sm:$0xff]  ;;  %v791_v53 = vld [vmem:[%s5823_s22 + $0x2e0] sm:$0xff]  ;;  %v786_v56 = vld [vmem:[%s5823_s22 + $0x2b8] sm:$0xff] }
  0xa8   : > { %4820 = vmatpush.msra.mxu2 %v753_v29  ;;  %880 = vmatpush.msra.mxu1 %v754_v30  ;;  %v792_v54 = vld [vmem:[%s5823_s22 + $0x2e8] sm:$0xff]  ;;  %v793_v57 = vld [vmem:[%s5823_s22 + $0x2f0] sm:$0xff]  ;;  %v779_v58 = vld [vmem:[%s5823_s22 + $0x280] sm:$0xff] }
  0xa9   : > { %4836 = vmatpush.msra.mxu3 %v754_v30  ;;  %815 = vmatpush.msra.mxu0 %v753_v29  ;;  %v780_v59 = vld [vmem:[%s5823_s22 + $0x288] sm:$0xff]  ;;  %v787_v60 = vld [vmem:[%s5823_s22 + $0x2c0] sm:$0xff]  ;;  %v5920_v61 = vld [vmem:[#allocation3 + $0x78] sm:$0xff] }
  0xaa   : > { %4821 = vmatpush.msra.mxu2 %v747_v31  ;;  %881 = vmatpush.msra.mxu1 %v748_v32  ;;  %v774_v62 = vld [vmem:[%s5823_s22 + $0x258] sm:$0xff]  ;;  %v5923_v63 = vld [vmem:[#allocation3 + $0x10] sm:$0xff]  ;;  %v767_v1 = vld [vmem:[%s5823_s22 + $0x220] sm:$0xff] }
  0xab   : > { %4837 = vmatpush.msra.mxu3 %v748_v32  ;;  %816 = vmatpush.msra.mxu0 %v747_v31  ;;  %v773_v0 = vld [vmem:[%s5823_s22 + $0x250] sm:$0xff]  ;;  %v768_v2 = vld [vmem:[%s5823_s22 + $0x228] sm:$0xff]  ;;  %v762_v3 = vld [vmem:[%s5823_s22 + $0x1f8] sm:$0xff] }
  0xac   : > { %4822 = vmatpush.msra.mxu2 %v741_v33  ;;  %882 = vmatpush.msra.mxu1 %v742_v34  ;;  %v781_v4 = vld [vmem:[%s5823_s22 + $0x290] sm:$0xff]  ;;  %v756_v6 = vld [vmem:[%s5823_s22 + $0x1c8] sm:$0xff]  ;;  %v775_v7 = vld [vmem:[%s5823_s22 + $0x260] sm:$0xff] }
  0xad   : > { %4838 = vmatpush.msra.mxu3 %v742_v34  ;;  %817 = vmatpush.msra.mxu0 %v741_v33  ;;  %v761_v5 = vld [vmem:[%s5823_s22 + $0x1f0] sm:$0xff]  ;;  %v5937_v8 = vld [vmem:[#allocation3 + $0x18] sm:$0xff]  ;;  %v5940_v10 = vld [vmem:[#allocation3 + $0x40] sm:$0xff] }
  0xae   : > { %4823 = vmatpush.msra.mxu2 %v735_v35  ;;  %883 = vmatpush.msra.mxu1 %v736_v36  ;;  %v750_v9 = vld [vmem:[%s5823_s22 + $0x198] sm:$0xff]  ;;  %v755_v11 = vld [vmem:[%s5823_s22 + $0x1c0] sm:$0xff]  ;;  %v749_v12 = vld [vmem:[%s5823_s22 + $0x190] sm:$0xff] }
  0xaf   : > { %4839 = vmatpush.msra.mxu3 %v736_v36  ;;  %818 = vmatpush.msra.mxu0 %v735_v35  ;;  %v744_v13 = vld [vmem:[%s5823_s22 + $0x168] sm:$0xff]  ;;  %v738_v14 = vld [vmem:[%s5823_s22 + $0x138] sm:$0xff]  ;;  %v769_v15 = vld [vmem:[%s5823_s22 + $0x230] sm:$0xff] }
  0xb0   : > { %4824 = vmatpush.msra.mxu2 %v729_v37  ;;  %884 = vmatpush.msra.mxu1 %v730_v38  ;;  %v743_v16 = vld [vmem:[%s5823_s22 + $0x160] sm:$0xff]  ;;  %v732_v17 = vld [vmem:[%s5823_s22 + $0x108] sm:$0xff]  ;;  %v5954_v19 = vld [vmem:[#allocation3 + $0x58] sm:$0xff] }
  0xb1   : > { %4840 = vmatpush.msra.mxu3 %v730_v38  ;;  %819 = vmatpush.msra.mxu0 %v729_v37  ;;  %v763_v18 = vld [vmem:[%s5823_s22 + $0x200] sm:$0xff]  ;;  %v726_v20 = vld [vmem:[%s5823_s22 + $0xd8] sm:$0xff]  ;;  %v737_v21 = vld [vmem:[%s5823_s22 + $0x130] sm:$0xff] }
  0xb2   : > { %4825 = vmatpush.msra.mxu2 %v723_v39  ;;  %885 = vmatpush.msra.mxu1 %v724_v40  ;;  %v731_v22 = vld [vmem:[%s5823_s22 + $0x100] sm:$0xff]  ;;  %v5960_v23 = vld [vmem:[#allocation3 + $0x48] sm:$0xff]  ;;  %v757_v25 = vld [vmem:[%s5823_s22 + $0x1d0] sm:$0xff] }
  0xb3   : > { %4841 = vmatpush.msra.mxu3 %v724_v40  ;;  %820 = vmatpush.msra.mxu0 %v723_v39  ;;  %v720_v24 = vld [vmem:[%s5823_s22 + $0xa8] sm:$0xff]  ;;  %v725_v26 = vld [vmem:[%s5823_s22 + $0xd0] sm:$0xff]  ;;  %v714_v27 = vld [vmem:[%s5823_s22 + $0x78] sm:$0xff] }
  0xb4   : > { %4826 = vmatpush.msra.mxu2 %v717_v41  ;;  %886 = vmatpush.msra.mxu1 %v718_v42  ;;  %v708_v28 = vld [vmem:[%s5823_s22 + $0x48] sm:$0xff]  ;;  %v751_v29 = vld [vmem:[%s5823_s22 + $0x1a0] sm:$0xff]  ;;  %v702_v32 = vld [vmem:[%s5823_s22 + $0x18] sm:$0xff] }
  0xb5   : > { %4842 = vmatpush.msra.mxu3 %v718_v42  ;;  %821 = vmatpush.msra.mxu0 %v717_v41  ;;  %v719_v30 = vld [vmem:[%s5823_s22 + $0xa0] sm:$0xff]  ;;  %v713_v33 = vld [vmem:[%s5823_s22 + $0x70] sm:$0xff]  ;;  %v794_v38 = vld [vmem:[%s5823_s22 + $0x2f8] sm:$0xff] }
  0xb6   : > { %4827 = vmatpush.msra.mxu2 %v711_v43  ;;  %887 = vmatpush.msra.mxu1 %v712_v44  ;;  %v5972_v31 = vld [vmem:[#allocation3] sm:$0xff]  ;;  %v745_v34 = vld [vmem:[%s5823_s22 + $0x170] sm:$0xff]  ;;  %v788_v41 = vld [vmem:[%s5823_s22 + $0x2c8] sm:$0xff] }
  0xb7   : > { %4843 = vmatpush.msra.mxu3 %v712_v44  ;;  %822 = vmatpush.msra.mxu0 %v711_v43  ;;  %v707_v35 = vld [vmem:[%s5823_s22 + $0x40] sm:$0xff]  ;;  %v5979_v36 = vld [vmem:[#allocation3 + $0x30] sm:$0xff]  ;;  %v5989_v42 = vld [vmem:[#allocation3 + $0x8] sm:$0xff] }
  0xb8   : > { %4828 = vmatpush.msra.mxu2 %v705_v45  ;;  %888 = vmatpush.msra.mxu1 %v706_v46  ;;  %v739_v37 = vld [vmem:[%s5823_s22 + $0x140] sm:$0xff]  ;;  %v701_v39 = vld [vmem:[%s5823_s22 + $0x10] sm:$0xff]  ;;  %v782_v44 = vld [vmem:[%s5823_s22 + $0x298] sm:$0xff] }
  0xb9   : > { %4844 = vmatpush.msra.mxu3 %v706_v46  ;;  %823 = vmatpush.msra.mxu0 %v705_v45  ;;  %v733_v40 = vld [vmem:[%s5823_s22 + $0x110] sm:$0xff]  ;;  %v727_v43 = vld [vmem:[%s5823_s22 + $0xe0] sm:$0xff] }
  0xba   : > { %4829 = vmatpush.msra.mxu2 %v699_v47  ;;  %889 = vmatpush.msra.mxu1 %v700_v48  ;;  %v721_v45 = vld [vmem:[%s5823_s22 + $0xb0] sm:$0xff] }
  0xbb   : > { %4845 = vmatpush.msra.mxu3 %v700_v48  ;;  %846 = vmatmul.f32.vlgmr.msra.gmra.mxu2 %v5896_v49  ;;  %v5995_v46 = vld [vmem:[#allocation3 + $0x70] sm:$0xff]  ;;  %v715_v48 = vld [vmem:[%s5823_s22 + $0x80] sm:$0xff] }
  0xbc   : > { %890 = vmatmul.f32.vlgmr.msra.gmra.mxu1 %v5898_v50  ;;  %911 = vmatmul.f32.vlgmr.msra.gmra.mxu3 %v5896_v49 }
  0xbd   : > { %824 = vmatpush.msra.mxu0 %v699_v47  ;;  %939 = vmatpush.msrb.mxu2 %v791_v53  ;;  %v776_v47 = vld [vmem:[%s5823_s22 + $0x268] sm:$0xff]  ;;  %v770_v53 = vld [vmem:[%s5823_s22 + $0x238] sm:$0xff] }
  0xbe   : > { %825 = vmatmul.f32.vlgmr.msra.gmra.mxu0 %v5898_v50  ;;  %1004 = vmatpush.msrb.mxu3 %v792_v54  ;;  %v709_v54 = vld [vmem:[%s5823_s22 + $0x50] sm:$0xff] }
  0xbf   : > { %940 = vmatpush.msrb.mxu2 %v785_v55  ;;  %1069 = vmatpush.msrb.mxu0 %v793_v57  ;;  %v764_v55 = vld [vmem:[%s5823_s22 + $0x208] sm:$0xff]  ;;  %v703_v57 = vld [vmem:[%s5823_s22 + $0x20] sm:$0xff] }
  0xc0   : > { %1005 = vmatpush.msrb.mxu3 %v786_v56  ;;  %1134 = vmatpush.msrb.mxu1 %v794_v38  ;;  %v6005_v56 = vld [vmem:[#allocation3 + $0x60] sm:$0xff] }
  0xc1   : > { %941 = vmatpush.msrb.mxu2 %v779_v58  ;;  %1070 = vmatpush.msrb.mxu0 %v787_v60  ;;  %v758_v58 = vld [vmem:[%s5823_s22 + $0x1d8] sm:$0xff] }
  0xc2   : > { %1006 = vmatpush.msrb.mxu3 %v780_v59  ;;  %1135 = vmatpush.msrb.mxu1 %v788_v41  ;;  %v752_v59 = vld [vmem:[%s5823_s22 + $0x1a8] sm:$0xff]  ;;  %v746_v60 = vld [vmem:[%s5823_s22 + $0x178] sm:$0xff] }
  0xc3   : > { %849 = vmatmul.f32.gmra.mxu2 %v5904_v51  ;;  %1071 = vmatpush.msrb.mxu0 %v781_v4  ;;  %v716_v4 = vld [vmem:[%s5823_s22 + $0x88] sm:$0xff] }
  0xc4   : > { %893 = vmatmul.f32.gmra.mxu1 %v5906_v52  ;;  %914 = vmatmul.f32.gmra.mxu3 %v5904_v51 }
  0xc5   : > { %1007 = vmatpush.msrb.mxu3 %v774_v62  ;;  %942 = vmatpush.msrb.mxu2 %v773_v0  ;;  %v740_v62 = vld [vmem:[%s5823_s22 + $0x148] sm:$0xff]  ;;  %v6015_v0 = vld [vmem:[#allocation3 + $0x50] sm:$0xff] }
  0xc6   : > { %828 = vmatmul.f32.gmra.mxu0 %v5906_v52  ;;  %1136 = vmatpush.msrb.mxu1 %v782_v44 }
  0xc7   : > { %1008 = vmatpush.msrb.mxu3 %v768_v2  ;;  %943 = vmatpush.msrb.mxu2 %v767_v1  ;;  %v734_v1 = vld [vmem:[%s5823_s22 + $0x118] sm:$0xff]  ;;  %v728_v2 = vld [vmem:[%s5823_s22 + $0xe8] sm:$0xff] }
  0xc8   : > { %1072 = vmatpush.msrb.mxu0 %v775_v7  ;;  %1137 = vmatpush.msrb.mxu1 %v776_v47  ;;  %v6062_v7 = vld [vmem:[%s5829_s1] sm:$0x3f]  ;;  %s8003_s1 = sld [smem:[#allocation58_spill]] (!%p4804_p5) }
  0xc9   : > { %1009 = vmatpush.msrb.mxu3 %v762_v3  ;;  %944 = vmatpush.msrb.mxu2 %v761_v5  ;;  %v722_v3 = vld [vmem:[%s5823_s22 + $0xb8] sm:$0xff] }
  0xca   : > { %1073 = vmatpush.msrb.mxu0 %v769_v15  ;;  %1138 = vmatpush.msrb.mxu1 %v770_v53  ;;  %v710_v5 = vld [vmem:[%s5823_s22 + $0x58] sm:$0xff] }
  0xcb   : > { %852 = vmatmul.f32.gmra.mxu2 %v5920_v61  ;;  %1010 = vmatpush.msrb.mxu3 %v756_v6  ;;  %v704_v6 = vld [vmem:[%s5823_s22 + $0x28] sm:$0xff]  ;;  %s8002_s22 = sld [smem:[#allocation57_spill]] (!%p4804_p5) }
  0xcc   : > { %896 = vmatmul.f32.gmra.mxu1 %v5923_v63  ;;  %917 = vmatmul.f32.gmra.mxu3 %v5920_v61 }
  0xcd   : > { %1011 = vmatpush.msrb.mxu3 %v750_v9  ;;  %945 = vmatpush.msrb.mxu2 %v755_v11 }
  0xce   : > { %831 = vmatmul.f32.gmra.mxu0 %v5923_v63  ;;  %1139 = vmatpush.msrb.mxu1 %v764_v55 }
  0xcf   : > { %1012 = vmatpush.msrb.mxu3 %v744_v13  ;;  %946 = vmatpush.msrb.mxu2 %v749_v12 }
  0xd0   : > { %1074 = vmatpush.msrb.mxu0 %v763_v18  ;;  %1140 = vmatpush.msrb.mxu1 %v758_v58  ;;  %v6156_v58 = vperm.slane %v6062_v7, 3 }
  0xd1   : > { %1013 = vmatpush.msrb.mxu3 %v738_v14  ;;  %947 = vmatpush.msrb.mxu2 %v743_v16 }
  0xd2   : > { %1075 = vmatpush.msrb.mxu0 %v757_v25  ;;  %1141 = vmatpush.msrb.mxu1 %v752_v59 }
  0xd3   : > { %855 = vmatmul.f32.gmra.mxu2 %v5937_v8  ;;  %1014 = vmatpush.msrb.mxu3 %v732_v17 }
  0xd4   : > { %899 = vmatmul.f32.gmra.mxu1 %v5940_v10  ;;  %920 = vmatmul.f32.gmra.mxu3 %v5937_v8 }
  0xd5   : > { %1015 = vmatpush.msrb.mxu3 %v726_v20  ;;  %948 = vmatpush.msrb.mxu2 %v737_v21 }
  0xd6   : > { %834 = vmatmul.f32.gmra.mxu0 %v5940_v10  ;;  %1142 = vmatpush.msrb.mxu1 %v746_v60 }
  0xd7   : > { %1016 = vmatpush.msrb.mxu3 %v720_v24  ;;  %949 = vmatpush.msrb.mxu2 %v731_v22 }
  0xd8   : > { %1076 = vmatpush.msrb.mxu0 %v751_v29  ;;  %1143 = vmatpush.msrb.mxu1 %v740_v62 }
  0xd9   : > { %1017 = vmatpush.msrb.mxu3 %v714_v27  ;;  %950 = vmatpush.msrb.mxu2 %v725_v26 }
  0xda   : > { %1077 = vmatpush.msrb.mxu0 %v745_v34  ;;  %1144 = vmatpush.msrb.mxu1 %v734_v1 }
  0xdb   : > { %858 = vmatmul.f32.gmra.mxu2 %v5954_v19  ;;  %1018 = vmatpush.msrb.mxu3 %v708_v28 }
  0xdc   : > { %923 = vmatmul.f32.gmra.mxu3 %v5954_v19  ;;  %902 = vmatmul.f32.gmra.mxu1 %v5960_v23 }
  0xdd   : > { %951 = vmatpush.msrb.mxu2 %v719_v30  ;;  %1019 = vmatpush.msrb.mxu3 %v702_v32 }
  0xde   : > { %837 = vmatmul.f32.gmra.mxu0 %v5960_v23  ;;  %1145 = vmatpush.msrb.mxu1 %v728_v2 }
  0xdf   : > { %952 = vmatpush.msrb.mxu2 %v713_v33  ;;  %1078 = vmatpush.msrb.mxu0 %v739_v37 }
  0xe0   : > { %1146 = vmatpush.msrb.mxu1 %v722_v3 }
  0xe1   : > { %953 = vmatpush.msrb.mxu2 %v707_v35  ;;  %1079 = vmatpush.msrb.mxu0 %v733_v40 }
  0xe2   : > { %1147 = vmatpush.msrb.mxu1 %v716_v4 }
  0xe3   : > { %861 = vmatmul.f32.gmra.mxu2 %v5972_v31  ;;  %1080 = vmatpush.msrb.mxu0 %v727_v43  ;;  %v6136_v43 = vperm.slane %v6062_v7, 4 }
  0xe4   : > { %926 = vmatmul.f32.gmra.mxu3 %v5972_v31  ;;  %905 = vmatmul.f32.gmra.mxu1 %v5979_v36 }
  0xe5   : > { %954 = vmatpush.msrb.mxu2 %v701_v39  ;;  %1081 = vmatpush.msrb.mxu0 %v721_v45  ;;  %v6142_v45 = vperm.slane %v6062_v7, 0 }
  0xe6   : > { %840 = vmatmul.f32.gmra.mxu0 %v5979_v36  ;;  %1148 = vmatpush.msrb.mxu1 %v710_v5 }
  0xe7   : > { %1082 = vmatpush.msrb.mxu0 %v715_v48 }
  0xe8   : > { %1149 = vmatpush.msrb.mxu1 %v704_v6 }
  0xe9   : > { %1083 = vmatpush.msrb.mxu0 %v709_v54 }
  0xeb   : > { %864 = vmatmul.f32.gmra.mxu2 %v5989_v42  ;;  %1084 = vmatpush.msrb.mxu0 %v703_v57 }
  0xec   : > { %929 = vmatmul.f32.gmra.mxu3 %v5989_v42  ;;  %908 = vmatmul.f32.gmra.mxu1 %v5995_v46 }
  0xee   : > { %843 = vmatmul.f32.gmra.mxu0 %v5995_v46 }
  0xf3   : > { %867 = vmatmul.f32.gmra.mxu2 %v6005_v56 }
  0xf4   : > { %932 = vmatmul.f32.gmra.mxu3 %v6005_v56  ;;  %1150 = vmatmul.f32.vlgmr.msrb.gmra.mxu1 %v5898_v50 }
  0xf6   : > { %1085 = vmatmul.f32.vlgmr.msrb.gmra.mxu0 %v5898_v50 }
  0xfb   : > { %870 = vmatmul.f32.gmra.mxu2 %v6015_v0 }
  0xfc   : > { %935 = vmatmul.f32.gmra.mxu3 %v6015_v0  ;;  %1153 = vmatmul.f32.gmra.mxu1 %v5906_v52 }
  0xfe   : > { %1088 = vmatmul.f32.gmra.mxu0 %v5906_v52 }
 0x103   : > { %955 = vmatmul.f32.vlgmr.msrb.gmra.mxu2 %v5898_v50 }
 0x104   : > { %1020 = vmatmul.f32.vlgmr.msrb.gmra.mxu3 %v5898_v50  ;;  %1156 = vmatmul.f32.gmra.mxu1 %v5923_v63 }
 0x106   : > { %1091 = vmatmul.f32.gmra.mxu0 %v5923_v63 }
 0x10b   : > { %958 = vmatmul.f32.gmra.mxu2 %v5906_v52 }
 0x10c   : > { %1023 = vmatmul.f32.gmra.mxu3 %v5906_v52  ;;  %1159 = vmatmul.f32.gmra.mxu1 %v5940_v10 }
 0x10e   : > { %1094 = vmatmul.f32.gmra.mxu0 %v5940_v10 }
 0x113   : > { %961 = vmatmul.f32.gmra.mxu2 %v5923_v63 }
 0x114   : > { %1026 = vmatmul.f32.gmra.mxu3 %v5923_v63  ;;  %1162 = vmatmul.f32.gmra.mxu1 %v5960_v23 }
 0x116   : > { %1097 = vmatmul.f32.gmra.mxu0 %v5960_v23 }
 0x11b   : > { %964 = vmatmul.f32.gmra.mxu2 %v5940_v10 }
 0x11c   : > { %1029 = vmatmul.f32.gmra.mxu3 %v5940_v10  ;;  %1165 = vmatmul.f32.gmra.mxu1 %v5979_v36  ;;  %v6066_v10 = vperm.slane %v6062_v7, 1 }
 0x11e   : > { %1100 = vmatmul.f32.gmra.mxu0 %v5979_v36 }
 0x123   : > { %967 = vmatmul.f32.gmra.mxu2 %v5960_v23 }
 0x124   : > { %1032 = vmatmul.f32.gmra.mxu3 %v5960_v23  ;;  %1168 = vmatmul.f32.gmra.mxu1 %v5995_v46 }
 0x126   : > { %1103 = vmatmul.f32.gmra.mxu0 %v5995_v46 }
 0x12b   : > { %970 = vmatmul.f32.gmra.mxu2 %v5979_v36 }
 0x12c   : > { %1035 = vmatmul.f32.gmra.mxu3 %v5979_v36  ;;  %1171 = vmatmul.f32.gmra.mxu1 %v5896_v49 }
 0x12e   : > { %1106 = vmatmul.f32.gmra.mxu0 %v5896_v49 }
 0x133   : > { %973 = vmatmul.f32.gmra.mxu2 %v5995_v46 }
 0x134   : > { %1038 = vmatmul.f32.gmra.mxu3 %v5995_v46  ;;  %1174 = vmatmul.f32.gmra.mxu1 %v5904_v51 }
 0x136   : > { %1109 = vmatmul.f32.gmra.mxu0 %v5904_v51 }
 0x139   : > { %v891_v50 = vpop.f32.mrf.mxu1 }
 0x13a   : > { %v892_v14 = vadd.f32 %v891_v50, %v6066_v10 }
 0x13b   : > { %976 = vmatmul.f32.gmra.mxu2 %v5896_v49  ;;  %v6055_v52 = vpop.f32.mrf.mxu0 }
 0x13c   : > { %1041 = vmatmul.f32.gmra.mxu3 %v5896_v49  ;;  %1177 = vmatmul.f32.gmra.mxu1 %v5920_v61  ;;  %v827_v54 = vadd.f32 %v6055_v52, %v6142_v45 }
 0x13e   : > { %v6058_v63 = vpop.f32.mrf.mxu2  ;;  %1112 = vmatmul.f32.gmra.mxu0 %v5920_v61 }
 0x13f   : > { %v912_v9 = vpop.f32.mrf.mxu3 }
 0x141   : > { %v894_v11 = vpop.f32.mrf.mxu1 }
 0x142   : > { %v895_v12 = vadd.f32 %v894_v11, %v6066_v10 }
 0x143   : > { %979 = vmatmul.f32.gmra.mxu2 %v5904_v51  ;;  %v6070_v13 = vpop.f32.mrf.mxu0 }
 0x144   : > { %1044 = vmatmul.f32.gmra.mxu3 %v5904_v51  ;;  %1245 = vmatpush.xpose.msra.mxu2 %v895_v12  ;;  %v830_v3 = vadd.f32 %v6070_v13, %v6142_v45 }
 0x145   : > { %1180 = vmatmul.f32.gmra.mxu1 %v5937_v8 }
 0x146   : > { %v6074_v15 = vpop.f32.mrf.mxu2  ;;  %1115 = vmatmul.f32.gmra.mxu0 %v5937_v8 }
 0x147   : > { %v6077_v49 = vpop.f32.mrf.mxu3 }
 0x148   : > { %1246 = vmatpush.xpose.msra.mxu2 %v892_v14  ;;  %v916_v59 = vadd.f32 %v6077_v49, %v6066_v10 }
 0x149   : > { %v897_v16 = vpop.f32.mrf.mxu1 }
 0x14a   : > { %v898_v23 = vadd.f32 %v897_v16, %v6066_v10 }
 0x14b   : > { %982 = vmatmul.f32.gmra.mxu2 %v5920_v61  ;;  %v6081_v17 = vpop.f32.mrf.mxu0 }
 0x14c   : > { %1047 = vmatmul.f32.gmra.mxu3 %v5920_v61  ;;  %v913_v61 = vadd.f32 %v912_v9, %v6066_v10  ;;  %v833_v53 = vadd.f32 %v6081_v17, %v6142_v45 }
 0x14d   : > { %1183 = vmatmul.f32.gmra.mxu1 %v5954_v19 }
 0x14e   : > { %v6084_v18 = vpop.f32.mrf.mxu2  ;;  %1118 = vmatmul.f32.gmra.mxu0 %v5954_v19 }
 0x14f   : > { %v6087_v20 = vpop.f32.mrf.mxu3 }
 0x150   : > { %v919_v55 = vadd.f32 %v6087_v20, %v6066_v10 }
 0x151   : > { %v900_v21 = vpop.f32.mrf.mxu1 }
 0x152   : > { %v901_v22 = vadd.f32 %v900_v21, %v6066_v10 }
 0x153   : > { %985 = vmatmul.f32.gmra.mxu2 %v5937_v8  ;;  %v6092_v51 = vpop.f32.mrf.mxu0 }
 0x154   : > { %1050 = vmatmul.f32.gmra.mxu3 %v5937_v8  ;;  %v836_v1 = vadd.f32 %v6092_v51, %v6142_v45 }
 0x155   : > { %1268 = vmatpush.xpose.msra.mxu3 %v901_v22  ;;  %1186 = vmatmul.f32.gmra.mxu1 %v5972_v31 }
 0x156   : > { %v6096_v24 = vpop.f32.mrf.mxu2  ;;  %1121 = vmatmul.f32.gmra.mxu0 %v5972_v31 }
 0x157   : > { %v6099_v25 = vpop.f32.mrf.mxu3 }
 0x158   : > { %v922_v62 = vadd.f32 %v6099_v25, %v6066_v10 }
 0x159   : > { %1269 = vmatpush.xpose.msra.mxu3 %v898_v23  ;;  %v903_v26 = vpop.f32.mrf.mxu1  ;;  %v848_v23 = vadd.f32 %v6058_v63, %v6142_v45 }
 0x15a   : > { %v904_v33 = vadd.f32 %v903_v26, %v6066_v10 }
 0x15b   : > { %988 = vmatmul.f32.gmra.mxu2 %v5954_v19  ;;  %v6104_v27 = vpop.f32.mrf.mxu0 }
 0x15c   : > { %1053 = vmatmul.f32.gmra.mxu3 %v5954_v19  ;;  %v839_v52 = vadd.f32 %v6104_v27, %v6142_v45 }
 0x15d   : > { %1314 = vmatpush.xpose.msrb.mxu3 %v913_v61  ;;  %1189 = vmatmul.f32.gmra.mxu1 %v5989_v42 }
 0x15e   : > { %v6107_v28 = vpop.f32.mrf.mxu2  ;;  %1124 = vmatmul.f32.gmra.mxu0 %v5989_v42 }
 0x15f   : > { %v924_v29 = vpop.f32.mrf.mxu3 }
 0x161   : > { %v906_v30 = vpop.f32.mrf.mxu1 }
 0x162   : > { %v907_v8 = vadd.f32 %v906_v30, %v6066_v10  ;;  %v857_v30 = vadd.f32 %v6096_v24, %v6142_v45  ;;  %v854_v24 = vadd.f32 %v6084_v18, %v6142_v45 }
 0x163   : > { %991 = vmatmul.f32.gmra.mxu2 %v5972_v31  ;;  %v6113_v32 = vpop.f32.mrf.mxu0 }
 0x164   : > { %1056 = vmatmul.f32.gmra.mxu3 %v5972_v31  ;;  %1291 = vmatpush.xpose.msrb.mxu2 %v907_v8  ;;  %v842_v21 = vadd.f32 %v6113_v32, %v6142_v45 }
 0x165   : > { %1192 = vmatmul.f32.gmra.mxu1 %v6005_v56 }
 0x166   : > { %v6117_v34 = vpop.f32.mrf.mxu2  ;;  %1127 = vmatmul.f32.gmra.mxu0 %v6005_v56 }
 0x167   : > { %v6120_v35 = vpop.f32.mrf.mxu3 }
 0x168   : > { %1292 = vmatpush.xpose.msrb.mxu2 %v904_v33  ;;  %v928_v16 = vadd.f32 %v6120_v35, %v6066_v10 }
 0x169   : > { %v909_v19 = vpop.f32.mrf.mxu1 }
 0x16a   : > { %v910_v36 = vadd.f32 %v909_v19, %v6066_v10 }
 0x16b   : > { %994 = vmatmul.f32.gmra.mxu2 %v5989_v42  ;;  %v844_v37 = vpop.f32.mrf.mxu0 }
 0x16c   : > { %1059 = vmatmul.f32.gmra.mxu3 %v5989_v42  ;;  %v845_v12 = vadd.f32 %v844_v37, %v6142_v45  ;;  %v860_v37 = vadd.f32 %v6107_v28, %v6142_v45 }
 0x16d   : > { %1315 = vmatpush.xpose.msrb.mxu3 %v910_v36  ;;  %1195 = vmatmul.f32.gmra.mxu1 %v6015_v0 }
 0x16e   : > { %v6126_v38 = vpop.f32.mrf.mxu2  ;;  %1130 = vmatmul.f32.gmra.mxu0 %v6015_v0 }
 0x16f   : > { %v930_v39 = vpop.f32.mrf.mxu3 }
 0x170   : > { %v931_v13 = vadd.f32 %v930_v39, %v6066_v10 }
 0x171   : > { %v1151_v36 = vpop.f32.mrf.mxu1 }
 0x173   : > { %997 = vmatmul.f32.gmra.mxu2 %v6005_v56  ;;  %v1086_v31 = vpop.f32.mrf.mxu0 }
 0x174   : > { %1062 = vmatmul.f32.gmra.mxu3 %v6005_v56  ;;  %v1087_v47 = vadd.f32 %v1086_v31, %v6136_v43  ;;  %v925_v56 = vadd.f32 %v924_v29, %v6066_v10  ;;  %v851_v29 = vadd.f32 %v6074_v15, %v6142_v45 }
 0x176   : > { %v6132_v40 = vpop.f32.mrf.mxu2 }
 0x177   : > { %v933_v41 = vpop.f32.mrf.mxu3 }
 0x178   : > { %v934_v20 = vadd.f32 %v933_v41, %v6066_v10 }
 0x179   : > { %v1154_v18 = vpop.f32.mrf.mxu1 }
 0x17b   : > { %1000 = vmatmul.f32.gmra.mxu2 %v6015_v0  ;;  %v1089_v44 = vpop.f32.mrf.mxu0 }
 0x17c   : > { %1065 = vmatmul.f32.gmra.mxu3 %v6015_v0  ;;  %v1090_v42 = vadd.f32 %v1089_v44, %v6136_v43  ;;  %v863_v44 = vadd.f32 %v6117_v34, %v6142_v45 }
 0x17e   : > { %v6144_v46 = vpop.f32.mrf.mxu2  ;;  %2046 = vmatpush.xpose.msra.mxu0 %v1090_v42  ;;  %v869_v42 = vadd.f32 %v6132_v40, %v6142_v45 }
 0x17f   : > { %v936_v48 = vpop.f32.mrf.mxu3  ;;  %v872_v34 = vadd.f32 %v6144_v46, %v6142_v45 }
 0x180   : > { %v937_v14 = vadd.f32 %v936_v48, %v6066_v10  ;;  %v6188_v10 = vperm.slane %v6062_v7, 2 }
 0x182   : > { %2047 = vmatpush.xpose.msra.mxu0 %v1087_v47 }
 0x183   : > { %1247 = vmatmul.f32.vlgmr.msra.gmra.mxu2 %v827_v54  ;;  %v1092_v57 = vpop.f32.mrf.mxu0 }
 0x184   : > { %1270 = vmatmul.f32.vlgmr.msra.gmra.mxu3 %v833_v53  ;;  %1337 = vmatpush.xpose.msra.mxu2 %v919_v55  ;;  %v1093_v50 = vadd.f32 %v1092_v57, %v6136_v43  ;;  %v866_v55 = vadd.f32 %v6126_v38, %v6142_v45  ;;  %v1157_v57 = vpop.f32.mrf.mxu1 }
 0x185   : > { %1360 = vmatpush.xpose.msra.mxu3 %v925_v56 }
 0x186   : > { %v956_v60 = vpop.f32.mrf.mxu2 }
 0x187   : > { %v1021_v0 = vpop.f32.mrf.mxu3  ;;  %v957_v33 = vadd.f32 %v956_v60, %v6188_v10 }
 0x188   : > { %v1022_v2 = vadd.f32 %v1021_v0, %v6156_v58  ;;  %1338 = vmatpush.xpose.msra.mxu2 %v916_v59 }
 0x189   : > { %1361 = vmatpush.xpose.msra.mxu3 %v922_v62 }
 0x18a   : > { %2048 = vmatmul.f32.vlgmr.msra.gmra.mxu0 %v1022_v2 }
 0x18b   : > { %1250 = vmatmul.f32.gmra.mxu2 %v830_v3  ;;  %v1095_v4 = vpop.f32.mrf.mxu0 }
 0x18c   : > { %1273 = vmatmul.f32.gmra.mxu3 %v836_v1  ;;  %v1096_v5 = vadd.f32 %v1095_v4, %v6136_v43  ;;  %v1160_v2 = vpop.f32.mrf.mxu1 }
 0x18e   : > { %v959_v6 = vpop.f32.mrf.mxu2  ;;  %2069 = vmatpush.xpose.msra.mxu1 %v1096_v5  ;;  %v6233_v5 = vperm.slane %v6062_v7, 5 }
 0x18f   : > { %v1024_v9 = vpop.f32.mrf.mxu3  ;;  %v960_v63 = vadd.f32 %v959_v6, %v6188_v10 }
 0x190   : > { %v1025_v11 = vadd.f32 %v1024_v9, %v6156_v58 }
 0x192   : > { %2051 = vmatmul.f32.gmra.mxu0 %v1025_v11  ;;  %2070 = vmatpush.xpose.msra.mxu1 %v1093_v50 }
 0x193   : > { %1293 = vmatmul.f32.vlgmr.msrb.gmra.mxu2 %v839_v52  ;;  %v6175_v49 = vpop.f32.mrf.mxu0 }
 0x194   : > { %1316 = vmatmul.f32.vlgmr.msrb.gmra.mxu3 %v845_v12  ;;  %1383 = vmatpush.xpose.msrb.mxu2 %v931_v13  ;;  %v1155_v12 = vadd.f32 %v1154_v18, %v6233_v5  ;;  %v1152_v13 = vadd.f32 %v1151_v36, %v6233_v5 }
 0x195   : > { %1406 = vmatpush.xpose.msrb.mxu3 %v937_v14  ;;  %v6242_v14 = vpop.f32.mrf.mxu1 }
 0x196   : > { %v962_v17 = vpop.f32.mrf.mxu2 }
 0x197   : > { %v1027_v22 = vpop.f32.mrf.mxu3  ;;  %v963_v35 = vadd.f32 %v962_v17, %v6188_v10 }
 0x198   : > { %v1028_v51 = vadd.f32 %v1027_v22, %v6156_v58  ;;  %1384 = vmatpush.xpose.msrb.mxu2 %v928_v16 }
 0x199   : > { %1407 = vmatpush.xpose.msrb.mxu3 %v934_v20 }
 0x19a   : > { %2071 = vmatmul.f32.vlgmr.msra.gmra.mxu1 %v1028_v51 }
 0x19b   : > { %1296 = vmatmul.f32.gmra.mxu2 %v842_v21  ;;  %v6185_v25 = vpop.f32.mrf.mxu0 }
 0x19c   : > { %1319 = vmatmul.f32.gmra.mxu3 %v848_v23  ;;  %v1161_v23 = vadd.f32 %v1160_v2, %v6233_v5 }
 0x19d   : > { %v6247_v20 = vpop.f32.mrf.mxu1 }
 0x19e   : > { %v965_v61 = vpop.f32.mrf.mxu2 }
 0x19f   : > { %v1030_v26 = vpop.f32.mrf.mxu3  ;;  %v966_v8 = vadd.f32 %v965_v61, %v6188_v10  ;;  %v1158_v61 = vadd.f32 %v1157_v57, %v6233_v5 }
 0x1a0   : > { %v1031_v27 = vadd.f32 %v1030_v26, %v6156_v58 }
 0x1a2   : > { %2074 = vmatmul.f32.gmra.mxu1 %v1031_v27 }
 0x1a3   : > { %1339 = vmatmul.f32.vlgmr.msra.gmra.mxu2 %v851_v29  ;;  %v6197_v32 = vpop.f32.mrf.mxu0 }
 0x1a4   : > { %1362 = vmatmul.f32.vlgmr.msra.gmra.mxu3 %v857_v30  ;;  %1820 = vmatpush.msra.mxu2 %v960_v63 }
 0x1a5   : > { %1849 = vmatpush.msra.mxu3 %v966_v8  ;;  %v6254_v26 = vpop.f32.mrf.mxu1 }
 0x1a6   : > { %v968_v19 = vpop.f32.mrf.mxu2  ;;  %1821 = vmatpush.msra.mxu2 %v957_v33  ;;  %7939 = vst [vmem:[#allocation36_spill] sm:$0xff] %v6254_v26 }
 0x1a7   : > { %v6201_v15 = vpop.f32.mrf.mxu3  ;;  %1850 = vmatpush.msra.mxu3 %v963_v35  ;;  %v969_v28 = vadd.f32 %v968_v19, %v6188_v10 }
 0x1ab   : > { %1342 = vmatmul.f32.gmra.mxu2 %v854_v24  ;;  %v6207_v39 = vpop.f32.mrf.mxu0 }
 0x1ac   : > { %1365 = vmatmul.f32.gmra.mxu3 %v860_v37 }
 0x1ad   : > { %v6264_v8 = vpop.f32.mrf.mxu1 }
 0x1ae   : > { %v971_v31 = vpop.f32.mrf.mxu2 }
 0x1af   : > { %v6209_v41 = vpop.f32.mrf.mxu3  ;;  %v972_v47 = vadd.f32 %v971_v31, %v6188_v10 }
 0x1b3   : > { %1385 = vmatmul.f32.vlgmr.msrb.gmra.mxu2 %v863_v44  ;;  %v1110_v48 = vpop.f32.mrf.mxu0 }
 0x1b4   : > { %1408 = vmatmul.f32.vlgmr.msrb.gmra.mxu3 %v869_v42  ;;  %1878 = vmatpush.msrb.mxu2 %v972_v47  ;;  %v1111_v60 = vadd.f32 %v1110_v48, %v6136_v43 }
 0x1b5   : > { %v1175_v19 = vpop.f32.mrf.mxu1 }
 0x1b6   : > { %v974_v53 = vpop.f32.mrf.mxu2  ;;  %1879 = vmatpush.msrb.mxu2 %v969_v28  ;;  %v1176_v18 = vadd.f32 %v1175_v19, %v6233_v5 }
 0x1b7   : > { %v6217_v54 = vpop.f32.mrf.mxu3  ;;  %v975_v1 = vadd.f32 %v974_v53, %v6188_v10 }
 0x1b8   : > { %7937 = vst [vmem:[#allocation34_spill] sm:$0xff] %v6217_v54 }
 0x1bb   : > { %1388 = vmatmul.f32.gmra.mxu2 %v866_v55  ;;  %v1113_v40 = vpop.f32.mrf.mxu0 }
 0x1bc   : > { %1411 = vmatmul.f32.gmra.mxu3 %v872_v34  ;;  %v1114_v56 = vadd.f32 %v1113_v40, %v6136_v43 }
 0x1bd   : > { %v1178_v37 = vpop.f32.mrf.mxu1 }
 0x1be   : > { %v977_v59 = vpop.f32.mrf.mxu2  ;;  %2138 = vmatpush.xpose.msrb.mxu0 %v1114_v56  ;;  %v1179_v48 = vadd.f32 %v1178_v37, %v6233_v5 }
 0x1bf   : > { %v978_v62 = vadd.f32 %v977_v59, %v6188_v10  ;;  %v6226_v0 = vpop.f32.mrf.mxu3 }
 0x1c0   : > { %7938 = vst [vmem:[#allocation35_spill] sm:$0xff] %v6226_v0 }
 0x1c1   : > { %1907 = vmatpush.msrb.mxu3 %v978_v62 }
 0x1c2   : > { %2139 = vmatpush.xpose.msrb.mxu0 %v1111_v60 }
 0x1c3   : > { %1908 = vmatpush.msrb.mxu3 %v975_v1  ;;  %v1116_v38 = vpop.f32.mrf.mxu0 }
 0x1c4   : > { %v1117_v52 = vadd.f32 %v1116_v38, %v6136_v43 }
 0x1c5   : > { %v1181_v28 = vpop.f32.mrf.mxu1 }
 0x1c6   : > { %v6229_v45 = vpop.f32.mrf.mxu2  ;;  %2620 = vmatpush.msra.mxu0 %v1155_v12  ;;  %v1182_v1 = vadd.f32 %v1181_v28, %v6233_v5 }
 0x1c7   : > { %v1045_v46 = vpop.f32.mrf.mxu3 }
 0x1c8   : > { %v1046_v3 = vadd.f32 %v1045_v46, %v6156_v58  ;;  %2621 = vmatpush.msra.mxu0 %v1152_v13 }
 0x1ca   : > { %2140 = vmatmul.f32.vlgmr.msrb.gmra.mxu0 %v1046_v3 }
 0x1cb   : > { %v1119_v4 = vpop.f32.mrf.mxu0  ;;  %2736 = vmatpush.msrb.mxu0 %v1179_v48 }
 0x1cc   : > { %v1120_v6 = vadd.f32 %v1119_v4, %v6136_v43 }
 0x1cd   : > { %2737 = vmatpush.msrb.mxu0 %v1176_v18  ;;  %v1184_v60 = vpop.f32.mrf.mxu1 }
 0x1ce   : > { %v6236_v50 = vpop.f32.mrf.mxu2  ;;  %2161 = vmatpush.xpose.msrb.mxu1 %v1120_v6  ;;  %v1185_v38 = vadd.f32 %v1184_v60, %v6233_v5 }
 0x1cf   : > { %v1048_v9 = vpop.f32.mrf.mxu3 }
 0x1d0   : > { %v1049_v11 = vadd.f32 %v1048_v9, %v6156_v58 }
 0x1d2   : > { %2143 = vmatmul.f32.gmra.mxu0 %v1049_v11  ;;  %2162 = vmatpush.xpose.msrb.mxu1 %v1117_v52 }
 0x1d6   : > { %v6244_v7 = vpop.f32.mrf.mxu2  ;;  %2649 = vmatpush.msra.mxu1 %v1161_v23 }
 0x1d7   : > { %v1051_v16 = vpop.f32.mrf.mxu3 }
 0x1d8   : > { %v1052_v17 = vadd.f32 %v1051_v16, %v6156_v58  ;;  %2650 = vmatpush.msra.mxu1 %v1158_v61 }
 0x1da   : > { %2163 = vmatmul.f32.vlgmr.msrb.gmra.mxu1 %v1052_v17 }
 0x1db   : > { %2765 = vmatpush.msrb.mxu1 %v1185_v38 }
 0x1dd   : > { %2766 = vmatpush.msrb.mxu1 %v1182_v1 }
 0x1de   : > { %v6249_v21 = vpop.f32.mrf.mxu2 }
 0x1df   : > { %v1054_v22 = vpop.f32.mrf.mxu3 }
 0x1e0   : > { %v1055_v51 = vadd.f32 %v1054_v22, %v6156_v58 }
 0x1e2   : > { %2166 = vmatmul.f32.gmra.mxu1 %v1055_v51 }
 0x1e6   : > { %v6256_v27 = vpop.f32.mrf.mxu2 }
 0x1e7   : > { %v6258_v29 = vpop.f32.mrf.mxu3 }
 0x1e8   : > { %7940 = vst [vmem:[#allocation37_spill] sm:$0xff] %v6258_v29 }
 0x1ee   : > { %v6260_v30 = vpop.f32.mrf.mxu2 }
 0x1ef   : > { %v6262_v63 = vpop.f32.mrf.mxu3 }
 0x1f0   : > { %7941 = vst [vmem:[#allocation38_spill] sm:$0xff] %v6262_v63 }
 0x1f6   : > { %v6266_v33 = vpop.f32.mrf.mxu2 }
 0x1f7   : > { %v6268_v35 = vpop.f32.mrf.mxu3 }
 0x1f8   : > { %7942 = vst [vmem:[#allocation39_spill] sm:$0xff] %v6268_v35 }
 0x1fe   : > { %v6270_v24 = vpop.f32.mrf.mxu2 }
 0x1ff   : > { %v6272_v36 = vpop.f32.mrf.mxu3 }
 0x200   : > { %7943 = vst [vmem:[#allocation40_spill] sm:$0xff] %v6272_v36 }
 0x206   : > { %v1248_v31 = vpop.f32.mrf.mxu2 }
 0x207   : > { %v1271_v44 = vpop.f32.mrf.mxu3  ;;  %v1416_v42 = vsel %vm1415_vm0, %v1248_v31, -inf }
 0x208   : > { %v1422_v47 = vsel %vm1415_vm0, %v1271_v44, -inf  ;;  %1417 = vmax.xlane.f32.xlu0 %v1416_v42 }
 0x209   : > { %1423 = vmax.xlane.f32.xlu1 %v1422_v47 }
 0x20e   : > { %v1251_v53 = vpop.f32.mrf.mxu2 }
 0x20f   : > { %v1274_v55 = vpop.f32.mrf.mxu3  ;;  %v1419_v34 = vsel %vm1415_vm0, %v1251_v53, -inf }
 0x210   : > { %v1425_v40 = vsel %vm1415_vm0, %v1274_v55, -inf  ;;  %1420 = vmax.xlane.f32.xlu0 %v1419_v34 }
 0x211   : > { %1426 = vmax.xlane.f32.xlu2 %v1425_v40 }
 0x216   : > { %v6280_v56 = vpop.f32.mrf.mxu2 }
 0x217   : > { %v6282_v57 = vpop.f32.mrf.mxu3  ;;  %v1428_v59 = vsel %vm1415_vm0, %v6280_v56, -inf }
 0x218   : > { %v1434_v62 = vsel %vm1415_vm0, %v6282_v57, -inf  ;;  %1429 = vmax.xlane.f32.xlu1 %v1428_v59 }
 0x219   : > { %1435 = vmax.xlane.f32.xlu0 %v1434_v62 }
 0x21e   : > { %v6290_v46 = vpop.f32.mrf.mxu2 }
 0x21f   : > { %v6292_v2 = vpop.f32.mrf.mxu3  ;;  %v1431_v3 = vsel %vm1415_vm0, %v6290_v46, -inf }
 0x220   : > { %1432 = vmax.xlane.f32.xlu2 %v1431_v3  ;;  %v1437_v52 = vsel %vm1415_vm0, %v6292_v2, -inf }
 0x226   : > { %v6296_v4 = vpop.f32.mrf.mxu2 }
 0x227   : > { %v6298_v6 = vpop.f32.mrf.mxu3  ;;  %v1440_v9 = vsel %vm1415_vm0, %v6296_v4, -inf }
 0x228   : > { %1438 = vmax.xlane.f32.xlu2 %v1437_v52  ;;  %1441 = vmax.xlane.f32.xlu1 %v1440_v9  ;;  %v1446_v12 = vsel %vm1415_vm0, %v6298_v6, -inf }
 0x22e   : > { %v6304_v11 = vpop.f32.mrf.mxu2 }
 0x22f   : > { %v1443_v13 = vsel %vm1415_vm0, %v6304_v11, -inf  ;;  %v6310_v16 = vpop.f32.mrf.mxu3 }
 0x230   : > { %1447 = vmax.xlane.f32.xlu1 %v1446_v12  ;;  %1444 = vmax.xlane.f32.xlu0 %v1443_v13  ;;  %v1449_v22 = vsel %vm1415_vm0, %v6310_v16, -inf }
 0x236   : > { %v6312_v17 = vpop.f32.mrf.mxu2 }
 0x237   : > { %v1452_v51 = vsel %vm1415_vm0, %v6312_v17, -inf  ;;  %v6318_v23 = vpop.f32.mrf.mxu3 }
 0x238   : > { %1450 = vmax.xlane.f32.xlu1 %v1449_v22  ;;  %1453 = vmax.xlane.f32.xlu2 %v1452_v51  ;;  %v1458_v19 = vsel %vm1415_vm0, %v6318_v23, -inf }
 0x23e   : > { %v6320_v61 = vpop.f32.mrf.mxu2 }
 0x23f   : > { %v1455_v37 = vsel %vm1415_vm0, %v6320_v61, -inf  ;;  %v6326_v42 = vpop.f32.mrf.mxu3 }
 0x240   : > { %1459 = vmax.xlane.f32.xlu1 %v1458_v19  ;;  %1456 = vmax.xlane.f32.xlu2 %v1455_v37  ;;  %v1461_v47 = vsel %vm1415_vm0, %v6326_v42, -inf }
 0x248   : > { %1462 = vmax.xlane.f32.xlu1 %v1461_v47 }
 0x27b   : > { %v1418_v18 = vpop.xlane.xlu0 %1417 }
 0x27c   : > { %v1424_v48 = vpop.xlane.xlu1 %1423  ;;  %v1464_v28 = vsub.f32 %v1248_v31, %v1418_v18 }
 0x27d   : > { %v1466_v34 = vsub.f32 %v1271_v44, %v1424_v48 }
 0x27e   : > { %v1480_v40 = vmul.f32 1.442695, %v1464_v28  ;;  %v6348_v28 = vpop.f32.mrf.mxu0 }
 0x27f   : > { %v1484_v59 = vmul.f32 1.442695, %v1466_v34 }
 0x280   : > { %4999 = vpow2.f32 %v1480_v40 }
 0x281   : > { %5001 = vpow2.f32 %v1484_v59 }
 0x283   : > { %v1421_v60 = vpop.xlane.xlu0 %1420 }
 0x284   : > { %v1427_v62 = vpop.xlane.xlu2 %1426  ;;  %v1465_v1 = vsub.f32 %v1251_v53, %v1421_v60 }
 0x285   : > { %v1467_v38 = vsub.f32 %v1274_v55, %v1427_v62 }
 0x286   : > { %v6330_v3 = vpop.eup %4999  ;;  %v1482_v52 = vmul.f32 1.442695, %v1465_v1  ;;  %v6359_v1 = vpop.f32.mrf.mxu1 }
 0x287   : > { %v6332_v9 = vpop.eup %5001  ;;  %v1486_v12 = vmul.f32 1.442695, %v1467_v38  ;;  %v1512_v13 = vsel %vm1415_vm0, %v6330_v3, 0.0  ;;  %7944 = vst [vmem:[#allocation41_spill] sm:$0xff] %v6359_v1 }
 0x288   : > { %5003 = vpow2.f32 %v1482_v52  ;;  %1513 = vadd.xlane.f32.xlu0 %v1512_v13  ;;  %v1518_v31 = vsel %vm1415_vm0, %v6332_v9, 0.0  ;;  %v6363_v13 = vpop.f32.mrf.mxu0 }
 0x289   : > { %5005 = vpow2.f32 %v1486_v12  ;;  %1519 = vadd.xlane.f32.xlu2 %v1518_v31 }
 0x28b   : > { %v1430_v44 = vpop.xlane.xlu1 %1429 }
 0x28c   : > { %v1436_v22 = vpop.xlane.xlu0 %1435  ;;  %v1468_v53 = vsub.f32 %v6280_v56, %v1430_v44 }
 0x28d   : > { %v1470_v55 = vsub.f32 %v6282_v57, %v1436_v22 }
 0x28e   : > { %v6340_v51 = vpop.eup %5003  ;;  %v1488_v19 = vmul.f32 1.442695, %v1468_v53 }
 0x28f   : > { %v6342_v37 = vpop.eup %5005  ;;  %v1492_v47 = vmul.f32 1.442695, %v1470_v55  ;;  %v1515_v18 = vsel %vm1415_vm0, %v6340_v51, 0.0 }
 0x290   : > { %5007 = vpow2.f32 %v1488_v19  ;;  %1516 = vadd.xlane.f32.xlu0 %v1515_v18  ;;  %v1521_v48 = vsel %vm1415_vm0, %v6342_v37, 0.0  ;;  %v6371_v18 = vpop.f32.mrf.mxu1 }
 0x291   : > { %5009 = vpow2.f32 %v1492_v47  ;;  %1522 = vadd.xlane.f32.xlu2 %v1521_v48  ;;  %7945 = vst [vmem:[#allocation42_spill] sm:$0xff] %v6371_v18 }
 0x293   : > { %v1433_v56 = vpop.xlane.xlu2 %1432 }
 0x294   : > { %v1469_v57 = vsub.f32 %v6290_v46, %v1433_v56 }
 0x296   : > { %v6351_v34 = vpop.eup %5007  ;;  %v1490_v40 = vmul.f32 1.442695, %v1469_v57 }
 0x297   : > { %v6353_v59 = vpop.eup %5009  ;;  %v1524_v60 = vsel %vm1415_vm0, %v6351_v34, 0.0 }
 0x298   : > { %5011 = vpow2.f32 %v1490_v40  ;;  %v1530_v62 = vsel %vm1415_vm0, %v6353_v59, 0.0  ;;  %1525 = vadd.xlane.f32.xlu0 %v1524_v60  ;;  %v6377_v40 = vpop.f32.mrf.mxu0 }
 0x299   : > { %1531 = vadd.xlane.f32.xlu1 %v1530_v62 }
 0x29b   : > { %v1439_v38 = vpop.xlane.xlu2 %1438  ;;  %v1442_v52 = vpop.xlane.xlu1 %1441 }
 0x29c   : > { %v1471_v46 = vsub.f32 %v6292_v2, %v1439_v38  ;;  %v1472_v12 = vsub.f32 %v6296_v4, %v1442_v52 }
 0x29e   : > { %v6365_v31 = vpop.eup %5011  ;;  %v1494_v44 = vmul.f32 1.442695, %v1471_v46  ;;  %v1496_v22 = vmul.f32 1.442695, %v1472_v12 }
 0x29f   : > { %v1527_v53 = vsel %vm1415_vm0, %v6365_v31, 0.0 }
 0x2a0   : > { %5013 = vpow2.f32 %v1494_v44  ;;  %1528 = vadd.xlane.f32.xlu0 %v1527_v53  ;;  %v6389_v53 = vpop.f32.mrf.mxu1 }
 0x2a1   : > { %5015 = vpow2.f32 %v1496_v22  ;;  %7946 = vst [vmem:[#allocation43_spill] sm:$0xff] %v6389_v53 }
 0x2a3   : > { %v1448_v55 = vpop.xlane.xlu1 %1447  ;;  %v1445_v19 = vpop.xlane.xlu0 %1444 }
 0x2a4   : > { %v1474_v47 = vsub.f32 %v6298_v6, %v1448_v55  ;;  %v1473_v2 = vsub.f32 %v6304_v11, %v1445_v19 }
 0x2a6   : > { %v6373_v4 = vpop.eup %5013  ;;  %v1500_v48 = vmul.f32 1.442695, %v1474_v47  ;;  %v1498_v56 = vmul.f32 1.442695, %v1473_v2  ;;  %v6395_v47 = vpop.f32.mrf.mxu0 }
 0x2a7   : > { %v6375_v57 = vpop.eup %5015  ;;  %v1533_v60 = vsel %vm1415_vm0, %v6373_v4, 0.0 }
 0x2a8   : > { %5017 = vpow2.f32 %v1500_v48  ;;  %1534 = vadd.xlane.f32.xlu0 %v1533_v60  ;;  %v1536_v6 = vsel %vm1415_vm0, %v6375_v57, 0.0 }
 0x2a9   : > { %5019 = vpow2.f32 %v1498_v56  ;;  %1537 = vadd.xlane.f32.xlu2 %v1536_v6 }
 0x2ab   : > { %v1451_v11 = vpop.xlane.xlu1 %1450  ;;  %v1454_v62 = vpop.xlane.xlu2 %1453 }
 0x2ac   : > { %v1475_v38 = vsub.f32 %v6310_v16, %v1451_v11  ;;  %v1476_v52 = vsub.f32 %v6312_v17, %v1454_v62 }
 0x2ae   : > { %v6385_v46 = vpop.eup %5017  ;;  %v1502_v12 = vmul.f32 1.442695, %v1475_v38  ;;  %v1504_v44 = vmul.f32 1.442695, %v1476_v52  ;;  %v6407_v52 = vpop.f32.mrf.mxu1 }
 0x2af   : > { %v6387_v22 = vpop.eup %5019  ;;  %v1542_v55 = vsel %vm1415_vm0, %v6385_v46, 0.0  ;;  %7947 = vst [vmem:[#allocation44_spill] sm:$0xff] %v6407_v52 }
 0x2b0   : > { %5021 = vpow2.f32 %v1502_v12  ;;  %v1539_v19 = vsel %vm1415_vm0, %v6387_v22, 0.0 }
 0x2b1   : > { %5023 = vpow2.f32 %v1504_v44  ;;  %1540 = vadd.xlane.f32.xlu1 %v1539_v19  ;;  %1543 = vadd.xlane.f32.xlu2 %v1542_v55 }
 0x2b3   : > { %v1460_v16 = vpop.xlane.xlu1 %1459  ;;  %v1457_v17 = vpop.xlane.xlu2 %1456 }
 0x2b4   : > { %v1478_v2 = vsub.f32 %v6318_v23, %v1460_v16  ;;  %v1477_v48 = vsub.f32 %v6320_v61, %v1457_v17  ;;  %v6409_v23 = vpop.f32.mrf.mxu0 }
 0x2b5   : > { %7948 = vst [vmem:[#allocation45_spill] sm:$0xff] %v6409_v23 }
 0x2b6   : > { %v6399_v56 = vpop.eup %5021  ;;  %v1508_v60 = vmul.f32 1.442695, %v1478_v2  ;;  %v1506_v6 = vmul.f32 1.442695, %v1477_v48  ;;  %v6420_v2 = vpop.f32.mrf.mxu1 }
 0x2b7   : > { %v6401_v11 = vpop.eup %5023  ;;  %v1545_v62 = vsel %vm1415_vm0, %v6399_v56, 0.0  ;;  %7949 = vst [vmem:[#allocation46_spill] sm:$0xff] %v6420_v2 }
 0x2b8   : > { %5025 = vpow2.f32 %v1508_v60  ;;  %v1548_v38 = vsel %vm1415_vm0, %v6401_v11, 0.0 }
 0x2b9   : > { %5027 = vpow2.f32 %v1506_v6  ;;  %1546 = vadd.xlane.f32.xlu1 %v1545_v62  ;;  %1549 = vadd.xlane.f32.xlu0 %v1548_v38  ;;  %v2216_v62 = vsel %vm1415_vm0, %v6409_v23, -inf }
 0x2bb   : > { %v1463_v61 = vpop.xlane.xlu1 %1462 }
 0x2bc   : > { %v1479_v12 = vsub.f32 %v6326_v42, %v1463_v61  ;;  %v6422_v48 = vpop.f32.mrf.mxu0  ;;  %v2222_v61 = vsel %vm1415_vm0, %v6420_v2, -inf }
 0x2bd   : > { %7950 = vst [vmem:[#allocation47_spill] sm:$0xff] %v6422_v48  ;;  %v2219_v6 = vsel %vm1415_vm0, %v6422_v48, -inf }
 0x2be   : > { %v6412_v44 = vpop.eup %5025  ;;  %v1510_v55 = vmul.f32 1.442695, %v1479_v12  ;;  %v6432_v38 = vpop.f32.mrf.mxu1 }
 0x2bf   : > { %v6414_v19 = vpop.eup %5027  ;;  %v1554_v16 = vsel %vm1415_vm0, %v6412_v44, 0.0  ;;  %7951 = vst [vmem:[#allocation48_spill] sm:$0xff] %v6432_v38  ;;  %v2225_v12 = vsel %vm1415_vm0, %v6432_v38, -inf }
 0x2c0   : > { %5029 = vpow2.f32 %v1510_v55  ;;  %v1551_v17 = vsel %vm1415_vm0, %v6414_v19, 0.0 }
 0x2c1   : > { %1555 = vadd.xlane.f32.xlu0 %v1554_v16  ;;  %1552 = vadd.xlane.f32.xlu2 %v1551_v17 }
 0x2c6   : > { %v6424_v60 = vpop.eup %5029 }
 0x2c7   : > { %v1557_v42 = vsel %vm1415_vm0, %v6424_v60, 0.0 }
 0x2c8   : > { %1558 = vadd.xlane.f32.xlu1 %v1557_v42 }
 0x2c9   : > { %2220 = vmax.xlane.f32.xlu0 %v2219_v6  ;;  %2217 = vmax.xlane.f32.xlu2 %v2216_v62 }
 0x2d0   : > { %2223 = vmax.xlane.f32.xlu1 %v2222_v61 }
 0x2d1   : > { %2226 = vmax.xlane.f32.xlu2 %v2225_v12 }
 0x2fb   : > { %v1514_v55 = vpop.xlane.xlu0 %1513 }
 0x2fc   : > { %5031 = vrcp.f32 %v1514_v55  ;;  %v1520_v16 = vpop.xlane.xlu2 %1519  ;;  %v1571_v61 = vand.u32 2147483648, %v1514_v55  ;;  %v1569_v36 = vand.u32 2147483647, %v1514_v55  ;;  %vm1565_vm3 = vweird.f32 %v1514_v55 }
 0x2fd   : > { %5033 = vrcp.f32 %v1520_v16  ;;  %v1599_v53 = vand.u32 2147483648, %v1520_v16  ;;  %v1597_v52 = vand.u32 2147483647, %v1520_v16  ;;  %vm1593_vm5 = vweird.f32 %v1520_v16 }
 0x2fe   : > { %v1572_v0 = vor.u32 1.1754944e-38, %v1571_v61  ;;  %vm1570_vm6 = vcmp.eq.f32.partialorder %v1569_v36, 8.507059e+37  ;;  %v990_v36 = vadd.f32 %v6249_v21, %v6188_v10 }
 0x2ff   : > { %v1600_v26 = vor.u32 1.1754944e-38, %v1599_v53  ;;  %vm1598_vm8 = vcmp.eq.f32.partialorder %v1597_v52, 8.507059e+37 }
 0x302   : > { %v5032_v17 = vpop.eup %5031 }
 0x303   : > { %v5034_v42 = vpop.eup %5033  ;;  %v1561_v48 = vmul.f32 %v5032_v17, %v1514_v55  ;;  %v6438_v23 = vpop.xlane.xlu0 %1516  ;;  %vm1566_vm1 = vweird.f32 %v5032_v17 }
 0x304   : > { %v1589_v6 = vmul.f32 %v5034_v42, %v1520_v16  ;;  %5035 = vrcp.f32 %v6438_v23  ;;  %v6441_v62 = vpop.xlane.xlu2 %1522  ;;  %vm1594_vm2 = vweird.f32 %v5034_v42  ;;  %vm1567_vm4 = vmor %vm1565_vm3, %vm1566_vm1  ;;  %v1585_v52 = vand.u32 2147483648, %v6438_v23 }
 0x305   : > { %v1562_v2 = vsub.f32 1.0, %v1561_v48  ;;  %5037 = vrcp.f32 %v6441_v62  ;;  %vm1595_vm7 = vmor %vm1593_vm5, %vm1594_vm2  ;;  %vm1579_vm10 = vweird.f32 %v6438_v23  ;;  %vm1607_vm13 = vweird.f32 %v6441_v62 }
 0x306   : > { %v1590_v38 = vsub.f32 1.0, %v1589_v6 }
 0x307   : > { %v1563_v12 = vmul.f32 %v5032_v17, %v1562_v2 }
 0x308   : > { %v1591_v35 = vmul.f32 %v5034_v42, %v1590_v38 }
 0x309   : > { %v1564_v63 = vadd.f32 %v5032_v17, %v1563_v12 }
 0x30a   : > { %v5036_v1 = vpop.eup %5035  ;;  %v1592_v29 = vadd.f32 %v5034_v42, %v1591_v35 }
 0x30b   : > { %v5038_v18 = vpop.eup %5037  ;;  %v1568_v48 = vsel %vm1567_vm4, %v5032_v17, %v1564_v63  ;;  %v1575_v2 = vmul.f32 %v5036_v1, %v6438_v23  ;;  %v6445_v6 = vpop.xlane.xlu0 %1525  ;;  %v984_v63 = vadd.f32 %v6236_v50, %v6188_v10  ;;  %vm1580_vm9 = vweird.f32 %v5036_v1 }
 0x30c   : > { %v1573_v54 = vsel %vm1570_vm6, %v1572_v0, %v1568_v48  ;;  %v1596_v38 = vsel %vm1595_vm7, %v5034_v42, %v1592_v29  ;;  %v1603_v12 = vmul.f32 %v5038_v18, %v6441_v62  ;;  %v6448_v55 = vpop.xlane.xlu1 %1531  ;;  %v987_v50 = vadd.f32 %v6244_v7, %v6188_v10  ;;  %vm6469_vm12 = vmor %vm1579_vm10, %vm1580_vm9 }
 0x30d   : > { %v1784_v61 = vmul.f32 %v6330_v3, %v1573_v54  ;;  %v1601_v35 = vsel %vm1598_vm8, %v1600_v26, %v1596_v38  ;;  %v1576_v16 = vsub.f32 1.0, %v1575_v2  ;;  %5039 = vrcp.f32 %v6448_v55 }
 0x30e   : > { %v1786_v0 = vmul.f32 %v6332_v9, %v1601_v35  ;;  %v1604_v29 = vsub.f32 1.0, %v1603_v12  ;;  %5041 = vrcp.f32 %v6445_v6  ;;  %v981_v54 = vadd.f32 %v6229_v45, %v6188_v10 }
 0x30f   : > { %v1577_v53 = vmul.f32 %v5036_v1, %v1576_v16  ;;  %4772 = vmatmul.msk.f32.vlgmr.msra.gmra.mxu2 %vm1415_vm0, %v1784_v61  ;;  %v1583_v26 = vand.u32 2147483647, %v6438_v23  ;;  %vm1608_vm11 = vweird.f32 %v5038_v18  ;;  %v1613_v9 = vand.u32 2147483648, %v6441_v62 }
 0x310   : > { %v1605_v21 = vmul.f32 %v5038_v18, %v1604_v29  ;;  %4774 = vmatmul.msk.f32.vlgmr.msra.gmra.mxu3 %vm1415_vm0, %v1786_v0  ;;  %1936 = vmatpush.msra.mxu2 %v984_v63  ;;  %v1611_v7 = vand.u32 2147483647, %v6441_v62  ;;  %v1586_v48 = vor.u32 1.1754944e-38, %v1585_v52  ;;  %vm1609_vm15 = vmor %vm1607_vm13, %vm1608_vm11  ;;  %v1653_v0 = vand.u32 2147483647, %v6448_v55 }
 0x311   : > { %v1578_v3 = vadd.f32 %v5036_v1, %v1577_v53  ;;  %1965 = vmatpush.msra.mxu3 %v990_v36  ;;  %vm1584_vm14 = vcmp.eq.f32.partialorder %v1583_v26, 8.507059e+37  ;;  %v1614_v61 = vor.u32 1.1754944e-38, %v1613_v9  ;;  %vm1649_vm3 = vweird.f32 %v6448_v55 }
 0x312   : > { %v1606_v45 = vadd.f32 %v5038_v18, %v1605_v21  ;;  %1937 = vmatpush.msra.mxu2 %v981_v54  ;;  %vm1612_vm1 = vcmp.eq.f32.partialorder %v1611_v7, 8.507059e+37  ;;  %vm1621_vm6 = vweird.f32 %v6445_v6  ;;  %vm1654_vm7 = vcmp.eq.f32.partialorder %v1653_v0, 8.507059e+37 }
 0x313   : > { %v5040_v42 = vpop.eup %5039  ;;  %1966 = vmatpush.msra.mxu3 %v987_v50  ;;  %v6475_v2 = vpop.xlane.xlu0 %1528  ;;  %v1582_v23 = vsel %vm6469_vm12, %v5036_v1, %v1578_v3  ;;  %v1655_v1 = vand.u32 2147483648, %v6448_v55  ;;  %v993_v0 = vadd.f32 %v6256_v27, %v6188_v10 }
 0x314   : > { %v1645_v38 = vmul.f32 %v5040_v42, %v6448_v55  ;;  %5043 = vrcp.f32 %v6475_v2  ;;  %v5042_v12 = vpop.eup %5041  ;;  %v1587_v35 = vsel %vm1584_vm14, %v1586_v48, %v1582_v23  ;;  %v1610_v16 = vsel %vm1609_vm15, %v5038_v18, %v1606_v45 }
 0x315   : > { %v1617_v62 = vmul.f32 %v5042_v12, %v6445_v6  ;;  %v1785_v36 = vmul.f32 %v6340_v51, %v1587_v35  ;;  %v1615_v29 = vsel %vm1612_vm1, %v1614_v61, %v1610_v16  ;;  %vm1650_vm2 = vweird.f32 %v5040_v42 }
 0x316   : > { %v1646_v63 = vsub.f32 1.0, %v1645_v38  ;;  %v1787_v54 = vmul.f32 %v6342_v37, %v1615_v29  ;;  %v1627_v18 = vand.u32 2147483648, %v6445_v6  ;;  %vm1622_vm4 = vweird.f32 %v5042_v12  ;;  %vm1651_vm5 = vmor %vm1649_vm3, %vm1650_vm2 }
 0x317   : > { %v1618_v52 = vsub.f32 1.0, %v1617_v62  ;;  %4773 = vmatmul.msk.f32.gmra.mxu2 %vm1415_vm0, %v1785_v36  ;;  %v1625_v51 = vand.u32 2147483647, %v6445_v6  ;;  %v1656_v3 = vor.u32 1.1754944e-38, %v1655_v1  ;;  %vm1623_vm8 = vmor %vm1621_vm6, %vm1622_vm4  ;;  %v996_v62 = vadd.f32 %v6260_v30, %v6188_v10 }
 0x318   : > { %v1647_v53 = vmul.f32 %v5040_v42, %v1646_v63  ;;  %4775 = vmatmul.msk.f32.gmra.mxu3 %vm1415_vm0, %v1787_v54  ;;  %v1628_v48 = vor.u32 1.1754944e-38, %v1627_v18  ;;  %v1639_v63 = vand.u32 2147483647, %v6475_v2  ;;  %v1002_v36 = vadd.f32 %v6270_v24, %v6188_v10 }
 0x319   : > { %v1619_v21 = vmul.f32 %v5042_v12, %v1618_v52  ;;  %vm1626_vm9 = vcmp.eq.f32.partialorder %v1625_v51, 8.507059e+37  ;;  %vm1635_vm11 = vweird.f32 %v6475_v2  ;;  %v999_v30 = vadd.f32 %v6266_v33, %v6188_v10 }
 0x31a   : > { %v5044_v50 = vpop.eup %5043  ;;  %v1648_v26 = vadd.f32 %v5040_v42, %v1647_v53  ;;  %vm1640_vm13 = vcmp.eq.f32.partialorder %v1639_v63, 8.507059e+37 }
 0x31b   : > { %v1631_v9 = vmul.f32 %v5044_v50, %v6475_v2  ;;  %v6493_v17 = vpop.xlane.xlu0 %1534  ;;  %v1620_v55 = vadd.f32 %v5042_v12, %v1619_v21  ;;  %vm1636_vm10 = vweird.f32 %v5044_v50 }
 0x31c   : > { %v1652_v37 = vsel %vm1651_vm5, %v5040_v42, %v1648_v26  ;;  %5045 = vrcp.f32 %v6493_v17  ;;  %v6496_v45 = vpop.xlane.xlu2 %1537  ;;  %v1641_v42 = vand.u32 2147483648, %v6475_v2  ;;  %vm6510_vm12 = vmor %vm1635_vm11, %vm1636_vm10  ;;  %vm1663_vm14 = vweird.f32 %v6493_v17 }
 0x31d   : > { %v1657_v7 = vsel %vm1654_vm7, %v1656_v3, %v1652_v37  ;;  %v1632_v23 = vsub.f32 1.0, %v1631_v9  ;;  %v1624_v61 = vsel %vm1623_vm8, %v5042_v12, %v1620_v55  ;;  %5047 = vrcp.f32 %v6496_v45 }
 0x31e   : > { %v1790_v38 = vmul.f32 %v6353_v59, %v1657_v7  ;;  %v1629_v6 = vsel %vm1626_vm9, %v1628_v48, %v1624_v61  ;;  %v1669_v26 = vand.u32 2147483648, %v6493_v17  ;;  %v1683_v21 = vand.u32 2147483648, %v6496_v45 }
 0x31f   : > { %v1633_v35 = vmul.f32 %v5044_v50, %v1632_v23  ;;  %v1788_v16 = vmul.f32 %v6351_v34, %v1629_v6  ;;  %v1642_v34 = vor.u32 1.1754944e-38, %v1641_v42  ;;  %v1681_v37 = vand.u32 2147483647, %v6496_v45 }
 0x320   : > { %4778 = vmatmul.msk.f32.vlgmr.msrb.gmra.mxu3 %vm1415_vm0, %v1790_v38  ;;  %vm1677_vm3 = vweird.f32 %v6496_v45  ;;  %v1670_v23 = vor.u32 1.1754944e-38, %v1669_v26  ;;  %v1684_v38 = vor.u32 1.1754944e-38, %v1683_v21 }
 0x321   : > { %v1634_v59 = vadd.f32 %v5044_v50, %v1633_v35  ;;  %4776 = vmatmul.msk.f32.vlgmr.msrb.gmra.mxu2 %vm1415_vm0, %v1788_v16  ;;  %2023 = vmatpush.msrb.mxu3 %v1002_v36  ;;  %vm1682_vm6 = vcmp.eq.f32.partialorder %v1681_v37, 8.507059e+37  ;;  %v1102_v36 = vadd.f32 %v6185_v25, %v6136_v43  ;;  %v1108_v37 = vadd.f32 %v6207_v39, %v6136_v43 }
 0x322   : > { %v5046_v12 = vpop.eup %5045  ;;  %1994 = vmatpush.msrb.mxu2 %v996_v62  ;;  %v1126_v39 = vadd.f32 %v6363_v13, %v6136_v43 }
 0x323   : > { %v1659_v24 = vmul.f32 %v5046_v12, %v6493_v17  ;;  %v1638_v2 = vsel %vm6510_vm12, %v5044_v50, %v1634_v59  ;;  %v5048_v27 = vpop.eup %5047  ;;  %2024 = vmatpush.msrb.mxu3 %v999_v30  ;;  %vm1664_vm15 = vweird.f32 %v5046_v12  ;;  %v1667_v50 = vand.u32 2147483647, %v6493_v17 }
 0x324   : > { %v6521_v29 = vpop.xlane.xlu1 %1540  ;;  %v6523_v53 = vpop.xlane.xlu2 %1543  ;;  %v1673_v54 = vmul.f32 %v5048_v27, %v6496_v45  ;;  %1995 = vmatpush.msrb.mxu2 %v993_v0  ;;  %v1643_v10 = vsel %vm1640_vm13, %v1642_v34, %v1638_v2  ;;  %vm1678_vm1 = vweird.f32 %v5048_v27  ;;  %vm6534_vm2 = vmor %vm1663_vm14, %vm1664_vm15 }
 0x325   : > { %v1660_v52 = vsub.f32 1.0, %v1659_v24  ;;  %5049 = vrcp.f32 %v6521_v29  ;;  %v1789_v51 = vmul.f32 %v6365_v31, %v1643_v10  ;;  %vm1668_vm4 = vcmp.eq.f32.partialorder %v1667_v50, 8.507059e+37  ;;  %vm1679_vm5 = vmor %vm1677_vm3, %vm1678_vm1 }
 0x326   : > { %5051 = vrcp.f32 %v6523_v53  ;;  %v1674_v18 = vsub.f32 1.0, %v1673_v54  ;;  %v1711_v1 = vand.u32 2147483648, %v6523_v53  ;;  %v1709_v34 = vand.u32 2147483647, %v6523_v53 }
 0x327   : > { %v1661_v33 = vmul.f32 %v5046_v12, %v1660_v52  ;;  %vm1705_vm9 = vweird.f32 %v6523_v53  ;;  %vm1691_vm10 = vweird.f32 %v6521_v29 }
 0x328   : > { %v1675_v9 = vmul.f32 %v5048_v27, %v1674_v18  ;;  %v1712_v54 = vor.u32 1.1754944e-38, %v1711_v1  ;;  %vm1710_vm13 = vcmp.eq.f32.partialorder %v1709_v34, 8.507059e+37 }
 0x329   : > { %v1662_v3 = vadd.f32 %v5046_v12, %v1661_v33  ;;  %4777 = vmatmul.msk.f32.gmra.mxu2 %vm1415_vm0, %v1789_v51 }
 0x32a   : > { %v1676_v48 = vadd.f32 %v5048_v27, %v1675_v9 }
 0x32b   : > { %v6539_v7 = vpop.eup %5049  ;;  %v1666_v17 = vsel %vm6534_vm2, %v5046_v12, %v1662_v3 }
 0x32c   : > { %v5052_v31 = vpop.eup %5051  ;;  %v1687_v61 = vmul.f32 %v6539_v7, %v6521_v29  ;;  %v6546_v6 = vpop.xlane.xlu1 %1546  ;;  %v1680_v42 = vsel %vm1679_vm5, %v5048_v27, %v1676_v48  ;;  %v1671_v62 = vsel %vm1668_vm4, %v1670_v23, %v1666_v17  ;;  %vm1692_vm8 = vweird.f32 %v6539_v7 }
 0x32d   : > { %v6548_v35 = vpop.xlane.xlu0 %1549  ;;  %v1701_v16 = vmul.f32 %v5052_v31, %v6523_v53  ;;  %5053 = vrcp.f32 %v6546_v6  ;;  %v1685_v45 = vsel %vm1682_vm6, %v1684_v38, %v1680_v42  ;;  %vm1706_vm7 = vweird.f32 %v5052_v31  ;;  %vm6581_vm12 = vmor %vm1691_vm10, %vm1692_vm8 }
 0x32e   : > { %v1688_v63 = vsub.f32 1.0, %v1687_v61  ;;  %v1792_v59 = vmul.f32 %v6375_v57, %v1685_v45  ;;  %5055 = vrcp.f32 %v6548_v35  ;;  %v1791_v24 = vmul.f32 %v6373_v4, %v1671_v62  ;;  %vm1707_vm11 = vmor %vm1705_vm9, %vm1706_vm7  ;;  %v7971_v62 = vld [vmem:[#allocation44_spill] sm:$0xff] }
 0x32f   : > { %v1702_v12 = vsub.f32 1.0, %v1701_v16  ;;  %v1099_v57 = vadd.f32 %v6175_v49, %v6136_v43  ;;  %v1697_v27 = vand.u32 2147483648, %v6521_v29  ;;  %v1695_v4 = vand.u32 2147483647, %v6521_v29 }
 0x330   : > { %v1689_v0 = vmul.f32 %v6539_v7, %v1688_v63  ;;  %4779 = vmatmul.msk.f32.gmra.mxu3 %vm1415_vm0, %v1791_v24  ;;  %v1723_v17 = vand.u32 2147483647, %v6546_v6  ;;  %v1105_v42 = vadd.f32 %v6197_v32, %v6136_v43  ;;  %vm1719_vm1 = vweird.f32 %v6546_v6 }
 0x331   : > { %v1703_v30 = vmul.f32 %v5052_v31, %v1702_v12  ;;  %4780 = vmatmul.msk.f32.vlgmr.msra.gmra.mxu2 %vm1415_vm0, %v1792_v59  ;;  %v1698_v3 = vor.u32 1.1754944e-38, %v1697_v27  ;;  %vm1696_vm14 = vcmp.eq.f32.partialorder %v1695_v4, 8.507059e+37  ;;  %v1725_v16 = vand.u32 2147483648, %v6546_v6 }
 0x332   : > { %v1690_v2 = vadd.f32 %v6539_v7, %v1689_v0  ;;  %2092 = vmatpush.xpose.msra.mxu2 %v1102_v36  ;;  %vm1733_vm2 = vweird.f32 %v6548_v35  ;;  %vm6614_vm4 = vcmp.eq.f32.partialorder %v1723_v17, 8.507059e+37 }
 0x333   : > { %v6563_v25 = vpop.eup %5053  ;;  %v1704_v52 = vadd.f32 %v5052_v31, %v1703_v30  ;;  %v1726_v0 = vor.u32 1.1754944e-38, %v1725_v16  ;;  %v7967_v16 = vld [vmem:[#allocation37_spill] sm:$0xff] }
 0x334   : > { %v1715_v10 = vmul.f32 %v6563_v25, %v6546_v6  ;;  %v6577_v49 = vpop.xlane.xlu2 %1552  ;;  %v5056_v18 = vpop.eup %5055  ;;  %v1694_v51 = vsel %vm6581_vm12, %v6539_v7, %v1690_v2  ;;  %v1737_v7 = vand.u32 2147483647, %v6548_v35  ;;  %vm1720_vm3 = vweird.f32 %v6563_v25 }
 0x335   : > { %v6575_v33 = vpop.xlane.xlu0 %1555  ;;  %v1708_v50 = vsel %vm1707_vm11, %v5052_v31, %v1704_v52  ;;  %v1729_v21 = vmul.f32 %v5056_v18, %v6548_v35  ;;  %v1739_v31 = vand.u32 2147483648, %v6548_v35  ;;  %v1699_v23 = vsel %vm1696_vm14, %v1698_v3, %v1694_v51  ;;  %vm1721_vm8 = vmor %vm1719_vm1, %vm1720_vm3 }
 0x336   : > { %5057 = vrcp.f32 %v6575_v33  ;;  %v1713_v29 = vsel %vm1710_vm13, %v1712_v54, %v1708_v50  ;;  %v1716_v26 = vsub.f32 1.0, %v1715_v10  ;;  %2093 = vmatpush.xpose.msra.mxu2 %v1099_v57  ;;  %vm1734_vm15 = vweird.f32 %v5056_v18 }
 0x337   : > { %v1794_v9 = vmul.f32 %v6385_v46, %v1713_v29  ;;  %5059 = vrcp.f32 %v6577_v49  ;;  %v1730_v55 = vsub.f32 1.0, %v1729_v21  ;;  %v1793_v46 = vmul.f32 %v6387_v22, %v1699_v23  ;;  %vm1735_vm5 = vmor %vm1733_vm2, %vm1734_vm15 }
 0x338   : > { %v1717_v48 = vmul.f32 %v6563_v25, %v1716_v26  ;;  %v1740_v36 = vor.u32 1.1754944e-38, %v1739_v31  ;;  %vm1738_vm6 = vcmp.eq.f32.partialorder %v1737_v7, 8.507059e+37  ;;  %vm1761_vm7 = vweird.f32 %v6575_v33 }
 0x339   : > { %v1731_v38 = vmul.f32 %v5056_v18, %v1730_v55  ;;  %4782 = vmatmul.msk.f32.vlgmr.msra.gmra.mxu3 %vm1415_vm0, %v1794_v9  ;;  %4781 = vmatmul.msk.f32.gmra.mxu2 %vm1415_vm0, %v1793_v46  ;;  %v1767_v30 = vand.u32 2147483648, %v6575_v33  ;;  %v1765_v57 = vand.u32 2147483647, %v6575_v33  ;;  %v1751_v27 = vand.u32 2147483647, %v6577_v49 }
 0x33a   : > { %2115 = vmatpush.xpose.msra.mxu3 %v1108_v37  ;;  %v1718_v13 = vadd.f32 %v6563_v25, %v1717_v48  ;;  %v1753_v52 = vand.u32 2147483648, %v6577_v49  ;;  %vm1747_vm12 = vweird.f32 %v6577_v49  ;;  %v1132_v31 = vadd.f32 %v6395_v47, %v6136_v43 }
 0x33b   : > { %v6606_v45 = vpop.xlane.xlu1 %1558  ;;  %v1732_v63 = vadd.f32 %v5056_v18, %v1731_v38  ;;  %v1768_v29 = vor.u32 1.1754944e-38, %v1767_v30  ;;  %vm1766_vm13 = vcmp.eq.f32.partialorder %v1765_v57, 8.507059e+37  ;;  %vm1752_vm15 = vcmp.eq.f32.partialorder %v1751_v27, 8.507059e+37 }
 0x33c   : > { %v5058_v61 = vpop.eup %5057  ;;  %5061 = vrcp.f32 %v6606_v45  ;;  %v1722_v4 = vsel %vm1721_vm8, %v6563_v25, %v1718_v13  ;;  %v1754_v21 = vor.u32 1.1754944e-38, %v1753_v52  ;;  %vm1775_vm2 = vweird.f32 %v6606_v45 }
 0x33d   : > { %v1757_v22 = vmul.f32 %v5058_v61, %v6575_v33  ;;  %v5060_v32 = vpop.eup %5059  ;;  %v1736_v35 = vsel %vm1735_vm5, %v5056_v18, %v1732_v63  ;;  %vm1762_vm9 = vweird.f32 %v5058_v61  ;;  %v1727_v6 = vsel %vm6614_vm4, %v1726_v0, %v1722_v4 }
 0x33e   : > { %v1743_v12 = vmul.f32 %v5060_v32, %v6577_v49  ;;  %v1741_v1 = vsel %vm1738_vm6, %v1740_v36, %v1736_v35  ;;  %2116 = vmatpush.xpose.msra.mxu3 %v1105_v42  ;;  %vm1748_vm10 = vweird.f32 %v5060_v32  ;;  %vm6633_vm11 = vmor %vm1761_vm7, %vm1762_vm9  ;;  %v1795_v50 = vmul.f32 %v6399_v56, %v1727_v6  ;;  %v7972_v35 = vld [vmem:[#allocation39_spill] sm:$0xff] }
 0x33f   : > { %v1758_v59 = vsub.f32 1.0, %v1757_v22  ;;  %v1796_v34 = vmul.f32 %v6401_v11, %v1741_v1  ;;  %v1123_v33 = vadd.f32 %v6348_v28, %v6136_v43  ;;  %vm1749_vm14 = vmor %vm1747_vm12, %vm1748_vm10  ;;  %v1781_v49 = vand.u32 2147483648, %v6606_v45  ;;  %v7974_v1 = vld [vmem:[#allocation40_spill] sm:$0xff] }
 0x340   : > { %v1744_v2 = vsub.f32 1.0, %v1743_v12  ;;  %v1779_v17 = vand.u32 2147483647, %v6606_v45  ;;  %v1167_v7 = vadd.f32 %v6247_v20, %v6233_v5  ;;  %v1034_v47 = vadd.f32 %v6201_v15, %v6156_v58  ;;  %v7965_v15 = vld [vmem:[#allocation36_spill] sm:$0xff]  ;;  %v7973_v12 = vld [vmem:[#allocation43_spill] sm:$0xff] }
 0x341   : > { %v1759_v24 = vmul.f32 %v5058_v61, %v1758_v59  ;;  %4784 = vmatmul.msk.f32.vlgmr.msrb.gmra.mxu2 %vm1415_vm0, %v1796_v34  ;;  %4783 = vmatmul.msk.f32.gmra.mxu3 %vm1415_vm0, %v1795_v50  ;;  %v1782_v38 = vor.u32 1.1754944e-38, %v1781_v49  ;;  %v1173_v20 = vadd.f32 %v6264_v8, %v6233_v5  ;;  %v1170_v42 = vadd.f32 %v7965_v15, %v6233_v5  ;;  %v7969_v8 = vld [vmem:[#allocation41_spill] sm:$0xff]  ;;  %v2218_v50 = vpop.xlane.xlu2 %2217 }
 0x342   : > { %v5062_v54 = vpop.eup %5061  ;;  %v1745_v18 = vmul.f32 %v5060_v32, %v1744_v2  ;;  %2184 = vmatpush.xpose.msrb.mxu2 %v1126_v39  ;;  %vm1780_vm4 = vcmp.eq.f32.partialorder %v1779_v17, 8.507059e+37  ;;  %v1188_v22 = vadd.f32 %v7969_v8, %v6233_v5  ;;  %v1197_v36 = vadd.f32 %v7971_v62, %v6233_v5 }
 0x343   : > { %v1760_v10 = vadd.f32 %v5058_v61, %v1759_v24  ;;  %v1771_v53 = vmul.f32 %v5062_v54, %v6606_v45  ;;  %vm1776_vm1 = vweird.f32 %v5062_v54  ;;  %v1058_v45 = vadd.f32 %v7967_v16, %v6156_v58  ;;  %v2224_v49 = vpop.xlane.xlu1 %2223 }
 0x344   : > { %v1746_v26 = vadd.f32 %v5060_v32, %v1745_v18  ;;  %vm1777_vm3 = vmor %vm1775_vm2, %vm1776_vm1  ;;  %v1064_v59 = vadd.f32 %v7972_v35, %v6156_v58  ;;  %v1194_v0 = vadd.f32 %v7973_v12, %v6233_v5  ;;  %v1067_v30 = vadd.f32 %v7974_v1, %v6156_v58 }
 0x345   : > { %v1764_v25 = vsel %vm6633_vm11, %v5058_v61, %v1760_v10  ;;  %v1772_v51 = vsub.f32 1.0, %v1771_v53  ;;  %v1164_v61 = vadd.f32 %v6242_v14, %v6233_v5  ;;  %v7966_v14 = vld [vmem:[#allocation42_spill] sm:$0xff] }
 0x346   : > { %v1769_v56 = vsel %vm1766_vm13, %v1768_v29, %v1764_v25  ;;  %v1750_v3 = vsel %vm1749_vm14, %v5060_v32, %v1746_v26  ;;  %2185 = vmatpush.xpose.msrb.mxu2 %v1123_v33  ;;  %v1191_v39 = vadd.f32 %v7966_v14, %v6233_v5  ;;  %v7970_v32 = vld [vmem:[#allocation38_spill] sm:$0xff]  ;;  %v2221_v25 = vpop.xlane.xlu0 %2220  ;;  %v7975_v29 = vld [vmem:[#allocation45_spill] sm:$0xff] }
 0x347   : > { %v1773_v9 = vmul.f32 %v5062_v54, %v1772_v51  ;;  %v1755_v37 = vsel %vm1752_vm15, %v1754_v21, %v1750_v3  ;;  %v1798_v48 = vmul.f32 %v6412_v44, %v1769_v56  ;;  %v1129_v44 = vadd.f32 %v6377_v40, %v6136_v43  ;;  %v7964_v40 = vld [vmem:[#allocation34_spill] sm:$0xff]  ;;  %v7976_v21 = vld [vmem:[#allocation47_spill] sm:$0xff] }
 0x348   : > { %v1797_v55 = vmul.f32 %v6414_v19, %v1755_v37  ;;  %v1037_v43 = vadd.f32 %v6209_v41, %v6156_v58  ;;  %v7968_v41 = vld [vmem:[#allocation35_spill] sm:$0xff]  ;;  %v1061_v13 = vadd.f32 %v7970_v32, %v6156_v58  ;;  %v2264_v26 = vsub.f32 %v7975_v29, %v2218_v50 }
 0x349   : > { %v1774_v28 = vadd.f32 %v5062_v54, %v1773_v9  ;;  %4786 = vmatmul.msk.f32.vlgmr.msrb.gmra.mxu3 %vm1415_vm0, %v1798_v48  ;;  %v1043_v63 = vadd.f32 %v7968_v41, %v6156_v58  ;;  %v2265_v51 = vsub.f32 %v7976_v21, %v2221_v25 }
 0x34a   : > { %4785 = vmatmul.msk.f32.gmra.mxu2 %vm1415_vm0, %v1797_v55  ;;  %2207 = vmatpush.xpose.msrb.mxu3 %v1132_v31  ;;  %v2280_v9 = vmul.f32 1.442695, %v2264_v26  ;;  %v7977_v55 = vld [vmem:[#allocation46_spill] sm:$0xff] }
 0x34b   : > { %v1778_v23 = vsel %vm1777_vm3, %v5062_v54, %v1774_v28  ;;  %v2282_v37 = vmul.f32 1.442695, %v2265_v51  ;;  %v2266_v48 = vsub.f32 %v7977_v55, %v2224_v49 }
 0x34c   : > { %v1783_v19 = vsel %vm1780_vm4, %v1782_v38, %v1778_v23  ;;  %5063 = vpow2.f32 %v2280_v9 }
 0x34d   : > { %v1799_v46 = vmul.f32 %v6424_v60, %v1783_v19  ;;  %v1040_v60 = vadd.f32 %v7964_v40, %v6156_v58  ;;  %5065 = vpow2.f32 %v2282_v37  ;;  %v2284_v38 = vmul.f32 1.442695, %v2266_v48 }
 0x34e   : > { %2208 = vmatpush.xpose.msrb.mxu3 %v1129_v44  ;;  %v6729_v44 = vpop.f32.mrf.mxu0 }
 0x34f   : > { %5067 = vpow2.f32 %v2284_v38 }
 0x351   : > { %4787 = vmatmul.msk.f32.gmra.mxu3 %vm1415_vm0, %v1799_v46 }
 0x352   : > { %2094 = vmatmul.f32.vlgmr.msra.gmra.mxu2 %v1034_v47  ;;  %v6731_v19 = vpop.eup %5063  ;;  %v7978_v47 = vld [vmem:[#allocation48_spill] sm:$0xff] }
 0x353   : > { %2678 = vmatpush.msra.mxu2 %v1167_v7  ;;  %v2227_v7 = vpop.xlane.xlu2 %2226  ;;  %v6733_v46 = vpop.eup %5065 }
 0x354   : > { %v2315_v40 = vsel %vm1415_vm0, %v6733_v46, 0.0 }
 0x355   : > { %2679 = vmatpush.msra.mxu2 %v1164_v61  ;;  %v2267_v61 = vsub.f32 %v7978_v47, %v2227_v7 }
 0x356   : > { %v6743_v14 = vpop.f32.mrf.mxu0 }
 0x357   : > { %v2286_v15 = vmul.f32 1.442695, %v2267_v61  ;;  %v2243_v16 = vsel %vm1415_vm0, %v6743_v14, -inf }
 0x359   : > { %2117 = vmatmul.f32.vlgmr.msra.gmra.mxu3 %v1040_v60  ;;  %5069 = vpow2.f32 %v2286_v15 }
 0x35a   : > { %2097 = vmatmul.f32.gmra.mxu2 %v1037_v43  ;;  %2707 = vmatpush.msra.mxu3 %v1173_v20  ;;  %v2312_v20 = vsel %vm1415_vm0, %v6731_v19, 0.0 }
 0x35c   : > { %2708 = vmatpush.msra.mxu3 %v1170_v42  ;;  %v6741_v42 = vpop.eup %5067 }
 0x35f   : > { %v6751_v41 = vpop.eup %5069 }
 0x361   : > { %2120 = vmatmul.f32.gmra.mxu3 %v1043_v63  ;;  %v6753_v63 = vpop.f32.mrf.mxu1 }
 0x362   : > { %2186 = vmatmul.f32.vlgmr.msrb.gmra.mxu2 %v1058_v45  ;;  %v2240_v45 = vsel %vm1415_vm0, %v6729_v44, -inf  ;;  %v2246_v8 = vsel %vm1415_vm0, %v6753_v63, -inf }
 0x363   : > { %2794 = vmatpush.msrb.mxu2 %v1191_v39  ;;  %v2318_v39 = vsel %vm1415_vm0, %v6741_v42, 0.0 }
 0x365   : > { %2795 = vmatpush.msrb.mxu2 %v1188_v22  ;;  %v2321_v22 = vsel %vm1415_vm0, %v6751_v41, 0.0 }
 0x369   : > { %2209 = vmatmul.f32.vlgmr.msrb.gmra.mxu3 %v1064_v59  ;;  %v6767_v26 = vpop.f32.mrf.mxu1 }
 0x36a   : > { %2189 = vmatmul.f32.gmra.mxu2 %v1061_v13  ;;  %2823 = vmatpush.msrb.mxu3 %v1197_v36  ;;  %v2249_v49 = vsel %vm1415_vm0, %v6767_v26, -inf }
 0x36c   : > { %2824 = vmatpush.msrb.mxu3 %v1194_v0 }
 0x371   : > { %2212 = vmatmul.f32.gmra.mxu3 %v1067_v30 }
 0x392   : > { %v6691_v34 = vpop.f32.mrf.mxu2 }
 0x393   : > { %v6693_v24 = vpop.f32.mrf.mxu3 }
 0x39a   : > { %v6695_v2 = vpop.f32.mrf.mxu2 }
 0x39b   : > { %v6697_v57 = vpop.f32.mrf.mxu3 }
 0x3a3   : > { %v6703_v5 = vpop.f32.mrf.mxu3 }
 0x3a4   : > { %v6699_v27 = vpop.f32.mrf.mxu2 }
 0x3ac   : > { %v6701_v52 = vpop.f32.mrf.mxu2 }
 0x3b3   : > { %v6707_v54 = vpop.f32.mrf.mxu3 }
 0x3b4   : > { %v6705_v4 = vpop.f32.mrf.mxu2 }
 0x3bc   : > { %v6709_v58 = vpop.f32.mrf.mxu3  ;;  %v6711_v10 = vpop.f32.mrf.mxu2 }
 0x3c4   : > { %v6713_v18 = vpop.f32.mrf.mxu2  ;;  %v6715_v6 = vpop.f32.mrf.mxu3 }
 0x3cc   : > { %v6719_v53 = vpop.f32.mrf.mxu3 }
 0x3cd   : > { %v6717_v11 = vpop.f32.mrf.mxu2 }
 0x3d4   : > { %v6723_v56 = vpop.f32.mrf.mxu3 }
 0x3d5   : > { %v2095_v33 = vpop.f32.mrf.mxu2 }
 0x3d6   : > { %v2228_v3 = vsel %vm1415_vm0, %v2095_v33, -inf }
 0x3d7   : > { %2229 = vmax.xlane.f32.xlu0 %v2228_v3 }
 0x3dc   : > { %v2118_v17 = vpop.f32.mrf.mxu3 }
 0x3dd   : > { %v2098_v28 = vpop.f32.mrf.mxu2  ;;  %v2234_v23 = vsel %vm1415_vm0, %v2118_v17, -inf }
 0x3de   : > { %v2231_v31 = vsel %vm1415_vm0, %v2098_v28, -inf  ;;  %2235 = vmax.xlane.f32.xlu2 %v2234_v23 }
 0x3df   : > { %2232 = vmax.xlane.f32.xlu1 %v2231_v31 }
 0x3e4   : > { %v2121_v43 = vpop.f32.mrf.mxu3 }
 0x3e5   : > { %v2237_v60 = vsel %vm1415_vm0, %v2121_v43, -inf  ;;  %v6759_v32 = vpop.f32.mrf.mxu2 }
 0x3e6   : > { %2316 = vadd.xlane.f32.xlu2 %v2315_v40  ;;  %2238 = vmax.xlane.f32.xlu0 %v2237_v60  ;;  %v2252_v13 = vsel %vm1415_vm0, %v6759_v32, -inf }
 0x3e7   : > { %2313 = vadd.xlane.f32.xlu1 %v2312_v20 }
 0x3ec   : > { %v6778_v48 = vpop.f32.mrf.mxu3 }
 0x3ee   : > { %2244 = vmax.xlane.f32.xlu2 %v2243_v16  ;;  %2241 = vmax.xlane.f32.xlu0 %v2240_v45 }
 0x3ef   : > { %2319 = vadd.xlane.f32.xlu1 %v2318_v39 }
 0x3f6   : > { %2247 = vmax.xlane.f32.xlu2 %v2246_v8  ;;  %2322 = vadd.xlane.f32.xlu0 %v2321_v22 }
 0x3fe   : > { %2253 = vmax.xlane.f32.xlu2 %v2252_v13 }
 0x44a   : > { %v2230_v62 = vpop.xlane.xlu0 %2229 }
 0x44b   : > { %v2268_v36 = vsub.f32 %v2095_v33, %v2230_v62 }
 0x44d   : > { %v2288_v35 = vmul.f32 1.442695, %v2268_v36 }
 0x44f   : > { %5071 = vpow2.f32 %v2288_v35 }
 0x451   : > { %v2236_v0 = vpop.xlane.xlu2 %2235 }
 0x452   : > { %v2233_v59 = vpop.xlane.xlu1 %2232  ;;  %v2270_v50 = vsub.f32 %v2118_v17, %v2236_v0  ;;  %v6780_v17 = vpop.f32.mrf.mxu2 }
 0x453   : > { %v2269_v12 = vsub.f32 %v2098_v28, %v2233_v59  ;;  %v2255_v60 = vsel %vm1415_vm0, %v6780_v17, -inf  ;;  %v6802_v0 = vpop.f32.mrf.mxu3 }
 0x454   : > { %v2292_v29 = vmul.f32 1.442695, %v2270_v50 }
 0x455   : > { %v6763_v1 = vpop.eup %5071  ;;  %v2290_v30 = vmul.f32 1.442695, %v2269_v12 }
 0x456   : > { %v2324_v25 = vsel %vm1415_vm0, %v6763_v1, 0.0 }
 0x457   : > { %5073 = vpow2.f32 %v2290_v30  ;;  %2325 = vadd.xlane.f32.xlu1 %v2324_v25 }
 0x459   : > { %v2239_v51 = vpop.xlane.xlu0 %2238  ;;  %v6769_v33 = vpop.xlane.xlu2 %2316 }
 0x45a   : > { %v2314_v21 = vpop.xlane.xlu1 %2313  ;;  %v2271_v3 = vsub.f32 %v2121_v43, %v2239_v51  ;;  %vm2379_vm10 = vweird.f32 %v6769_v33 }
 0x45b   : > { %5075 = vrcp.f32 %v2314_v21  ;;  %v2369_v15 = vand.u32 2147483647, %v2314_v21  ;;  %v2371_v39 = vand.u32 2147483648, %v2314_v21  ;;  %vm2365_vm6 = vweird.f32 %v2314_v21 }
 0x45c   : > { %5077 = vrcp.f32 %v6769_v33  ;;  %v2294_v37 = vmul.f32 1.442695, %v2271_v3 }
 0x45d   : > { %v6772_v9 = vpop.eup %5073  ;;  %5079 = vpow2.f32 %v2292_v29  ;;  %vm2370_vm8 = vcmp.eq.f32.partialorder %v2369_v15, 8.507059e+37  ;;  %v2372_v59 = vor.u32 1.1754944e-38, %v2371_v39 }
 0x45e   : > { %v2327_v55 = vsel %vm1415_vm0, %v6772_v9, 0.0  ;;  %5081 = vpow2.f32 %v2294_v37  ;;  %v2258_v37 = vsel %vm1415_vm0, %v6778_v48, -inf }
 0x45f   : > { %2250 = vmax.xlane.f32.xlu1 %v2249_v49  ;;  %2328 = vadd.xlane.f32.xlu0 %v2327_v55  ;;  %v2383_v55 = vand.u32 2147483647, %v6769_v33 }
 0x461   : > { %v5076_v28 = vpop.eup %5075  ;;  %v2242_v61 = vpop.xlane.xlu0 %2241  ;;  %vm2384_vm13 = vcmp.eq.f32.partialorder %v2383_v55, 8.507059e+37 }
 0x462   : > { %v6782_v31 = vpop.eup %5077  ;;  %v2361_v23 = vmul.f32 %v5076_v28, %v2314_v21  ;;  %v6784_v38 = vpop.xlane.xlu1 %2319  ;;  %v2272_v40 = vsub.f32 %v6729_v44, %v2242_v61  ;;  %vm2366_vm5 = vweird.f32 %v5076_v28  ;;  %v2385_v21 = vand.u32 2147483648, %v6769_v33 }
 0x463   : > { %v6786_v7 = vpop.eup %5079  ;;  %v2375_v47 = vmul.f32 %v6782_v31, %v6769_v33  ;;  %5083 = vrcp.f32 %v6784_v38  ;;  %v2245_v43 = vpop.xlane.xlu2 %2244  ;;  %vm2367_vm7 = vmor %vm2365_vm6, %vm2366_vm5  ;;  %vm2380_vm9 = vweird.f32 %v6782_v31  ;;  %vm2393_vm14 = vweird.f32 %v6784_v38 }
 0x464   : > { %v2362_v20 = vsub.f32 1.0, %v2361_v23  ;;  %v2273_v45 = vsub.f32 %v6743_v14, %v2245_v43  ;;  %v6795_v8 = vpop.eup %5081  ;;  %v2296_v13 = vmul.f32 1.442695, %v2272_v40  ;;  %v2330_v62 = vsel %vm1415_vm0, %v6786_v7, 0.0  ;;  %vm6813_vm11 = vmor %vm2379_vm10, %vm2380_vm9 }
 0x465   : > { %v2376_v16 = vsub.f32 1.0, %v2375_v47  ;;  %v2333_v44 = vsel %vm1415_vm0, %v6795_v8, 0.0  ;;  %v2399_v47 = vand.u32 2147483648, %v6784_v38  ;;  %v2261_v43 = vsel %vm1415_vm0, %v6802_v0, -inf }
 0x466   : > { %v2363_v22 = vmul.f32 %v5076_v28, %v2362_v20  ;;  %5085 = vpow2.f32 %v2296_v13  ;;  %2334 = vadd.xlane.f32.xlu2 %v2333_v44  ;;  %v2298_v12 = vmul.f32 1.442695, %v2273_v45 }
 0x467   : > { %v2377_v36 = vmul.f32 %v6782_v31, %v2376_v16  ;;  %2256 = vmax.xlane.f32.xlu1 %v2255_v60  ;;  %2331 = vadd.xlane.f32.xlu0 %v2330_v62  ;;  %v2386_v60 = vor.u32 1.1754944e-38, %v2385_v21  ;;  %v2400_v16 = vor.u32 1.1754944e-38, %v2399_v47  ;;  %v1213_v47 = vld [vmem:[%s5831_s15 + $0x70] sm:$0xff] }
 0x468   : > { %v2364_v35 = vadd.f32 %v5076_v28, %v2363_v22 }
 0x469   : > { %v5084_v14 = vpop.eup %5083  ;;  %v2378_v50 = vadd.f32 %v6782_v31, %v2377_v36  ;;  %v2323_v51 = vpop.xlane.xlu0 %2322 }
 0x46a   : > { %v2368_v30 = vsel %vm2367_vm7, %v5076_v28, %v2364_v35  ;;  %v2389_v25 = vmul.f32 %v5084_v14, %v6784_v38  ;;  %5087 = vrcp.f32 %v2323_v51  ;;  %vm2394_vm12 = vweird.f32 %v5084_v14 }
 0x46b   : > { %v2373_v29 = vsel %vm2370_vm8, %v2372_v59, %v2368_v30  ;;  %v2248_v3 = vpop.xlane.xlu2 %2247  ;;  %5089 = vpow2.f32 %v2298_v12  ;;  %v2382_v33 = vsel %vm6813_vm11, %v6782_v31, %v2378_v50  ;;  %vm2395_vm15 = vmor %vm2393_vm14, %vm2394_vm12  ;;  %v2413_v30 = vand.u32 2147483648, %v2323_v51 }
 0x46c   : > { %v2584_v49 = vmul.f32 %v6731_v19, %v2373_v29  ;;  %v2390_v28 = vsub.f32 1.0, %v2389_v25  ;;  %v2274_v61 = vsub.f32 %v6753_v63, %v2248_v3  ;;  %v6821_v20 = vpop.eup %5085  ;;  %v2397_v19 = vand.u32 2147483647, %v6784_v38 }
 0x46d   : > { %v2336_v63 = vsel %vm1415_vm0, %v6821_v20, 0.0  ;;  %v2387_v45 = vsel %vm2384_vm13, %v2386_v60, %v2382_v33  ;;  %v2411_v21 = vand.u32 2147483647, %v2323_v51  ;;  %vm2407_vm3 = vweird.f32 %v2323_v51 }
 0x46e   : > { %v2391_v40 = vmul.f32 %v5084_v14, %v2390_v28  ;;  %4788 = vmatmul.msk.f32.vlgmr.msra.gmra.mxu0 %vm1415_vm0, %v2584_v49  ;;  %v2300_v15 = vmul.f32 1.442695, %v2274_v61  ;;  %2337 = vadd.xlane.f32.xlu2 %v2336_v63  ;;  %vm2398_vm1 = vcmp.eq.f32.partialorder %v2397_v19, 8.507059e+37  ;;  %v2585_v12 = vmul.f32 %v6733_v46, %v2387_v45  ;;  %v1212_v61 = vld [vmem:[%s5831_s15 + $0x68] sm:$0xff]  ;;  %v1209_v63 = vld [vmem:[%s5831_s15 + $0x50] sm:$0xff] }
 0x46f   : > { %2262 = vmax.xlane.f32.xlu1 %v2261_v43  ;;  %2259 = vmax.xlane.f32.xlu0 %v2258_v37  ;;  %vm2412_vm5 = vcmp.eq.f32.partialorder %v2411_v21, 8.507059e+37  ;;  %v1206_v21 = vld [vmem:[%s5831_s15 + $0x38] sm:$0xff] }
 0x470   : > { %v2392_v39 = vadd.f32 %v5084_v14, %v2391_v40  ;;  %5091 = vpow2.f32 %v2300_v15  ;;  %v5088_v22 = vpop.eup %5087  ;;  %v1210_v40 = vld [vmem:[%s5831_s15 + $0x58] sm:$0xff] }
 0x471   : > { %v6831_v31 = vpop.eup %5089  ;;  %v2403_v36 = vmul.f32 %v5088_v22, %v2323_v51  ;;  %vm2408_vm2 = vweird.f32 %v5088_v22  ;;  %v1214_v51 = vld [vmem:[%s5831_s15 + $0x78] sm:$0xff] }
 0x472   : > { %v2396_v13 = vsel %vm2395_vm15, %v5084_v14, %v2392_v39  ;;  %v2339_v14 = vsel %vm1415_vm0, %v6831_v31, 0.0  ;;  %vm2409_vm4 = vmor %vm2407_vm3, %vm2408_vm2  ;;  %2848 = vmatpush.msra.mxu0 %v1214_v51  ;;  %v1204_v51 = vld [vmem:[%s5831_s15 + $0x28] sm:$0xff] }
 0x473   : > { %v2401_v62 = vsel %vm2398_vm1, %v2400_v16, %v2396_v13  ;;  %v2254_v44 = vpop.xlane.xlu2 %2253  ;;  %v2404_v38 = vsub.f32 1.0, %v2403_v36  ;;  %v1207_v36 = vld [vmem:[%s5831_s15 + $0x40] sm:$0xff] }
 0x474   : > { %v2586_v35 = vmul.f32 %v6741_v42, %v2401_v62  ;;  %v2276_v59 = vsub.f32 %v6759_v32, %v2254_v44  ;;  %v2414_v32 = vor.u32 1.1754944e-38, %v2413_v30  ;;  %2849 = vmatpush.msra.mxu0 %v1213_v47 }
 0x475   : > { %v2405_v29 = vmul.f32 %v5088_v22, %v2404_v38 }
 0x476   : > { %v2304_v50 = vmul.f32 1.442695, %v2276_v59  ;;  %4789 = vmatmul.msk.f32.gmra.mxu0 %vm1415_vm0, %v2585_v12  ;;  %4790 = vmatmul.msk.f32.vlgmr.msra.gmra.mxu1 %vm1415_vm0, %v2586_v35  ;;  %v6840_v25 = vpop.eup %5091 }
 0x477   : > { %2340 = vadd.xlane.f32.xlu0 %v2339_v14  ;;  %v2342_v46 = vsel %vm1415_vm0, %v6840_v25, 0.0  ;;  %v2406_v42 = vadd.f32 %v5088_v22, %v2405_v29  ;;  %2850 = vmatpush.msra.mxu0 %v1212_v61 }
 0x478   : > { %5093 = vpow2.f32 %v2304_v50  ;;  %2343 = vadd.xlane.f32.xlu1 %v2342_v46 }
 0x479   : > { %v2410_v3 = vsel %vm2409_vm4, %v5088_v22, %v2406_v42  ;;  %v1208_v22 = vld [vmem:[%s5831_s15 + $0x48] sm:$0xff] }
 0x47a   : > { %v2415_v37 = vsel %vm2412_vm5, %v2414_v32, %v2410_v3 }
 0x47b   : > { %v2587_v49 = vmul.f32 %v6751_v41, %v2415_v37  ;;  %v1211_v41 = vld [vmem:[%s5831_s15 + $0x60] sm:$0xff] }
 0x47c   : > { %2851 = vmatpush.msra.mxu0 %v1211_v41  ;;  %v1203_v41 = vld [vmem:[%s5831_s15 + $0x20] sm:$0xff] }
 0x47e   : > { %v6845_v55 = vpop.eup %5093  ;;  %4791 = vmatmul.msk.f32.gmra.mxu1 %vm1415_vm0, %v2587_v49  ;;  %2852 = vmatpush.msra.mxu0 %v1210_v40  ;;  %v1205_v49 = vld [vmem:[%s5831_s15 + $0x30] sm:$0xff] }
 0x47f   : > { %v2348_v28 = vsel %vm1415_vm0, %v6845_v55, 0.0 }
 0x480   : > { %2349 = vadd.xlane.f32.xlu0 %v2348_v28  ;;  %2853 = vmatpush.msra.mxu0 %v1209_v63 }
 0x482   : > { %2854 = vmatpush.msra.mxu0 %v1208_v22 }
 0x484   : > { %2855 = vmatpush.msra.mxu0 %v1207_v36 }
 0x486   : > { %2856 = vmatpush.msra.mxu0 %v1206_v21 }
 0x488   : > { %2857 = vmatpush.msra.mxu0 %v1205_v49 }
 0x48a   : > { %2858 = vmatpush.msra.mxu0 %v1204_v51 }
 0x48c   : > { %2859 = vmatpush.msra.mxu0 %v1203_v41 }
 0x4ca   : > { %v2326_v23 = vpop.xlane.xlu1 %2325 }
 0x4cb   : > { %5095 = vrcp.f32 %v2326_v23  ;;  %v2427_v16 = vand.u32 2147483648, %v2326_v23  ;;  %v2425_v62 = vand.u32 2147483647, %v2326_v23  ;;  %vm2421_vm7 = vweird.f32 %v2326_v23 }
 0x4cd   : > { %vm2426_vm9 = vcmp.eq.f32.partialorder %v2425_v62, 8.507059e+37 }
 0x4d1   : > { %v5096_v43 = vpop.eup %5095 }
 0x4d2   : > { %v2417_v19 = vmul.f32 %v5096_v43, %v2326_v23  ;;  %v2251_v33 = vpop.xlane.xlu1 %2250  ;;  %v2329_v60 = vpop.xlane.xlu0 %2328  ;;  %vm2422_vm6 = vweird.f32 %v5096_v43 }
 0x4d3   : > { %v2275_v15 = vsub.f32 %v6767_v26, %v2251_v33  ;;  %5097 = vrcp.f32 %v2329_v60  ;;  %vm2423_vm8 = vmor %vm2421_vm7, %vm2422_vm6  ;;  %v2428_v26 = vor.u32 1.1754944e-38, %v2427_v16  ;;  %v2441_v3 = vand.u32 2147483648, %v2329_v60 }
 0x4d4   : > { %v2418_v39 = vsub.f32 1.0, %v2417_v19  ;;  %vm2435_vm11 = vweird.f32 %v2329_v60 }
 0x4d5   : > { %v2302_v45 = vmul.f32 1.442695, %v2275_v15  ;;  %v2442_v61 = vor.u32 1.1754944e-38, %v2441_v3 }
 0x4d6   : > { %v2419_v13 = vmul.f32 %v5096_v43, %v2418_v39 }
 0x4d7   : > { %5099 = vpow2.f32 %v2302_v45  ;;  %v1202_v45 = vld [vmem:[%s5831_s15 + $0x18] sm:$0xff] }
 0x4d8   : > { %v2420_v44 = vadd.f32 %v5096_v43, %v2419_v13  ;;  %2860 = vmatpush.msra.mxu0 %v1202_v45 }
 0x4d9   : > { %v5098_v35 = vpop.eup %5097  ;;  %v6863_v29 = vpop.xlane.xlu2 %2334 }
 0x4da   : > { %v2424_v59 = vsel %vm2423_vm8, %v5096_v43, %v2420_v44  ;;  %v2431_v12 = vmul.f32 %v5098_v35, %v2329_v60  ;;  %v2257_v38 = vpop.xlane.xlu1 %2256  ;;  %v6859_v30 = vpop.xlane.xlu0 %2331  ;;  %vm2436_vm10 = vweird.f32 %v5098_v35  ;;  %v2467_v51 = vand.u32 2147483647, %v6863_v29 }
 0x4db   : > { %v2429_v50 = vsel %vm2426_vm9, %v2428_v26, %v2424_v59  ;;  %v2277_v14 = vsub.f32 %v6780_v17, %v2257_v38  ;;  %5101 = vrcp.f32 %v6859_v30  ;;  %v2439_v17 = vand.u32 2147483647, %v2329_v60  ;;  %vm2437_vm12 = vmor %vm2435_vm11, %vm2436_vm10  ;;  %v1200_v38 = vld [vmem:[%s5831_s15 + $0x8] sm:$0xff] }
 0x4dc   : > { %v2588_v46 = vmul.f32 %v6763_v1, %v2429_v50  ;;  %v2432_v42 = vsub.f32 1.0, %v2431_v12  ;;  %5103 = vrcp.f32 %v6863_v29  ;;  %v2453_v13 = vand.u32 2147483647, %v6859_v30  ;;  %v1201_v12 = vld [vmem:[%s5831_s15 + $0x10] sm:$0xff] }
 0x4dd   : > { %v6867_v32 = vpop.eup %5099  ;;  %v2306_v37 = vmul.f32 1.442695, %v2277_v14  ;;  %vm2440_vm13 = vcmp.eq.f32.partialorder %v2439_v17, 8.507059e+37  ;;  %2861 = vmatpush.msra.mxu0 %v1201_v12  ;;  %vm2449_vm15 = vweird.f32 %v6859_v30  ;;  %vm2463_vm4 = vweird.f32 %v6863_v29 }
 0x4de   : > { %v2433_v28 = vmul.f32 %v5098_v35, %v2432_v42  ;;  %4792 = vmatmul.msk.f32.vlgmr.msra.gmra.mxu2 %vm1415_vm0, %v2588_v46  ;;  %v2345_v1 = vsel %vm1415_vm0, %v6867_v32, 0.0  ;;  %v1199_v46 = vld [vmem:[%s5831_s15] sm:$0xff]  ;;  %vm2454_vm2 = vcmp.eq.f32.partialorder %v2453_v13, 8.507059e+37  ;;  %vm2468_vm7 = vcmp.eq.f32.partialorder %v2467_v51, 8.507059e+37 }
 0x4df   : > { %5105 = vpow2.f32 %v2306_v37  ;;  %2346 = vadd.xlane.f32.xlu2 %v2345_v1  ;;  %2862 = vmatpush.msra.mxu0 %v1200_v38  ;;  %v2469_v37 = vand.u32 2147483648, %v6863_v29 }
 0x4e0   : > { %v2434_v23 = vadd.f32 %v5098_v35, %v2433_v28 }
 0x4e1   : > { %v5102_v47 = vpop.eup %5101  ;;  %v6881_v39 = vpop.xlane.xlu2 %2337  ;;  %2863 = vmatpush.msra.mxu0 %v1199_v46 }
 0x4e2   : > { %v2445_v43 = vmul.f32 %v5102_v47, %v6859_v30  ;;  %v2263_v40 = vpop.xlane.xlu1 %2262  ;;  %v2260_v19 = vpop.xlane.xlu0 %2259  ;;  %v2438_v33 = vsel %vm2437_vm12, %v5098_v35, %v2434_v23  ;;  %5107 = vrcp.f32 %v6881_v39  ;;  %vm2450_vm14 = vweird.f32 %v5102_v47 }
 0x4e3   : > { %v6877_v15 = vpop.eup %5103  ;;  %v2279_v63 = vsub.f32 %v6802_v0, %v2263_v40  ;;  %v2278_v60 = vsub.f32 %v6778_v48, %v2260_v19  ;;  %v2443_v16 = vsel %vm2440_vm13, %v2442_v61, %v2438_v33  ;;  %v2455_v0 = vand.u32 2147483648, %v6859_v30  ;;  %vm2451_vm1 = vmor %vm2449_vm15, %vm2450_vm14 }
 0x4e4   : > { %v2446_v22 = vsub.f32 1.0, %v2445_v43  ;;  %v2459_v62 = vmul.f32 %v6877_v15, %v6863_v29  ;;  %v2589_v59 = vmul.f32 %v6772_v9, %v2443_v16  ;;  %vm2464_vm3 = vweird.f32 %v6877_v15 }
 0x4e5   : > { %v6888_v36 = vpop.eup %5105  ;;  %v2310_v48 = vmul.f32 1.442695, %v2279_v63  ;;  %v2308_v44 = vmul.f32 1.442695, %v2278_v60  ;;  %v2456_v9 = vor.u32 1.1754944e-38, %v2455_v0  ;;  %vm6914_vm5 = vmor %vm2463_vm4, %vm2464_vm3  ;;  %v2470_v40 = vor.u32 1.1754944e-38, %v2469_v37 }
 0x4e6   : > { %v2447_v35 = vmul.f32 %v5102_v47, %v2446_v22  ;;  %v2460_v26 = vsub.f32 1.0, %v2459_v62  ;;  %v2351_v50 = vsel %vm1415_vm0, %v6888_v36, 0.0  ;;  %4793 = vmatmul.msk.f32.gmra.mxu2 %vm1415_vm0, %v2589_v59  ;;  %v2483_v19 = vand.u32 2147483648, %v6881_v39 }
 0x4e7   : > { %5109 = vpow2.f32 %v2310_v48  ;;  %2352 = vadd.xlane.f32.xlu1 %v2351_v50  ;;  %vm2477_vm8 = vweird.f32 %v6881_v39 }
 0x4e8   : > { %v2448_v14 = vadd.f32 %v5102_v47, %v2447_v35  ;;  %v2461_v21 = vmul.f32 %v6877_v15, %v2460_v26  ;;  %5111 = vpow2.f32 %v2308_v44  ;;  %v5108_v42 = vpop.eup %5107  ;;  %v2484_v13 = vor.u32 1.1754944e-38, %v2483_v19 }
 0x4e9   : > { %v2473_v17 = vmul.f32 %v5108_v42, %v6881_v39  ;;  %vm2478_vm6 = vweird.f32 %v5108_v42 }
 0x4ea   : > { %v2452_v3 = vsel %vm2451_vm1, %v5102_v47, %v2448_v14  ;;  %v2341_v49 = vpop.xlane.xlu0 %2340  ;;  %v2462_v28 = vadd.f32 %v6877_v15, %v2461_v21  ;;  %vm2479_vm9 = vmor %vm2477_vm8, %vm2478_vm6 }
 0x4eb   : > { %v2457_v30 = vsel %vm2454_vm2, %v2456_v9, %v2452_v3  ;;  %5113 = vrcp.f32 %v2341_v49  ;;  %v2344_v23 = vpop.xlane.xlu1 %2343  ;;  %v2474_v47 = vsub.f32 1.0, %v2473_v17  ;;  %v2497_v38 = vand.u32 2147483648, %v2341_v49 }
 0x4ec   : > { %v2590_v1 = vmul.f32 %v6786_v7, %v2457_v30  ;;  %5115 = vrcp.f32 %v2344_v23  ;;  %v2481_v7 = vand.u32 2147483647, %v6881_v39  ;;  %v2466_v60 = vsel %vm6914_vm5, %v6877_v15, %v2462_v28 }
 0x4ed   : > { %v6907_v61 = vpop.eup %5109  ;;  %v2475_v33 = vmul.f32 %v5108_v42, %v2474_v47  ;;  %v2471_v22 = vsel %vm2468_vm7, %v2470_v40, %v2466_v60  ;;  %v2495_v39 = vand.u32 2147483647, %v2341_v49  ;;  %vm2491_vm12 = vweird.f32 %v2341_v49  ;;  %v1221_v60 = vld [vmem:[%s5831_s15 + $0xb0] sm:$0xff] }
 0x4ee   : > { %v6910_v41 = vpop.eup %5111  ;;  %4794 = vmatmul.msk.f32.vlgmr.msra.gmra.mxu3 %vm1415_vm0, %v2590_v1  ;;  %v2357_v29 = vsel %vm1415_vm0, %v6907_v61, 0.0  ;;  %vm2482_vm10 = vcmp.eq.f32.partialorder %v2481_v7, 8.507059e+37  ;;  %v2591_v12 = vmul.f32 %v6795_v8, %v2471_v22  ;;  %v2511_v21 = vand.u32 2147483648, %v2344_v23  ;;  %v1218_v22 = vld [vmem:[%s5831_s15 + $0x98] sm:$0xff] }
 0x4ef   : > { %v2354_v63 = vsel %vm1415_vm0, %v6910_v41, 0.0  ;;  %2358 = vadd.xlane.f32.xlu0 %v2357_v29  ;;  %v2476_v45 = vadd.f32 %v5108_v42, %v2475_v33  ;;  %v2498_v8 = vor.u32 1.1754944e-38, %v2497_v38  ;;  %vm2496_vm15 = vcmp.eq.f32.partialorder %v2495_v39, 8.507059e+37 }
 0x4f0   : > { %2355 = vadd.xlane.f32.xlu2 %v2354_v63  ;;  %vm2505_vm1 = vweird.f32 %v2344_v23  ;;  %v2512_v30 = vor.u32 1.1754944e-38, %v2511_v21  ;;  %v1230_v63 = vld [vmem:[%s5831_s15 + $0xf8] sm:$0xff] }
 0x4f1   : > { %v5114_v16 = vpop.eup %5113  ;;  %v2480_v48 = vsel %vm2479_vm9, %v5108_v42, %v2476_v45  ;;  %v2509_v42 = vand.u32 2147483647, %v2344_v23  ;;  %2913 = vmatpush.msra.mxu1 %v1230_v63  ;;  %v1219_v45 = vld [vmem:[%s5831_s15 + $0xa0] sm:$0xff] }
 0x4f2   : > { %v2487_v62 = vmul.f32 %v5114_v16, %v2341_v49  ;;  %v5116_v0 = vpop.eup %5115  ;;  %v2485_v35 = vsel %vm2482_vm10, %v2484_v13, %v2480_v48  ;;  %vm2492_vm11 = vweird.f32 %v5114_v16  ;;  %v1216_v13 = vld [vmem:[%s5831_s15 + $0x88] sm:$0xff] }
 0x4f3   : > { %v2350_v44 = vpop.xlane.xlu0 %2349  ;;  %v2501_v59 = vmul.f32 %v5116_v0, %v2344_v23  ;;  %v2592_v15 = vmul.f32 %v6821_v20, %v2485_v35  ;;  %vm2506_vm13 = vweird.f32 %v5116_v0  ;;  %vm2493_vm14 = vmor %vm2491_vm12, %vm2492_vm11  ;;  %vm2510_vm3 = vcmp.eq.f32.partialorder %v2509_v42, 8.507059e+37 }
 0x4f4   : > { %v2488_v26 = vsub.f32 1.0, %v2487_v62  ;;  %5117 = vrcp.f32 %v2350_v44  ;;  %vm2507_vm2 = vmor %vm2505_vm1, %vm2506_vm13  ;;  %v2539_v40 = vand.u32 2147483648, %v2350_v44  ;;  %v2537_v23 = vand.u32 2147483647, %v2350_v44  ;;  %v1215_v62 = vld [vmem:[%s5831_s15 + $0x80] sm:$0xff] }
 0x4f5   : > { %v2502_v14 = vsub.f32 1.0, %v2501_v59  ;;  %4796 = vmatmul.msk.f32.vlgmr.msrb.gmra.mxu0 %vm1415_vm0, %v2592_v15  ;;  %vm2533_vm5 = vweird.f32 %v2350_v44 }
 0x4f6   : > { %v2489_v50 = vmul.f32 %v5114_v16, %v2488_v26  ;;  %4795 = vmatmul.msk.f32.gmra.mxu3 %vm1415_vm0, %v2591_v12  ;;  %v2540_v29 = vor.u32 1.1754944e-38, %v2539_v40  ;;  %vm2538_vm7 = vcmp.eq.f32.partialorder %v2537_v23, 8.507059e+37 }
 0x4f7   : > { %v2503_v9 = vmul.f32 %v5116_v0, %v2502_v14 }
 0x4f8   : > { %v2490_v46 = vadd.f32 %v5114_v16, %v2489_v50 }
 0x4f9   : > { %v2504_v20 = vadd.f32 %v5116_v0, %v2503_v9 }
 0x4fa   : > { %v2494_v3 = vsel %vm2493_vm14, %v5114_v16, %v2490_v46  ;;  %v5118_v37 = vpop.eup %5117  ;;  %v1220_v16 = vld [vmem:[%s5831_s15 + $0xa8] sm:$0xff] }
 0x4fb   : > { %v2499_v28 = vsel %vm2496_vm15, %v2498_v8, %v2494_v3  ;;  %v2508_v17 = vsel %vm2507_vm2, %v5116_v0, %v2504_v20  ;;  %v2529_v49 = vmul.f32 %v5118_v37, %v2350_v44  ;;  %vm2534_vm4 = vweird.f32 %v5118_v37 }
 0x4fc   : > { %v2593_v1 = vmul.f32 %v6831_v31, %v2499_v28  ;;  %v2513_v51 = vsel %vm2510_vm3, %v2512_v30, %v2508_v17  ;;  %vm2535_vm6 = vmor %vm2533_vm5, %vm2534_vm4 }
 0x4fd   : > { %v2594_v47 = vmul.f32 %v6840_v25, %v2513_v51  ;;  %v2530_v43 = vsub.f32 1.0, %v2529_v49 }
 0x4fe   : > { %4797 = vmatmul.msk.f32.gmra.mxu0 %vm1415_vm0, %v2593_v1 }
 0x4ff   : > { %v2531_v7 = vmul.f32 %v5118_v37, %v2530_v43  ;;  %4798 = vmatmul.msk.f32.vlgmr.msrb.gmra.mxu1 %vm1415_vm0, %v2594_v47 }
 0x501   : > { %v2532_v19 = vadd.f32 %v5118_v37, %v2531_v7 }
 0x503   : > { %v2536_v33 = vsel %vm2535_vm6, %v5118_v37, %v2532_v19 }
 0x504   : > { %v2541_v31 = vsel %vm2538_vm7, %v2540_v29, %v2536_v33 }
 0x505   : > { %v2596_v25 = vmul.f32 %v6845_v55, %v2541_v31  ;;  %v1229_v55 = vld [vmem:[%s5831_s15 + $0xf0] sm:$0xff] }
 0x506   : > { %2864 = vmatmul.f32.vlgmr.msra.gmra.mxu0 %v6691_v34  ;;  %2914 = vmatpush.msra.mxu1 %v1229_v55  ;;  %v1228_v34 = vld [vmem:[%s5831_s15 + $0xe8] sm:$0xff] }
 0x507   : > { %4800 = vmatmul.msk.f32.vlgmr.msrb.gmra.mxu2 %vm1415_vm0, %v2596_v25 }
 0x508   : > { %2915 = vmatpush.msra.mxu1 %v1228_v34 }
 0x50e   : > { %2867 = vmatmul.f32.gmra.mxu0 %v6695_v2  ;;  %v1227_v2 = vld [vmem:[%s5831_s15 + $0xe0] sm:$0xff] }
 0x50f   : > { %2916 = vmatpush.msra.mxu1 %v1227_v2 }
 0x516   : > { %2870 = vmatmul.f32.gmra.mxu0 %v6693_v24  ;;  %v1226_v24 = vld [vmem:[%s5831_s15 + $0xd8] sm:$0xff] }
 0x517   : > { %2917 = vmatpush.msra.mxu1 %v1226_v24 }
 0x51e   : > { %2873 = vmatmul.f32.gmra.mxu0 %v6697_v57  ;;  %v1225_v57 = vld [vmem:[%s5831_s15 + $0xd0] sm:$0xff] }
 0x51f   : > { %2918 = vmatpush.msra.mxu1 %v1225_v57 }
 0x526   : > { %2876 = vmatmul.f32.gmra.mxu0 %v6699_v27  ;;  %v1224_v27 = vld [vmem:[%s5831_s15 + $0xc8] sm:$0xff] }
 0x527   : > { %2919 = vmatpush.msra.mxu1 %v1224_v27  ;;  %v2652_v27 = vpop.f32.mrf.mxu1 }
 0x52e   : > { %2879 = vmatmul.f32.gmra.mxu0 %v6701_v52  ;;  %v1223_v52 = vld [vmem:[%s5831_s15 + $0xc0] sm:$0xff] }
 0x52f   : > { %2920 = vmatpush.msra.mxu1 %v1223_v52 }
 0x536   : > { %2882 = vmatmul.f32.gmra.mxu0 %v6703_v5  ;;  %v1222_v5 = vld [vmem:[%s5831_s15 + $0xb8] sm:$0xff] }
 0x537   : > { %2921 = vmatpush.msra.mxu1 %v1222_v5 }
 0x539   : > { %2922 = vmatpush.msra.mxu1 %v1221_v60 }
 0x53b   : > { %2923 = vmatpush.msra.mxu1 %v1220_v16 }
 0x53d   : > { %2924 = vmatpush.msra.mxu1 %v1219_v45 }
 0x53e   : > { %2885 = vmatmul.f32.gmra.mxu0 %v6707_v54  ;;  %v1217_v54 = vld [vmem:[%s5831_s15 + $0x90] sm:$0xff] }
 0x53f   : > { %2925 = vmatpush.msra.mxu1 %v1218_v22 }
 0x541   : > { %2926 = vmatpush.msra.mxu1 %v1217_v54 }
 0x543   : > { %2927 = vmatpush.msra.mxu1 %v1216_v13 }
 0x545   : > { %2928 = vmatpush.msra.mxu1 %v1215_v62 }
 0x546   : > { %2888 = vmatmul.f32.gmra.mxu0 %v6705_v4 }
 0x54e   : > { %2891 = vmatmul.f32.gmra.mxu0 %v6711_v10 }
 0x552   : > { %v2347_v0 = vpop.xlane.xlu2 %2346 }
 0x553   : > { %5119 = vrcp.f32 %v2347_v0  ;;  %v2525_v59 = vand.u32 2147483648, %v2347_v0  ;;  %v2523_v10 = vand.u32 2147483647, %v2347_v0  ;;  %vm2519_vm9 = vweird.f32 %v2347_v0 }
 0x555   : > { %vm2524_vm11 = vcmp.eq.f32.partialorder %v2523_v10, 8.507059e+37 }
 0x556   : > { %2894 = vmatmul.f32.gmra.mxu0 %v6709_v58  ;;  %v2526_v58 = vor.u32 1.1754944e-38, %v2525_v59 }
 0x559   : > { %v5120_v48 = vpop.eup %5119 }
 0x55a   : > { %v2515_v4 = vmul.f32 %v5120_v48, %v2347_v0  ;;  %v2353_v44 = vpop.xlane.xlu1 %2352  ;;  %vm2520_vm8 = vweird.f32 %v5120_v48  ;;  %v2832_v0 = vld [vmem:[#allocation2 + $0x30] sm:$0xff] }
 0x55b   : > { %5121 = vrcp.f32 %v2353_v44  ;;  %vm2521_vm10 = vmor %vm2519_vm9, %vm2520_vm8  ;;  %v2553_v46 = vand.u32 2147483648, %v2353_v44  ;;  %vm2547_vm13 = vweird.f32 %v2353_v44 }
 0x55c   : > { %v2516_v35 = vsub.f32 1.0, %v2515_v4 }
 0x55d   : > { %v2554_v30 = vor.u32 1.1754944e-38, %v2553_v46 }
 0x55e   : > { %v2517_v26 = vmul.f32 %v5120_v48, %v2516_v35  ;;  %2897 = vmatmul.f32.gmra.mxu0 %v6715_v6  ;;  %v2551_v6 = vand.u32 2147483647, %v2353_v44 }
 0x560   : > { %v2518_v12 = vadd.f32 %v5120_v48, %v2517_v26  ;;  %vm2552_vm15 = vcmp.eq.f32.partialorder %v2551_v6, 8.507059e+37  ;;  %v2833_v26 = vld [vmem:[#allocation2] sm:$0xff] }
 0x561   : > { %v5122_v15 = vpop.eup %5121  ;;  %v2681_v52 = vpop.f32.mrf.mxu2 }
 0x562   : > { %v2359_v38 = vpop.xlane.xlu0 %2358  ;;  %v2543_v50 = vmul.f32 %v5122_v15, %v2353_v44  ;;  %v2522_v21 = vsel %vm2521_vm10, %v5120_v48, %v2518_v12  ;;  %vm2548_vm12 = vweird.f32 %v5122_v15 }
 0x563   : > { %5123 = vrcp.f32 %v2359_v38  ;;  %v2356_v39 = vpop.xlane.xlu2 %2355  ;;  %v2527_v9 = vsel %vm2524_vm11, %v2526_v58, %v2522_v21  ;;  %vm2549_vm14 = vmor %vm2547_vm13, %vm2548_vm12  ;;  %vm2575_vm6 = vweird.f32 %v2359_v38  ;;  %v2579_v63 = vand.u32 2147483647, %v2359_v38 }
 0x564   : > { %5125 = vrcp.f32 %v2356_v39  ;;  %v2544_v14 = vsub.f32 1.0, %v2543_v50  ;;  %v2595_v8 = vmul.f32 %v6867_v32, %v2527_v9  ;;  %v2623_v32 = vpop.f32.mrf.mxu0  ;;  %v2567_v40 = vand.u32 2147483648, %v2356_v39  ;;  %v2834_v50 = vld [vmem:[#allocation2 + $0x58] sm:$0xff] }
 0x565   : > { %v2565_v23 = vand.u32 2147483647, %v2356_v39  ;;  %vm2561_vm2 = vweird.f32 %v2356_v39  ;;  %vm2580_vm8 = vcmp.eq.f32.partialorder %v2579_v63, 8.507059e+37  ;;  %v2835_v9 = vld [vmem:[#allocation2 + $0x18] sm:$0xff] }
 0x566   : > { %v2545_v42 = vmul.f32 %v5122_v15, %v2544_v14  ;;  %2900 = vmatmul.f32.gmra.mxu0 %v6713_v18  ;;  %4799 = vmatmul.msk.f32.gmra.mxu1 %vm1415_vm0, %v2595_v8  ;;  %v2568_v29 = vor.u32 1.1754944e-38, %v2567_v40 }
 0x567   : > { %vm2566_vm5 = vcmp.eq.f32.partialorder %v2565_v23, 8.507059e+37  ;;  %v2839_v23 = vld [vmem:[#allocation2 + $0x48] sm:$0xff] }
 0x568   : > { %v2546_v3 = vadd.f32 %v5122_v15, %v2545_v42 }
 0x569   : > { %v5124_v20 = vpop.eup %5123  ;;  %v2684_v5 = vpop.f32.mrf.mxu2 }
 0x56a   : > { %v5126_v37 = vpop.eup %5125  ;;  %v2571_v28 = vmul.f32 %v5124_v20, %v2359_v38  ;;  %v2550_v17 = vsel %vm2549_vm14, %v5122_v15, %v2546_v3  ;;  %vm2576_vm4 = vweird.f32 %v5124_v20  ;;  %v2836_v3 = vld [vmem:[#allocation2 + $0x50] sm:$0xff] }
 0x56b   : > { %v2557_v49 = vmul.f32 %v5126_v37, %v2356_v39  ;;  %v2555_v51 = vsel %vm2552_vm15, %v2554_v30, %v2550_v17  ;;  %vm2562_vm1 = vweird.f32 %v5126_v37  ;;  %vm2577_vm7 = vmor %vm2575_vm6, %vm2576_vm4 }
 0x56c   : > { %v2572_v1 = vsub.f32 1.0, %v2571_v28  ;;  %v2597_v43 = vmul.f32 %v6888_v36, %v2555_v51  ;;  %vm2563_vm3 = vmor %vm2561_vm2, %vm2562_vm1  ;;  %v2581_v36 = vand.u32 2147483648, %v2359_v38 }
 0x56d   : > { %v2558_v47 = vsub.f32 1.0, %v2557_v49  ;;  %v2837_v49 = vld [vmem:[#allocation2 + $0x68] sm:$0xff] }
 0x56e   : > { %v2573_v18 = vmul.f32 %v5124_v20, %v2572_v1  ;;  %4801 = vmatmul.msk.f32.gmra.mxu2 %vm1415_vm0, %v2597_v43  ;;  %2903 = vmatmul.f32.gmra.mxu0 %v6717_v11  ;;  %v2626_v11 = vpop.f32.mrf.mxu0  ;;  %v2582_v2 = vor.u32 1.1754944e-38, %v2581_v36  ;;  %v2838_v43 = vld [vmem:[#allocation2 + $0x8] sm:$0xff]  ;;  %v2840_v36 = vld [vmem:[#allocation2 + $0x40] sm:$0xff] }
 0x56f   : > { %v2559_v7 = vmul.f32 %v5126_v37, %v2558_v47  ;;  %2929 = vmatmul.f32.vlgmr.msra.gmra.mxu1 %v2623_v32 }
 0x570   : > { %v2574_v33 = vadd.f32 %v5124_v20, %v2573_v18 }
 0x571   : > { %v2560_v19 = vadd.f32 %v5126_v37, %v2559_v7 }
 0x572   : > { %v2578_v34 = vsel %vm2577_vm7, %v5124_v20, %v2574_v33 }
 0x573   : > { %v2564_v31 = vsel %vm2563_vm3, %v5126_v37, %v2560_v19  ;;  %v2583_v24 = vsel %vm2580_vm8, %v2582_v2, %v2578_v34 }
 0x574   : > { %v2569_v25 = vsel %vm2566_vm5, %v2568_v29, %v2564_v31  ;;  %v2599_v57 = vmul.f32 %v6907_v61, %v2583_v24 }
 0x575   : > { %v2598_v55 = vmul.f32 %v6910_v41, %v2569_v25  ;;  %v2655_v41 = vpop.f32.mrf.mxu1 }
 0x576   : > { %2906 = vmatmul.f32.gmra.mxu0 %v6719_v53  ;;  %v2710_v53 = vpop.f32.mrf.mxu3  ;;  %v2739_v16 = vpop.f32.mrf.mxu0 }
 0x577   : > { %4802 = vmatmul.msk.f32.vlgmr.msrb.gmra.mxu3 %vm1415_vm0, %v2598_v55  ;;  %2932 = vmatmul.f32.gmra.mxu1 %v2626_v11  ;;  %v2841_v11 = vld [vmem:[#allocation2 + $0x20] sm:$0xff] }
 0x57d   : > { %v2768_v61 = vpop.f32.mrf.mxu1 }
 0x57e   : > { %2909 = vmatmul.f32.gmra.mxu0 %v6723_v56  ;;  %v2713_v60 = vpop.f32.mrf.mxu3  ;;  %v2742_v45 = vpop.f32.mrf.mxu0 }
 0x57f   : > { %4803 = vmatmul.msk.f32.gmra.mxu3 %vm1415_vm0, %v2599_v57  ;;  %2935 = vmatmul.f32.gmra.mxu1 %v2652_v27 }
 0x586   : > { %v2865_v22 = vpop.f32.mrf.mxu0 }
 0x587   : > { %2938 = vmatmul.f32.gmra.mxu1 %v2655_v41  ;;  %v2842_v41 = vld [vmem:[#allocation2 + $0x10] sm:$0xff] }
 0x58a   : > { %v2797_v13 = vpop.f32.mrf.mxu2 }
 0x58e   : > { %v2868_v54 = vpop.f32.mrf.mxu0 }
 0x58f   : > { %2941 = vmatmul.f32.gmra.mxu1 %v2681_v52 }
 0x596   : > { %v2871_v62 = vpop.f32.mrf.mxu0 }
 0x597   : > { %2944 = vmatmul.f32.gmra.mxu1 %v2684_v5 }
 0x59e   : > { %v2874_v10 = vpop.f32.mrf.mxu0 }
 0x59f   : > { %2947 = vmatmul.f32.gmra.mxu1 %v2710_v53 }
 0x5a6   : > { %v2877_v21 = vpop.f32.mrf.mxu0 }
 0x5a7   : > { %2950 = vmatmul.f32.gmra.mxu1 %v2713_v60 }
 0x5ae   : > { %v2880_v20 = vpop.f32.mrf.mxu0 }
 0x5af   : > { %2953 = vmatmul.f32.gmra.mxu1 %v2739_v16  ;;  %v2843_v16 = vld [vmem:[#allocation2 + $0x38] sm:$0xff] }
 0x5b6   : > { %v2883_v17 = vpop.f32.mrf.mxu0 }
 0x5b7   : > { %2956 = vmatmul.f32.gmra.mxu1 %v2742_v45 }
 0x5be   : > { %v2886_v18 = vpop.f32.mrf.mxu0 }
 0x5bf   : > { %2959 = vmatmul.f32.gmra.mxu1 %v2768_v61 }
 0x5c6   : > { %v2889_v31 = vpop.f32.mrf.mxu0 }
 0x5ce   : > { %v2892_v34 = vpop.f32.mrf.mxu0 }
 0x5d6   : > { %v2895_v27 = vpop.f32.mrf.mxu0 }
 0x5de   : > { %v2898_v60 = vpop.f32.mrf.mxu0 }
 0x5e3   : > { %v2771_v56 = vpop.f32.mrf.mxu1 }
 0x5e4   : > { %2962 = vmatmul.f32.gmra.mxu1 %v2771_v56  ;;  %v2844_v56 = vld [vmem:[#allocation2 + $0x60] sm:$0xff] }
 0x5ec   : > { %v2930_v48 = vpop.f32.mrf.mxu1  ;;  %2965 = vmatmul.f32.gmra.mxu1 %v2797_v13 }
 0x5ed   : > { %v2931_v4 = vadd.f32 %v2930_v48, %v2865_v22  ;;  %v2901_v22 = vpop.f32.mrf.mxu0 }
 0x5ef   : > { %v2978_v44 = vadd.f32 %v2931_v4, %v2832_v0  ;;  %v2845_v4 = vld [vmem:[#allocation2 + $0x70] sm:$0xff] }
 0x5f1   : > { %2994 = vst [vmem:[#allocation2 + $0x30] sm:$0xff] %v2978_v44  ;;  %v2800_v35 = vpop.f32.mrf.mxu2 }
 0x5f4   : > { %v2933_v59 = vpop.f32.mrf.mxu1  ;;  %2968 = vmatmul.f32.gmra.mxu1 %v2800_v35 }
 0x5f5   : > { %v2934_v12 = vadd.f32 %v2933_v59, %v2868_v54  ;;  %v2904_v48 = vpop.f32.mrf.mxu0 }
 0x5f7   : > { %v2979_v15 = vadd.f32 %v2934_v12, %v2833_v26  ;;  %v2846_v12 = vld [vmem:[#allocation2 + $0x78] sm:$0xff] }
 0x5f9   : > { %2995 = vst [vmem:[#allocation2] sm:$0xff] %v2979_v15 }
 0x5fa   : > { %v2826_v38 = vpop.f32.mrf.mxu3 }
 0x5fc   : > { %v2936_v39 = vpop.f32.mrf.mxu1  ;;  %2971 = vmatmul.f32.gmra.mxu1 %v2826_v38 }
 0x5fd   : > { %v2937_v58 = vadd.f32 %v2936_v39, %v2871_v62  ;;  %v2907_v59 = vpop.f32.mrf.mxu0  ;;  %v2847_v39 = vld [vmem:[#allocation2 + $0x28] sm:$0xff] }
 0x5ff   : > { %v2980_v14 = vadd.f32 %v2937_v58, %v2834_v50 }
 0x601   : > { %2996 = vst [vmem:[#allocation2 + $0x58] sm:$0xff] %v2980_v14 }
 0x602   : > { %v2829_v46 = vpop.f32.mrf.mxu3 }
 0x604   : > { %v2939_v42 = vpop.f32.mrf.mxu1  ;;  %2974 = vmatmul.f32.gmra.mxu1 %v2829_v46 }
 0x605   : > { %v2940_v6 = vadd.f32 %v2939_v42, %v2874_v10  ;;  %v2910_v50 = vpop.f32.mrf.mxu0 }
 0x607   : > { %v2981_v8 = vadd.f32 %v2940_v6, %v2835_v9 }
 0x609   : > { %2997 = vst [vmem:[#allocation2 + $0x18] sm:$0xff] %v2981_v8 }
 0x60c   : > { %v2942_v37 = vpop.f32.mrf.mxu1 }
 0x60d   : > { %v2943_v30 = vadd.f32 %v2942_v37, %v2877_v21 }
 0x60f   : > { %v2982_v28 = vadd.f32 %v2943_v30, %v2836_v3 }
 0x611   : > { %2998 = vst [vmem:[#allocation2 + $0x50] sm:$0xff] %v2982_v28 }
 0x614   : > { %v2945_v1 = vpop.f32.mrf.mxu1 }
 0x615   : > { %v2946_v51 = vadd.f32 %v2945_v1, %v2880_v20 }
 0x617   : > { %v2983_v47 = vadd.f32 %v2946_v51, %v2837_v49 }
 0x619   : > { %2999 = vst [vmem:[#allocation2 + $0x68] sm:$0xff] %v2983_v47 }
 0x61c   : > { %v2948_v32 = vpop.f32.mrf.mxu1 }
 0x61d   : > { %v2949_v40 = vadd.f32 %v2948_v32, %v2883_v17 }
 0x61f   : > { %v2984_v7 = vadd.f32 %v2949_v40, %v2838_v43 }
 0x621   : > { %3000 = vst [vmem:[#allocation2 + $0x8] sm:$0xff] %v2984_v7 }
 0x624   : > { %v2951_v19 = vpop.f32.mrf.mxu1 }
 0x625   : > { %v2952_v29 = vadd.f32 %v2951_v19, %v2886_v18 }
 0x627   : > { %v2985_v33 = vadd.f32 %v2952_v29, %v2839_v23 }
 0x629   : > { %3001 = vst [vmem:[#allocation2 + $0x48] sm:$0xff] %v2985_v33 }
 0x62c   : > { %v2954_v25 = vpop.f32.mrf.mxu1 }
 0x62d   : > { %v2955_v63 = vadd.f32 %v2954_v25, %v2889_v31 }
 0x62f   : > { %v2986_v55 = vadd.f32 %v2955_v63, %v2840_v36 }
 0x631   : > { %3002 = vst [vmem:[#allocation2 + $0x40] sm:$0xff] %v2986_v55 }
 0x634   : > { %v2957_v2 = vpop.f32.mrf.mxu1 }
 0x635   : > { %v2958_v24 = vadd.f32 %v2957_v2, %v2892_v34 }
 0x637   : > { %v2987_v57 = vadd.f32 %v2958_v24, %v2841_v11 }
 0x639   : > { %3003 = vst [vmem:[#allocation2 + $0x20] sm:$0xff] %v2987_v57 }
 0x63c   : > { %v2960_v52 = vpop.f32.mrf.mxu1 }
 0x63d   : > { %v2961_v5 = vadd.f32 %v2960_v52, %v2895_v27 }
 0x63f   : > { %v2988_v53 = vadd.f32 %v2961_v5, %v2842_v41 }
 0x641   : > { %3004 = vst [vmem:[#allocation2 + $0x10] sm:$0xff] %v2988_v53 }
 0x661   : > { %v2963_v45 = vpop.f32.mrf.mxu1 }
 0x662   : > { %v2964_v61 = vadd.f32 %v2963_v45, %v2898_v60 }
 0x664   : > { %v2989_v54 = vadd.f32 %v2964_v61, %v2843_v16 }
 0x666   : > { %3005 = vst [vmem:[#allocation2 + $0x38] sm:$0xff] %v2989_v54 }
 0x669   : > { %v2966_v13 = vpop.f32.mrf.mxu1 }
 0x66a   : > { %v2967_v62 = vadd.f32 %v2966_v13, %v2901_v22 }
 0x66c   : > { %v2990_v0 = vadd.f32 %v2967_v62, %v2844_v56 }
 0x66e   : > { %3006 = vst [vmem:[#allocation2 + $0x60] sm:$0xff] %v2990_v0 }
 0x671   : > { %v2969_v44 = vpop.f32.mrf.mxu1 }
 0x672   : > { %v2970_v35 = vadd.f32 %v2969_v44, %v2904_v48 }
 0x674   : > { %v2991_v26 = vadd.f32 %v2970_v35, %v2845_v4 }
 0x676   : > { %3007 = vst [vmem:[#allocation2 + $0x70] sm:$0xff] %v2991_v26 }
 0x679   : > { %v2972_v10 = vpop.f32.mrf.mxu1 }
 0x67a   : > { %v2973_v15 = vadd.f32 %v2972_v10, %v2907_v59 }
 0x67c   : > { %v2992_v38 = vadd.f32 %v2973_v15, %v2846_v12 }
 0x67e   : > { %3008 = vst [vmem:[#allocation2 + $0x78] sm:$0xff] %v2992_v38 }
 0x681   : > { %v2975_v58 = vpop.f32.mrf.mxu1 }
 0x682   : > { %v2976_v14 = vadd.f32 %v2975_v58, %v2910_v50  ;;  %3013 = sbr.rel (%p4804_p5) target bundleno = 2753 (0xac1), region = 104 }
 0x684   : > { %v2993_v21 = vadd.f32 %v2976_v14, %v2847_v39 }
 0x686   : > { %3009 = vst [vmem:[#allocation2 + $0x28] sm:$0xff] %v2993_v21 }
 0x687   : > { %v3032_v46 = vld [vmem:[#allocation2 + $0x58] sm:$0xff]  ;;  %v3016_v9 = vld [vmem:[%s5815_s20 + $0x10] sm:$0xff]  ;;  %v6984_v42 = vld [vmem:[%s7984_s25] ss:$0 sm:$0xff]  ;;  %v5529_v34 = vmov 128.0  }
 0x688   : > { %v3030_v6 = vld [vmem:[#allocation2 + $0x30] sm:$0xff]  ;;  %v3014_v8 = vld [vmem:[%s5815_s20] sm:$0xff]  ;;  %v3052_v37 = vadd.f32 %v6984_v42, %v3032_v46  ;;  %v3033_v49 = vld [vmem:[#allocation2 + $0x18] sm:$0xff]  ;;  %5133 = vrcp.f32 %v5529_v34 }
 0x689   : > { %v3018_v20 = vld [vmem:[%s5815_s20 + $0x20] sm:$0xff]  ;;  %v3034_v3 = vld [vmem:[#allocation2 + $0x50] sm:$0xff]  ;;  %v3050_v30 = vadd.f32 %v6984_v42, %v3030_v6  ;;  %v3035_v43 = vld [vmem:[#allocation2 + $0x68] sm:$0xff]  ;;  %v3053_v40 = vadd.f32 %v6984_v42, %v3033_v49 }
 0x68a   : > { %v3054_v28 = vadd.f32 %v6984_v42, %v3034_v3  ;;  %v3031_v17 = vld [vmem:[#allocation2] sm:$0xff]  ;;  %v3068_v1 = vadd.f32 %v3052_v37, %v3016_v9  ;;  %v3015_v18 = vld [vmem:[%s5815_s20 + $0x8] sm:$0xff]  ;;  %v3055_v7 = vadd.f32 %v6984_v42, %v3035_v43  ;;  %v3017_v23 = vld [vmem:[%s5815_s20 + $0x18] sm:$0xff] }
 0x68b   : > { %v3066_v51 = vadd.f32 %v3050_v30, %v3014_v8  ;;  %v3051_v32 = vadd.f32 %v6984_v42, %v3031_v17  ;;  %v3019_v19 = vld [vmem:[%s5815_s20 + $0x28] sm:$0xff]  ;;  %v3069_v33 = vadd.f32 %v3053_v40, %v3017_v23  ;;  %v3020_v63 = vld [vmem:[%s5815_s20 + $0x30] sm:$0xff]  ;;  %v3039_v22 = vld [vmem:[#allocation2 + $0x20] sm:$0xff] }
 0x68c   : > { %v6991_v47 = vadd.f32 %v3054_v28, %v3018_v20  ;;  %3088 = vadd.xlane.f32.xlu1 %v3068_v1  ;;  %v3071_v31 = vadd.f32 %v3055_v7, %v3019_v19  ;;  %v3036_v36 = vld [vmem:[#allocation2 + $0x8] sm:$0xff]  ;;  %v3059_v62 = vadd.f32 %v6984_v42, %v3039_v22  ;;  %v3021_v44 = vld [vmem:[%s5815_s20 + $0x38] sm:$0xff]  ;;  %v3038_v58 = vld [vmem:[#allocation2 + $0x40] sm:$0xff] }
 0x68d   : > { %3084 = vadd.xlane.f32.xlu0 %v3066_v51  ;;  %v3067_v29 = vadd.f32 %v3051_v32, %v3015_v18  ;;  %v3056_v25 = vadd.f32 %v6984_v42, %v3036_v36  ;;  %v3037_v54 = vld [vmem:[#allocation2 + $0x48] sm:$0xff]  ;;  %v3510_v9 = vld [vmem:[#allocation12 + $0x1e8] sm:$0xff]  ;;  %v3511_v6 = vld [vmem:[#allocation12 + $0x1f0] sm:$0xff]  ;;  %v3058_v8 = vadd.f32 %v6984_v42, %v3038_v58 }
 0x68e   : > { %3092 = vadd.xlane.f32.xlu2 %v6991_v47  ;;  %v5134_v11 = vpop.eup %5133  ;;  %v3023_v0 = vld [vmem:[%s5815_s20 + $0x48] sm:$0xff]  ;;  %v3057_v48 = vadd.f32 %v6984_v42, %v3037_v54  ;;  %v3506_v37 = vld [vmem:[#allocation12 + $0x1c8] sm:$0xff]  ;;  %v3022_v30 = vld [vmem:[%s5815_s20 + $0x40] sm:$0xff]  ;;  %3588 = vmatpush.msra.mxu1 %v3510_v9 }
 0x68f   : > { %v7002_v55 = vadd.f32 %v3056_v25, %v3020_v63  ;;  %v3117_v2 = vmul.f32 128.0, %v5134_v11  ;;  %vm3121_vm0 = vweird.f32 %v5134_v11  ;;  %v7022_v12 = vadd.f32 %v3059_v62, %v3023_v0  ;;  %v3509_v46 = vld [vmem:[#allocation12 + $0x1e0] sm:$0xff]  ;;  %v3512_v20 = vld [vmem:[#allocation12 + $0x1f8] sm:$0xff]  ;;  %3653 = vmatpush.msra.mxu2 %v3511_v6  ;;  %v3507_v28 = vld [vmem:[#allocation12 + $0x1d0] sm:$0xff] }
 0x690   : > { %v7026_v15 = vadd.f32 %v3057_v48, %v3021_v44  ;;  %3523 = vmatpush.msra.mxu0 %v3509_v46  ;;  %v3505_v3 = vld [vmem:[#allocation12 + $0x1c0] sm:$0xff]  ;;  %v3508_v17 = vld [vmem:[#allocation12 + $0x1d8] sm:$0xff]  ;;  %3718 = vmatpush.msra.mxu3 %v3512_v20  ;;  %v7045_v43 = vadd.f32 %v3058_v8, %v3022_v30  ;;  %v3041_v34 = vld [vmem:[#allocation2 + $0x38] sm:$0xff] }
 0x691   : > { %v3118_v24 = vsub.f32 1.0, %v3117_v2  ;;  %3589 = vmatpush.msra.mxu1 %v3506_v37  ;;  %3654 = vmatpush.msra.mxu2 %v3507_v28  ;;  %v3040_v32 = vld [vmem:[#allocation2 + $0x10] sm:$0xff]  ;;  %v3042_v40 = vld [vmem:[#allocation2 + $0x60] sm:$0xff]  ;;  %v3025_v2 = vld [vmem:[%s5815_s20 + $0x58] sm:$0xff] }
 0x692   : > { %3524 = vmatpush.msra.mxu0 %v3505_v3  ;;  %3719 = vmatpush.msra.mxu3 %v3508_v17  ;;  %v3060_v18 = vadd.f32 %v6984_v42, %v3040_v32  ;;  %v3062_v7 = vadd.f32 %v6984_v42, %v3042_v40  ;;  %v3024_v19 = vld [vmem:[%s5815_s20 + $0x50] sm:$0xff]  ;;  %v3504_v22 = vld [vmem:[#allocation12 + $0x1b8] sm:$0xff]  ;;  %v3487_v58 = vld [vmem:[#allocation12 + $0x130] sm:$0xff] }
 0x693   : > { %v3119_v57 = vmul.f32 %v5134_v11, %v3118_v24  ;;  %v3497_v54 = vld [vmem:[#allocation12 + $0x180] sm:$0xff]  ;;  %v3500_v62 = vld [vmem:[#allocation12 + $0x198] sm:$0xff]  ;;  %v3494_v48 = vld [vmem:[#allocation12 + $0x168] sm:$0xff] }
 0x694   : > { %3090 = vadd.xlane.f32.xlu1 %v3069_v33  ;;  %3720 = vmatpush.msra.mxu3 %v3504_v22  ;;  %v3493_v0 = vld [vmem:[#allocation12 + $0x160] sm:$0xff]  ;;  %v3496_v44 = vld [vmem:[#allocation12 + $0x178] sm:$0xff]  ;;  %v3482_v6 = vld [vmem:[#allocation12 + $0x108] sm:$0xff] }
 0x695   : > { %3086 = vadd.xlane.f32.xlu0 %v3067_v29  ;;  %v3120_v27 = vadd.f32 %v5134_v11, %v3119_v57  ;;  %v3488_v46 = vld [vmem:[#allocation12 + $0x138] sm:$0xff]  ;;  %v3481_v9 = vld [vmem:[#allocation12 + $0x100] sm:$0xff]  ;;  %v3483_v8 = vld [vmem:[#allocation12 + $0x110] sm:$0xff] }
 0x696   : > { %3094 = vadd.xlane.f32.xlu2 %v3071_v31  ;;  %3721 = vmatpush.msra.mxu3 %v3500_v62  ;;  %v3484_v20 = vld [vmem:[#allocation12 + $0x118] sm:$0xff]  ;;  %v3477_v3 = vld [vmem:[#allocation12 + $0xe0] sm:$0xff]  ;;  %v3478_v37 = vld [vmem:[#allocation12 + $0xe8] sm:$0xff] }
 0x697   : > { %v7005_v41 = vsel %vm3121_vm0, %v5134_v11, %v3120_v27  ;;  %v3061_v11 = vadd.f32 %v6984_v42, %v3041_v34  ;;  %v3043_v27 = vld [vmem:[#allocation2 + $0x70] sm:$0xff]  ;;  %v3479_v30 = vld [vmem:[#allocation12 + $0xf0] sm:$0xff]  ;;  %v3480_v28 = vld [vmem:[#allocation12 + $0xf8] sm:$0xff] }
 0x698   : > { %3722 = vmatpush.msra.mxu3 %v3496_v44  ;;  %v3473_v17 = vld [vmem:[#allocation12 + $0xc0] sm:$0xff]  ;;  %v3470_v40 = vld [vmem:[#allocation12 + $0xa8] sm:$0xff]  ;;  %v3456_v22 = vld [vmem:[#allocation12 + $0x38] sm:$0xff] }
 0x699   : > { %v7071_v57 = vadd.f32 %v3061_v11, %v3025_v2  ;;  %v3469_v32 = vld [vmem:[#allocation12 + $0xa0] sm:$0xff]  ;;  %v3462_v34 = vld [vmem:[#allocation12 + $0x68] sm:$0xff]  ;;  %v3463_v11 = vld [vmem:[#allocation12 + $0x70] sm:$0xff] }
 0x69a   : > { %v3464_v2 = vld [vmem:[#allocation12 + $0x78] sm:$0xff] }
 0x69b   : > { %v3452_v62 = vld [vmem:[#allocation12 + $0x18] sm:$0xff] }
 0x69c   : > { %3096 = vadd.xlane.f32.xlu1 %v7002_v55 }
 0x6ff   : > { %v3089_v52 = vpop.xlane.xlu1 %3088 }
 0x700   : > { %v3085_v5 = vpop.xlane.xlu0 %3084  ;;  %v3125_v53 = vmul.f32 %v7005_v41, %v3089_v52  ;;  %v3063_v52 = vadd.f32 %v6984_v42, %v3043_v27  ;;  %v3458_v27 = vld [vmem:[#allocation12 + $0x48] sm:$0xff] }
 0x701   : > { %v3123_v60 = vmul.f32 %v7005_v41, %v3085_v5  ;;  %v3093_v16 = vpop.xlane.xlu2 %3092  ;;  %v3027_v5 = vld [vmem:[%s5815_s20 + $0x68] sm:$0xff] }
 0x702   : > { %v7009_v45 = vsub.f32 %v3068_v1, %v3125_v53  ;;  %v3501_v53 = vld [vmem:[#allocation12 + $0x1a0] sm:$0xff] }
 0x703   : > { %v7011_v61 = vsub.f32 %v3066_v51, %v3123_v60  ;;  %v3127_v51 = vmul.f32 %v7005_v41, %v3093_v16  ;;  %v3502_v60 = vld [vmem:[#allocation12 + $0x1a8] sm:$0xff]  ;;  %v3503_v16 = vld [vmem:[#allocation12 + $0x1b0] sm:$0xff]  ;;  %3525 = vmatpush.msra.mxu0 %v3501_v53  ;;  %v3453_v53 = vld [vmem:[#allocation12 + $0x20] sm:$0xff] }
 0x704   : > { %v3157_v56 = vmul.f32 %v7009_v45, %v7009_v45  ;;  %3590 = vmatpush.msra.mxu1 %v3502_v60  ;;  %3655 = vmatpush.msra.mxu2 %v3503_v16  ;;  %v3454_v60 = vld [vmem:[#allocation12 + $0x28] sm:$0xff]  ;;  %v3455_v16 = vld [vmem:[#allocation12 + $0x30] sm:$0xff] }
 0x705   : > { %v3155_v13 = vmul.f32 %v7011_v61, %v7011_v61  ;;  %v7050_v23 = vsub.f32 %v6991_v47, %v3127_v51  ;;  %3526 = vmatpush.msra.mxu0 %v3497_v54  ;;  %v3476_v51 = vld [vmem:[#allocation12 + $0xd8] sm:$0xff]  ;;  %v3449_v54 = vld [vmem:[#allocation12] sm:$0xff] }
 0x706   : > { %3175 = vadd.xlane.f32.xlu1 %v3157_v56  ;;  %v3498_v56 = vld [vmem:[#allocation12 + $0x188] sm:$0xff] }
 0x707   : > { %3171 = vadd.xlane.f32.xlu0 %v3155_v13  ;;  %v3091_v35 = vpop.xlane.xlu1 %3090  ;;  %v3159_v63 = vmul.f32 %v7050_v23, %v7050_v23  ;;  %v3499_v13 = vld [vmem:[#allocation12 + $0x190] sm:$0xff]  ;;  %3591 = vmatpush.msra.mxu1 %v3498_v56  ;;  %v3450_v56 = vld [vmem:[#allocation12 + $0x8] sm:$0xff] }
 0x708   : > { %v3087_v4 = vpop.xlane.xlu0 %3086  ;;  %v3126_v50 = vmul.f32 %v7005_v41, %v3091_v35  ;;  %3656 = vmatpush.msra.mxu2 %v3499_v13  ;;  %3527 = vmatpush.msra.mxu0 %v3493_v0  ;;  %v3489_v35 = vld [vmem:[#allocation12 + $0x140] sm:$0xff]  ;;  %v3451_v13 = vld [vmem:[#allocation12 + $0x10] sm:$0xff] }
 0x709   : > { %v3124_v26 = vmul.f32 %v7005_v41, %v3087_v4  ;;  %v3095_v59 = vpop.xlane.xlu2 %3094  ;;  %v3495_v4 = vld [vmem:[#allocation12 + $0x170] sm:$0xff]  ;;  %3592 = vmatpush.msra.mxu1 %v3494_v48 }
 0x70a   : > { %v3128_v38 = vmul.f32 %v7005_v41, %v3095_v59  ;;  %v7036_v21 = vsub.f32 %v3069_v33, %v3126_v50  ;;  %v3026_v33 = vld [vmem:[%s5815_s20 + $0x60] sm:$0xff]  ;;  %3657 = vmatpush.msra.mxu2 %v3495_v4  ;;  %3528 = vmatpush.msra.mxu0 %v3489_v35  ;;  %v3485_v50 = vld [vmem:[#allocation12 + $0x120] sm:$0xff] }
 0x70b   : > { %v7024_v10 = vsub.f32 %v3067_v29, %v3124_v26  ;;  %v7058_v25 = vadd.f32 %v3062_v7, %v3026_v33  ;;  %v3490_v26 = vld [vmem:[#allocation12 + $0x148] sm:$0xff]  ;;  %v3491_v59 = vld [vmem:[#allocation12 + $0x150] sm:$0xff]  ;;  %v3472_v7 = vld [vmem:[#allocation12 + $0xb8] sm:$0xff] }
 0x70c   : > { %v7034_v14 = vsub.f32 %v3071_v31, %v3128_v38  ;;  %v3158_v1 = vmul.f32 %v7036_v21, %v7036_v21  ;;  %v7055_v31 = vadd.f32 %v3060_v18, %v3024_v19  ;;  %3593 = vmatpush.msra.mxu1 %v3490_v26  ;;  %v3492_v38 = vld [vmem:[#allocation12 + $0x158] sm:$0xff]  ;;  %3658 = vmatpush.msra.mxu2 %v3491_v59  ;;  %v3471_v18 = vld [vmem:[#allocation12 + $0xb0] sm:$0xff]  ;;  %v3465_v19 = vld [vmem:[#allocation12 + $0x80] sm:$0xff] }
 0x70d   : > { %v3156_v39 = vmul.f32 %v7024_v10, %v7024_v10  ;;  %3723 = vmatpush.msra.mxu3 %v3492_v38  ;;  %3529 = vmatpush.msra.mxu0 %v3485_v50  ;;  %v3467_v33 = vld [vmem:[#allocation12 + $0x90] sm:$0xff] }
 0x70e   : > { %3102 = vadd.xlane.f32.xlu1 %v7022_v12  ;;  %v3160_v49 = vmul.f32 %v7034_v14, %v7034_v14  ;;  %3659 = vmatpush.msra.mxu2 %v3487_v58 }
 0x70f   : > { %3098 = vadd.xlane.f32.xlu0 %v7026_v15  ;;  %3173 = vadd.xlane.f32.xlu2 %v3156_v39  ;;  %v3097_v29 = vpop.xlane.xlu1 %3096  ;;  %v3486_v39 = vld [vmem:[#allocation12 + $0x128] sm:$0xff] }
 0x710   : > { %v3129_v36 = vmul.f32 %v7005_v41, %v3097_v29  ;;  %3594 = vmatpush.msra.mxu1 %v3486_v39  ;;  %3724 = vmatpush.msra.mxu3 %v3488_v46  ;;  %v3466_v29 = vld [vmem:[#allocation12 + $0x88] sm:$0xff] }
 0x711   : > { %3530 = vmatpush.msra.mxu0 %v3481_v9  ;;  %3660 = vmatpush.msra.mxu2 %v3483_v8 }
 0x712   : > { %v7064_v47 = vsub.f32 %v7002_v55, %v3129_v36  ;;  %v7076_v55 = vadd.f32 %v3063_v52, %v3027_v5  ;;  %3595 = vmatpush.msra.mxu1 %v3482_v6  ;;  %3725 = vmatpush.msra.mxu3 %v3484_v20  ;;  %v3468_v36 = vld [vmem:[#allocation12 + $0x98] sm:$0xff]  ;;  %v3459_v52 = vld [vmem:[#allocation12 + $0x50] sm:$0xff] }
 0x713   : > { %3531 = vmatpush.msra.mxu0 %v3477_v3  ;;  %3661 = vmatpush.msra.mxu2 %v3479_v30  ;;  %v3460_v5 = vld [vmem:[#allocation12 + $0x58] sm:$0xff]  ;;  %v3044_v20 = vld [vmem:[#allocation2 + $0x78] sm:$0xff] }
 0x714   : > { %v3161_v24 = vmul.f32 %v7064_v47, %v7064_v47  ;;  %3596 = vmatpush.msra.mxu1 %v3478_v37  ;;  %3726 = vmatpush.msra.mxu3 %v3480_v28 }
 0x715   : > { %3532 = vmatpush.msra.mxu0 %v3473_v17 }
 0x716   : > { %3181 = vadd.xlane.f32.xlu1 %v3160_v49  ;;  %v3474_v49 = vld [vmem:[#allocation12 + $0xc8] sm:$0xff]  ;;  %3727 = vmatpush.msra.mxu3 %v3476_v51 }
 0x717   : > { %3177 = vadd.xlane.f32.xlu0 %v3158_v1  ;;  %3100 = vadd.xlane.f32.xlu2 %v7045_v43  ;;  %v3475_v1 = vld [vmem:[#allocation12 + $0xd0] sm:$0xff] }
 0x718   : > { %3597 = vmatpush.msra.mxu1 %v3474_v49  ;;  %3662 = vmatpush.msra.mxu2 %v3475_v1  ;;  %v3028_v1 = vld [vmem:[%s5815_s20 + $0x70] sm:$0xff] }
 0x719   : > { %3533 = vmatpush.msra.mxu0 %v3469_v32  ;;  %3728 = vmatpush.msra.mxu3 %v3472_v7 }
 0x71a   : > { %3598 = vmatpush.msra.mxu1 %v3470_v40  ;;  %3663 = vmatpush.msra.mxu2 %v3471_v18 }
 0x71b   : > { %3534 = vmatpush.msra.mxu0 %v3465_v19  ;;  %3729 = vmatpush.msra.mxu3 %v3468_v36  ;;  %v3045_v36 = vld [vmem:[#allocation2 + $0x28] sm:$0xff] }
 0x71c   : > { %3599 = vmatpush.msra.mxu1 %v3466_v29  ;;  %3664 = vmatpush.msra.mxu2 %v3467_v33 }
 0x71d   : > { %3730 = vmatpush.msra.mxu3 %v3464_v2 }
 0x71e   : > { %3108 = vadd.xlane.f32.xlu1 %v7058_v25  ;;  %3600 = vmatpush.msra.mxu1 %v3462_v34 }
 0x71f   : > { %3104 = vadd.xlane.f32.xlu0 %v7055_v31  ;;  %3179 = vadd.xlane.f32.xlu2 %v3159_v63  ;;  %v3461_v63 = vld [vmem:[#allocation12 + $0x60] sm:$0xff] }
 0x720   : > { %3535 = vmatpush.msra.mxu0 %v3461_v63  ;;  %3665 = vmatpush.msra.mxu2 %v3463_v11 }
 0x721   : > { %3601 = vmatpush.msra.mxu1 %v3458_v27  ;;  %3731 = vmatpush.msra.mxu3 %v3460_v5 }
 0x722   : > { %3666 = vmatpush.msra.mxu2 %v3459_v52 }
 0x723   : > { %3602 = vmatpush.msra.mxu1 %v3454_v60  ;;  %3732 = vmatpush.msra.mxu3 %v3456_v22  ;;  %v7122_v60 = vld [vmem:[%s7985_s9] ss:$0 sm:$0xff] }
 0x724   : > { %3667 = vmatpush.msra.mxu2 %v3455_v16  ;;  %v3029_v16 = vld [vmem:[%s5815_s20 + $0x78] sm:$0xff] }
 0x725   : > { %3603 = vmatpush.msra.mxu1 %v3450_v56  ;;  %3733 = vmatpush.msra.mxu3 %v3452_v62 }
 0x726   : > { %3668 = vmatpush.msra.mxu2 %v3451_v13 }
 0x727   : > { %3183 = vadd.xlane.f32.xlu0 %v3161_v24  ;;  %3106 = vadd.xlane.f32.xlu2 %v7071_v57  ;;  %v3457_v24 = vld [vmem:[#allocation12 + $0x40] sm:$0xff] }
 0x728   : > { %3536 = vmatpush.msra.mxu0 %v3457_v24 }
 0x72a   : > { %3537 = vmatpush.msra.mxu0 %v3453_v53  ;;  %v3065_v53 = vadd.f32 %v6984_v42, %v3045_v36 }
 0x72c   : > { %3538 = vmatpush.msra.mxu0 %v3449_v54 }
 0x72f   : > { %3110 = vadd.xlane.f32.xlu0 %v7076_v55 }
 0x779   : > { %v3176_v0 = vpop.xlane.xlu1 %3175 }
 0x77a   : > { %v3172_v48 = vpop.xlane.xlu0 %3171  ;;  %v3205_v4 = vmul.f32 %v3176_v0, %v7005_v41  ;;  %v7135_v0 = vld [vmem:[%s7986_s8] ss:$0 sm:$0xff] }
 0x77b   : > { %v3203_v44 = vmul.f32 %v3172_v48, %v7005_v41 }
 0x77c   : > { %v7081_v35 = vadd.f32 1e-05, %v3205_v4 }
 0x77d   : > { %v3219_v26 = vadd.f32 1e-05, %v3203_v44 }
 0x77e   : > { %5135 = vrsqrt.f32 %v7081_v35  ;;  %vm3261_vm12 = vweird.f32 %v7081_v35 }
 0x77f   : > { %5137 = vrsqrt.f32 %v3219_v26  ;;  %vm3241_vm10 = vweird.f32 %v3219_v26 }
 0x781   : > { %v3103_v59 = vpop.xlane.xlu1 %3102 }
 0x782   : > { %v3099_v38 = vpop.xlane.xlu0 %3098  ;;  %v3132_v50 = vmul.f32 %v7005_v41, %v3103_v59  ;;  %v3174_v39 = vpop.xlane.xlu2 %3173 }
 0x783   : > { %v3130_v58 = vmul.f32 %v7005_v41, %v3099_v38  ;;  %v3204_v46 = vmul.f32 %v3174_v39, %v7005_v41 }
 0x784   : > { %v7087_v9 = vpop.eup %5135  ;;  %v7090_v6 = vsub.f32 %v7022_v12, %v3132_v50  ;;  %v3064_v12 = vadd.f32 %v6984_v42, %v3044_v20 }
 0x785   : > { %v7093_v8 = vsub.f32 %v7026_v15, %v3130_v58  ;;  %v5138_v3 = vpop.eup %5137  ;;  %v3256_v37 = vmul.f32 %v7087_v9, %v7081_v35  ;;  %v7097_v30 = vadd.f32 1e-05, %v3204_v46  ;;  %vm3262_vm13 = vweird.f32 %v7087_v9 }
 0x786   : > { %v3236_v28 = vmul.f32 %v5138_v3, %v3219_v26  ;;  %v3164_v17 = vmul.f32 %v7090_v6, %v7090_v6  ;;  %v7109_v33 = vadd.f32 %v3064_v12, %v3028_v1  ;;  %vm3242_vm9 = vweird.f32 %v5138_v3  ;;  %vm7157_vm1 = vmor %vm3261_vm12, %vm3262_vm13 }
 0x787   : > { %v3162_v49 = vmul.f32 %v7093_v8, %v7093_v8  ;;  %5139 = vrsqrt.f32 %v7097_v30  ;;  %v3257_v51 = vmul.f32 %v7087_v9, %v3256_v37  ;;  %vm3243_vm11 = vmor %vm3241_vm10, %vm3242_vm9  ;;  %v7138_v26 = vadd.f32 %v3065_v53, %v3029_v16 }
 0x788   : > { %v3237_v15 = vmul.f32 %v5138_v3, %v3236_v28  ;;  %3189 = vadd.xlane.f32.xlu0 %v3164_v17  ;;  %vm3251_vm15 = vweird.f32 %v7097_v30 }
 0x789   : > { %3185 = vadd.xlane.f32.xlu2 %v3162_v49  ;;  %v3182_v32 = vpop.xlane.xlu1 %3181  ;;  %v3258_v24 = vmul.f32 0.5, %v3257_v51 }
 0x78a   : > { %v3178_v40 = vpop.xlane.xlu0 %3177  ;;  %v3238_v18 = vmul.f32 0.5, %v3237_v15  ;;  %v3101_v7 = vpop.xlane.xlu2 %3100  ;;  %v3208_v34 = vmul.f32 %v3182_v32, %v7005_v41 }
 0x78b   : > { %v3206_v19 = vmul.f32 %v3178_v40, %v7005_v41  ;;  %v3131_v29 = vmul.f32 %v7005_v41, %v3101_v7  ;;  %v3259_v13 = vsub.f32 1.5, %v3258_v24 }
 0x78c   : > { %v3239_v63 = vsub.f32 1.5, %v3238_v18  ;;  %v7126_v56 = vadd.f32 1e-05, %v3208_v34 }
 0x78d   : > { %v7112_v11 = vadd.f32 1e-05, %v3206_v19  ;;  %v5140_v2 = vpop.eup %5139  ;;  %v7115_v27 = vsub.f32 %v7045_v43, %v3131_v29  ;;  %v3260_v46 = vmul.f32 %v7087_v9, %v3259_v13 }
 0x78e   : > { %v3240_v52 = vmul.f32 %v5138_v3, %v3239_v63  ;;  %v3246_v5 = vmul.f32 %v5140_v2, %v7097_v30  ;;  %vm3252_vm14 = vweird.f32 %v5140_v2  ;;  %vm3291_vm0 = vweird.f32 %v7126_v56 }
 0x78f   : > { %5141 = vrsqrt.f32 %v7112_v11  ;;  %v3163_v43 = vmul.f32 %v7115_v27, %v7115_v27  ;;  %vm3253_vm2 = vmor %vm3251_vm15, %vm3252_vm14  ;;  %v3264_v51 = vsel %vm7157_vm1, %v7087_v9, %v3260_v46  ;;  %vm3271_vm3 = vweird.f32 %v7112_v11 }
 0x790   : > { %v3244_v22 = vsel %vm3243_vm11, %v5138_v3, %v3240_v52  ;;  %v3247_v54 = vmul.f32 %v5140_v2, %v3246_v5  ;;  %5143 = vrsqrt.f32 %v7126_v56  ;;  %v3397_v63 = vmul.f32 %v3264_v51, %v7009_v45 }
 0x791   : > { %3112 = vadd.xlane.f32.xlu2 %v7109_v33  ;;  %v3395_v42 = vmul.f32 %v3244_v22, %v7011_v61  ;;  %3187 = vadd.xlane.f32.xlu1 %v3163_v43  ;;  %v3109_v38 = vpop.xlane.xlu1 %3108 }
 0x792   : > { %v3105_v62 = vpop.xlane.xlu0 %3104  ;;  %v3248_v48 = vmul.f32 0.5, %v3247_v54  ;;  %v3180_v4 = vpop.xlane.xlu2 %3179  ;;  %v3135_v17 = vmul.f32 %v7005_v41, %v3109_v38  ;;  %v3416_v53 = vmul.f32 %v7122_v60, %v3397_v63 }
 0x793   : > { %v3133_v44 = vmul.f32 %v7005_v41, %v3105_v62  ;;  %v3414_v59 = vmul.f32 %v7122_v60, %v3395_v42  ;;  %v3207_v61 = vmul.f32 %v3180_v4, %v7005_v41 }
 0x794   : > { %v3249_v50 = vsub.f32 1.5, %v3248_v48  ;;  %v7180_v40 = vsub.f32 %v7058_v25, %v3135_v17 }
 0x795   : > { %v7146_v39 = vsub.f32 %v7055_v31, %v3133_v44  ;;  %v7148_v58 = vpop.eup %5141  ;;  %v7152_v35 = vadd.f32 1e-05, %v3207_v61  ;;  %v7155_v20 = vadd.f32 %v7135_v0, %v3414_v59  ;;  %v7225_v44 = vadd.f32 %v7135_v0, %v3416_v53 }
 0x796   : > { %v3250_v37 = vmul.f32 %v5140_v2, %v3249_v50  ;;  %v3266_v31 = vmul.f32 %v7148_v58, %v7112_v11  ;;  %v7173_v1 = vpop.eup %5143  ;;  %vm3272_vm4 = vweird.f32 %v7148_v58  ;;  %v3167_v52 = vmul.f32 %v7180_v40, %v7180_v40 }
 0x797   : > { %v3165_v28 = vmul.f32 %v7146_v39, %v7146_v39  ;;  %5145 = vrsqrt.f32 %v7152_v35  ;;  %3539 = vmatmul.f32.vlgmr.msra.gmra.mxu0 %v7155_v20  ;;  %3604 = vmatmul.f32.vlgmr.msra.gmra.mxu1 %v7155_v20  ;;  %v3286_v25 = vmul.f32 %v7173_v1, %v7126_v56  ;;  %vm7203_vm5 = vmor %vm3271_vm3, %vm3272_vm4  ;;  %vm3281_vm6 = vweird.f32 %v7152_v35 }
 0x798   : > { %v3254_v30 = vsel %vm3253_vm2, %v5140_v2, %v3250_v37  ;;  %v3267_v49 = vmul.f32 %v7148_v58, %v3266_v31  ;;  %3669 = vmatmul.f32.vlgmr.msra.gmra.mxu2 %v7155_v20  ;;  %3734 = vmatmul.f32.vlgmr.msra.gmra.mxu3 %v7155_v20  ;;  %vm3292_vm9 = vweird.f32 %v7173_v1 }
 0x799   : > { %v3396_v12 = vmul.f32 %v3254_v30, %v7024_v10  ;;  %3191 = vadd.xlane.f32.xlu2 %v3165_v28  ;;  %3114 = vadd.xlane.f32.xlu1 %v7138_v26  ;;  %v3287_v22 = vmul.f32 %v7173_v1, %v3286_v25  ;;  %vm3293_vm10 = vmor %vm3291_vm0, %vm3292_vm9 }
 0x79a   : > { %v3184_v15 = vpop.xlane.xlu0 %3183  ;;  %v3268_v32 = vmul.f32 0.5, %v3267_v49  ;;  %v3107_v18 = vpop.xlane.xlu2 %3106 }
 0x79b   : > { %v3209_v7 = vmul.f32 %v3184_v15, %v7005_v41  ;;  %v3415_v19 = vmul.f32 %v7122_v60, %v3396_v12  ;;  %v3134_v10 = vmul.f32 %v7005_v41, %v3107_v18  ;;  %v3288_v59 = vmul.f32 0.5, %v3287_v22 }
 0x79c   : > { %v3269_v29 = vsub.f32 1.5, %v3268_v32 }
 0x79d   : > { %v7187_v36 = vadd.f32 1e-05, %v3209_v7  ;;  %v5146_v9 = vpop.eup %5145  ;;  %v7193_v34 = vsub.f32 %v7071_v57, %v3134_v10  ;;  %v7196_v2 = vadd.f32 %v7135_v0, %v3415_v19 }
 0x79e   : > { %v3270_v24 = vmul.f32 %v7148_v58, %v3269_v29  ;;  %v3276_v11 = vmul.f32 %v5146_v9, %v7152_v35  ;;  %vm3282_vm7 = vweird.f32 %v5146_v9 }
 0x79f   : > { %5147 = vrsqrt.f32 %v7187_v36  ;;  %3542 = vmatmul.f32.gmra.mxu0 %v7196_v2  ;;  %3607 = vmatmul.f32.gmra.mxu1 %v7196_v2  ;;  %v3166_v57 = vmul.f32 %v7193_v34, %v7193_v34  ;;  %vm3283_vm8 = vmor %vm3281_vm6, %vm3282_vm7  ;;  %vm3301_vm11 = vweird.f32 %v7187_v36 }
 0x7a0   : > { %v3277_v5 = vmul.f32 %v5146_v9, %v3276_v11  ;;  %3672 = vmatmul.f32.gmra.mxu2 %v7196_v2  ;;  %3737 = vmatmul.f32.gmra.mxu3 %v7196_v2  ;;  %v3274_v54 = vsel %vm7203_vm5, %v7148_v58, %v3270_v24 }
 0x7a1   : > { %3193 = vadd.xlane.f32.xlu0 %v3166_v57  ;;  %3195 = vadd.xlane.f32.xlu1 %v3167_v52  ;;  %v3398_v4 = vmul.f32 %v3274_v54, %v7036_v21 }
 0x7a2   : > { %v3111_v16 = vpop.xlane.xlu0 %3110  ;;  %v3278_v43 = vmul.f32 0.5, %v3277_v5 }
 0x7a3   : > { %v3136_v13 = vmul.f32 %v7005_v41, %v3111_v16  ;;  %v3417_v21 = vmul.f32 %v7122_v60, %v3398_v4 }
 0x7a4   : > { %v3279_v62 = vsub.f32 1.5, %v3278_v43 }
 0x7a5   : > { %v5148_v42 = vpop.eup %5147  ;;  %v7221_v48 = vsub.f32 %v7076_v55, %v3136_v13  ;;  %v3289_v55 = vsub.f32 1.5, %v3288_v59  ;;  %v7239_v3 = vadd.f32 %v7135_v0, %v3417_v21 }
 0x7a6   : > { %v3280_v61 = vmul.f32 %v5146_v9, %v3279_v62  ;;  %v3296_v38 = vmul.f32 %v5148_v42, %v7187_v36  ;;  %vm3302_vm12 = vweird.f32 %v5148_v42 }
 0x7a7   : > { %v3168_v50 = vmul.f32 %v7221_v48, %v7221_v48  ;;  %3545 = vmatmul.f32.gmra.mxu0 %v7225_v44  ;;  %3610 = vmatmul.f32.gmra.mxu1 %v7225_v44  ;;  %v3290_v37 = vmul.f32 %v7173_v1, %v3289_v55  ;;  %vm3303_vm13 = vmor %vm3301_vm11, %vm3302_vm12 }
 0x7a8   : > { %3675 = vmatmul.f32.gmra.mxu2 %v7225_v44  ;;  %3740 = vmatmul.f32.gmra.mxu3 %v7225_v44  ;;  %v3284_v58 = vsel %vm3283_vm8, %v5146_v9, %v3280_v61  ;;  %v3297_v46 = vmul.f32 %v5148_v42, %v3296_v38 }
 0x7a9   : > { %3197 = vadd.xlane.f32.xlu2 %v3168_v50  ;;  %v3399_v35 = vmul.f32 %v3284_v58, %v7050_v23  ;;  %v3294_v28 = vsel %vm3293_vm10, %v7173_v1, %v3290_v37 }
 0x7aa   : > { %v3298_v31 = vmul.f32 0.5, %v3297_v46  ;;  %v3400_v17 = vmul.f32 %v3294_v28, %v7034_v14 }
 0x7ab   : > { %v3418_v56 = vmul.f32 %v7122_v60, %v3399_v35 }
 0x7ac   : > { %v3299_v23 = vsub.f32 1.5, %v3298_v31  ;;  %v3419_v12 = vmul.f32 %v7122_v60, %v3400_v17 }
 0x7ad   : > { %v7251_v30 = vadd.f32 %v7135_v0, %v3418_v56 }
 0x7ae   : > { %v3300_v49 = vmul.f32 %v5148_v42, %v3299_v23  ;;  %v7260_v14 = vadd.f32 %v7135_v0, %v3419_v12 }
 0x7af   : > { %3548 = vmatmul.f32.gmra.mxu0 %v7239_v3  ;;  %3613 = vmatmul.f32.gmra.mxu1 %v7239_v3 }
 0x7b0   : > { %3678 = vmatmul.f32.gmra.mxu2 %v7239_v3  ;;  %3743 = vmatmul.f32.gmra.mxu3 %v7239_v3  ;;  %v3304_v15 = vsel %vm3303_vm13, %v5148_v42, %v3300_v49 }
 0x7b1   : > { %v3401_v1 = vmul.f32 %v3304_v15, %v7064_v47  ;;  %v3894_v15 = vld [vmem:[#allocation13 + $0x178] sm:$0xff] }
 0x7b2   : > { %4045 = vmatpush.msrb.mxu2 %v3894_v15 }
 0x7b3   : > { %v3420_v51 = vmul.f32 %v7122_v60, %v3401_v1  ;;  %v3862_v1 = vld [vmem:[#allocation13 + $0x78] sm:$0xff] }
 0x7b4   : > { %3915 = vmatpush.msrb.mxu0 %v3862_v1 }
 0x7b5   : > { %v7268_v32 = vadd.f32 %v7135_v0, %v3420_v51 }
 0x7b7   : > { %3551 = vmatmul.f32.gmra.mxu0 %v7251_v30  ;;  %3616 = vmatmul.f32.gmra.mxu1 %v7251_v30 }
 0x7b8   : > { %3681 = vmatmul.f32.gmra.mxu2 %v7251_v30  ;;  %3746 = vmatmul.f32.gmra.mxu3 %v7251_v30 }
 0x7bf   : > { %3554 = vmatmul.f32.gmra.mxu0 %v7260_v14  ;;  %3619 = vmatmul.f32.gmra.mxu1 %v7260_v14 }
 0x7c0   : > { %3684 = vmatmul.f32.gmra.mxu2 %v7260_v14  ;;  %3749 = vmatmul.f32.gmra.mxu3 %v7260_v14 }
 0x7c7   : > { %3557 = vmatmul.f32.gmra.mxu0 %v7268_v32  ;;  %3622 = vmatmul.f32.gmra.mxu1 %v7268_v32 }
 0x7c8   : > { %3687 = vmatmul.f32.gmra.mxu2 %v7268_v32  ;;  %3752 = vmatmul.f32.gmra.mxu3 %v7268_v32 }
 0x7fb   : > { %v3190_v18 = vpop.xlane.xlu0 %3189 }
 0x7fc   : > { %v3186_v47 = vpop.xlane.xlu2 %3185  ;;  %v3212_v19 = vmul.f32 %v3190_v18, %v7005_v41 }
 0x7fd   : > { %v3210_v7 = vmul.f32 %v3186_v47, %v7005_v41 }
 0x7fe   : > { %v3228_v29 = vadd.f32 1e-05, %v3212_v19  ;;  %v3878_v19 = vld [vmem:[#allocation13 + $0xf8] sm:$0xff] }
 0x7ff   : > { %v3226_v10 = vadd.f32 1e-05, %v3210_v7  ;;  %v3910_v7 = vld [vmem:[#allocation13 + $0x1f8] sm:$0xff]  ;;  %3980 = vmatpush.msrb.mxu1 %v3878_v19 }
 0x800   : > { %vm3331_vm2 = vweird.f32 %v3228_v29  ;;  %4110 = vmatpush.msrb.mxu3 %v3910_v7  ;;  %v3907_v7 = vld [vmem:[#allocation13 + $0x1e0] sm:$0xff] }
 0x801   : > { %5149 = vrsqrt.f32 %v3226_v10  ;;  %vm3311_vm15 = vweird.f32 %v3226_v10 }
 0x802   : > { %5151 = vrsqrt.f32 %v3228_v29 }
 0x804   : > { %v3113_v36 = vpop.xlane.xlu2 %3112  ;;  %v3188_v63 = vpop.xlane.xlu1 %3187 }
 0x805   : > { %v3137_v9 = vmul.f32 %v7005_v41, %v3113_v36  ;;  %v3211_v24 = vmul.f32 %v3188_v63, %v7005_v41 }
 0x807   : > { %v5150_v25 = vpop.eup %5149  ;;  %v7279_v11 = vsub.f32 %v7109_v33, %v3137_v9  ;;  %v3227_v57 = vadd.f32 1e-05, %v3211_v24 }
 0x808   : > { %v7281_v52 = vpop.eup %5151  ;;  %v3306_v45 = vmul.f32 %v5150_v25, %v3226_v10  ;;  %vm3312_vm14 = vweird.f32 %v5150_v25 }
 0x809   : > { %v3169_v5 = vmul.f32 %v7279_v11, %v7279_v11  ;;  %v3326_v16 = vmul.f32 %v7281_v52, %v3228_v29  ;;  %5153 = vrsqrt.f32 %v3227_v57  ;;  %vm3313_vm1 = vmor %vm3311_vm15, %vm3312_vm14  ;;  %vm3332_vm3 = vweird.f32 %v7281_v52 }
 0x80a   : > { %v3307_v53 = vmul.f32 %v5150_v25, %v3306_v45  ;;  %vm7319_vm5 = vmor %vm3331_vm2, %vm3332_vm3  ;;  %vm3321_vm6 = vweird.f32 %v3227_v57  ;;  %v3893_v45 = vld [vmem:[#allocation13 + $0x170] sm:$0xff] }
 0x80b   : > { %3199 = vadd.xlane.f32.xlu0 %v3169_v5  ;;  %v3327_v13 = vmul.f32 %v7281_v52, %v3326_v16  ;;  %4046 = vmatpush.msrb.mxu2 %v3893_v45  ;;  %v3909_v16 = vld [vmem:[#allocation13 + $0x1f0] sm:$0xff] }
 0x80c   : > { %v3308_v22 = vmul.f32 0.5, %v3307_v53  ;;  %v3192_v54 = vpop.xlane.xlu2 %3191  ;;  %v3115_v33 = vpop.xlane.xlu1 %3114  ;;  %v3861_v53 = vld [vmem:[#allocation13 + $0x70] sm:$0xff]  ;;  %4111 = vmatpush.msrb.mxu3 %v3909_v16 }
 0x80d   : > { %v3213_v42 = vmul.f32 %v3192_v54, %v7005_v41  ;;  %v3138_v62 = vmul.f32 %v7005_v41, %v3115_v33  ;;  %v3328_v21 = vmul.f32 0.5, %v3327_v13  ;;  %3916 = vmatpush.msrb.mxu0 %v3861_v53  ;;  %v3889_v45 = vld [vmem:[#allocation13 + $0x150] sm:$0xff] }
 0x80e   : > { %v3309_v43 = vsub.f32 1.5, %v3308_v22  ;;  %v3877_v22 = vld [vmem:[#allocation13 + $0xf0] sm:$0xff] }
 0x80f   : > { %v7289_v59 = vadd.f32 1e-05, %v3213_v42  ;;  %v5154_v61 = vpop.eup %5153  ;;  %v7292_v38 = vsub.f32 %v7138_v26, %v3138_v62  ;;  %v3329_v31 = vsub.f32 1.5, %v3328_v21  ;;  %3981 = vmatpush.msrb.mxu1 %v3877_v22  ;;  %v3857_v22 = vld [vmem:[#allocation13 + $0x50] sm:$0xff] }
 0x810   : > { %v3310_v4 = vmul.f32 %v5150_v25, %v3309_v43  ;;  %v3316_v55 = vmul.f32 %v5154_v61, %v3227_v57  ;;  %vm3322_vm4 = vweird.f32 %v5154_v61 }
 0x811   : > { %5155 = vrsqrt.f32 %v7289_v59  ;;  %v3170_v46 = vmul.f32 %v7292_v38, %v7292_v38  ;;  %v3330_v10 = vmul.f32 %v7281_v52, %v3329_v31  ;;  %vm3323_vm7 = vmor %vm3321_vm6, %vm3322_vm4  ;;  %vm3341_vm8 = vweird.f32 %v7289_v59  ;;  %v3876_v31 = vld [vmem:[#allocation13 + $0xe8] sm:$0xff] }
 0x812   : > { %v3314_v50 = vsel %vm3313_vm1, %v5150_v25, %v3310_v4  ;;  %v3317_v35 = vmul.f32 %v5154_v61, %v3316_v55  ;;  %v3892_v55 = vld [vmem:[#allocation13 + $0x168] sm:$0xff]  ;;  %3982 = vmatpush.msrb.mxu1 %v3876_v31  ;;  %v3902_v31 = vld [vmem:[#allocation13 + $0x1b8] sm:$0xff] }
 0x813   : > { %v3402_v58 = vmul.f32 %v3314_v50, %v7093_v8  ;;  %3201 = vadd.xlane.f32.xlu1 %v3170_v46  ;;  %v3334_v57 = vsel %vm7319_vm5, %v7281_v52, %v3330_v10  ;;  %4047 = vmatpush.msrb.mxu2 %v3892_v55  ;;  %v3871_v55 = vld [vmem:[#allocation13 + $0xc0] sm:$0xff] }
 0x814   : > { %v3318_v56 = vmul.f32 0.5, %v3317_v35  ;;  %v3196_v28 = vpop.xlane.xlu1 %3195  ;;  %v3194_v26 = vpop.xlane.xlu0 %3193  ;;  %v3404_v52 = vmul.f32 %v3334_v57, %v7090_v6  ;;  %v3860_v35 = vld [vmem:[#allocation13 + $0x68] sm:$0xff] }
 0x815   : > { %v3421_v37 = vmul.f32 %v7122_v60, %v3402_v58  ;;  %v3215_v23 = vmul.f32 %v3196_v28, %v7005_v41  ;;  %v3214_v17 = vmul.f32 %v3194_v26, %v7005_v41  ;;  %3917 = vmatpush.msrb.mxu0 %v3860_v35 }
 0x816   : > { %v3319_v12 = vsub.f32 1.5, %v3318_v56  ;;  %v3423_v6 = vmul.f32 %v7122_v60, %v3404_v52  ;;  %v3904_v52 = vld [vmem:[#allocation13 + $0x1c8] sm:$0xff] }
 0x817   : > { %v7303_v8 = vadd.f32 %v7135_v0, %v3421_v37  ;;  %v7305_v49 = vpop.eup %5155  ;;  %v7309_v47 = vadd.f32 1e-05, %v3215_v23  ;;  %v7311_v18 = vadd.f32 1e-05, %v3214_v17  ;;  %v3908_v37 = vld [vmem:[#allocation13 + $0x1e8] sm:$0xff] }
 0x818   : > { %v3336_v51 = vmul.f32 %v7305_v49, %v7289_v59  ;;  %v3320_v9 = vmul.f32 %v5154_v61, %v3319_v12  ;;  %vm3342_vm0 = vweird.f32 %v7305_v49  ;;  %4112 = vmatpush.msrb.mxu3 %v3908_v37  ;;  %v7366_v23 = vadd.f32 %v7135_v0, %v3423_v6  ;;  %v3855_v6 = vld [vmem:[#allocation13 + $0x40] sm:$0xff]  ;;  %v3854_v37 = vld [vmem:[#allocation13 + $0x38] sm:$0xff] }
 0x819   : > { %3560 = vmatmul.f32.gmra.mxu0 %v7303_v8  ;;  %3625 = vmatmul.f32.gmra.mxu1 %v7303_v8  ;;  %5157 = vrsqrt.f32 %v7309_v47  ;;  %vm7348_vm9 = vmor %vm3341_vm8, %vm3342_vm0  ;;  %vm3351_vm10 = vweird.f32 %v7311_v18  ;;  %vm3361_vm13 = vweird.f32 %v7309_v47 }
 0x81a   : > { %3690 = vmatmul.f32.gmra.mxu2 %v7303_v8  ;;  %3755 = vmatmul.f32.gmra.mxu3 %v7303_v8  ;;  %v3337_v63 = vmul.f32 %v7305_v49, %v3336_v51  ;;  %v3324_v25 = vsel %vm3323_vm7, %v5154_v61, %v3320_v9  ;;  %5159 = vrsqrt.f32 %v7311_v18  ;;  %v3891_v51 = vld [vmem:[#allocation13 + $0x160] sm:$0xff] }
 0x81b   : > { %v3403_v29 = vmul.f32 %v3324_v25, %v7115_v27  ;;  %4048 = vmatpush.msrb.mxu2 %v3891_v51  ;;  %v3875_v9 = vld [vmem:[#allocation13 + $0xe0] sm:$0xff]  ;;  %v3858_v25 = vld [vmem:[#allocation13 + $0x58] sm:$0xff]  ;;  %4113 = vmatpush.msrb.mxu3 %v3907_v7  ;;  %v3884_v51 = vld [vmem:[#allocation13 + $0x128] sm:$0xff] }
 0x81c   : > { %v3338_v24 = vmul.f32 0.5, %v3337_v63  ;;  %v3198_v5 = vpop.xlane.xlu2 %3197  ;;  %v3890_v63 = vld [vmem:[#allocation13 + $0x158] sm:$0xff]  ;;  %3983 = vmatpush.msrb.mxu1 %v3875_v9  ;;  %v3900_v7 = vld [vmem:[#allocation13 + $0x1a8] sm:$0xff] }
 0x81d   : > { %v3422_v54 = vmul.f32 %v7122_v60, %v3403_v29  ;;  %v3216_v27 = vmul.f32 %v3198_v5, %v7005_v41  ;;  %v3906_v29 = vld [vmem:[#allocation13 + $0x1d8] sm:$0xff]  ;;  %4049 = vmatpush.msrb.mxu2 %v3890_v63  ;;  %v3868_v9 = vld [vmem:[#allocation13 + $0xa8] sm:$0xff]  ;;  %v3883_v63 = vld [vmem:[#allocation13 + $0x120] sm:$0xff] }
 0x81e   : > { %v3339_v43 = vsub.f32 1.5, %v3338_v24  ;;  %v3874_v24 = vld [vmem:[#allocation13 + $0xd8] sm:$0xff]  ;;  %4114 = vmatpush.msrb.mxu3 %v3906_v29  ;;  %v3899_v29 = vld [vmem:[#allocation13 + $0x1a0] sm:$0xff] }
 0x81f   : > { %v7337_v13 = vpop.eup %5157  ;;  %v7341_v33 = vadd.f32 %v7135_v0, %v3422_v54  ;;  %v7346_v61 = vadd.f32 1e-05, %v3216_v27  ;;  %3984 = vmatpush.msrb.mxu1 %v3874_v24  ;;  %4050 = vmatpush.msrb.mxu2 %v3889_v45  ;;  %v3905_v54 = vld [vmem:[#allocation13 + $0x1d0] sm:$0xff]  ;;  %v3856_v27 = vld [vmem:[#allocation13 + $0x48] sm:$0xff]  ;;  %v3867_v24 = vld [vmem:[#allocation13 + $0xa0] sm:$0xff] }
 0x820   : > { %v5160_v42 = vpop.eup %5159  ;;  %v3340_v62 = vmul.f32 %v7305_v49, %v3339_v43  ;;  %v3356_v4 = vmul.f32 %v7337_v13, %v7309_v47  ;;  %vm3362_vm14 = vweird.f32 %v7337_v13  ;;  %v3888_v43 = vld [vmem:[#allocation13 + $0x148] sm:$0xff]  ;;  %4115 = vmatpush.msrb.mxu3 %v3905_v54  ;;  %v3882_v45 = vld [vmem:[#allocation13 + $0x118] sm:$0xff]  ;;  %v3849_v54 = vld [vmem:[#allocation13 + $0x10] sm:$0xff] }
 0x821   : > { %v3346_v50 = vmul.f32 %v5160_v42, %v7311_v18  ;;  %3563 = vmatmul.f32.gmra.mxu0 %v7341_v33  ;;  %3628 = vmatmul.f32.gmra.mxu1 %v7341_v33  ;;  %5161 = vrsqrt.f32 %v7346_v61  ;;  %vm3352_vm11 = vweird.f32 %v5160_v42  ;;  %v3859_v18 = vld [vmem:[#allocation13 + $0x60] sm:$0xff]  ;;  %vm7391_vm15 = vmor %vm3361_vm13, %vm3362_vm14  ;;  %vm3371_vm1 = vweird.f32 %v7346_v61  ;;  %v3897_v47 = vld [vmem:[#allocation13 + $0x190] sm:$0xff] }
 0x822   : > { %3693 = vmatmul.f32.gmra.mxu2 %v7341_v33  ;;  %3758 = vmatmul.f32.gmra.mxu3 %v7341_v33  ;;  %v3344_v58 = vsel %vm7348_vm9, %v7305_v49, %v3340_v62  ;;  %v3357_v46 = vmul.f32 %v7337_v13, %v3356_v4  ;;  %vm7370_vm12 = vmor %vm3351_vm10, %vm3352_vm11  ;;  %v3872_v62 = vld [vmem:[#allocation13 + $0xc8] sm:$0xff]  ;;  %v3887_v4 = vld [vmem:[#allocation13 + $0x140] sm:$0xff] }
 0x823   : > { %v3347_v21 = vmul.f32 %v5160_v42, %v3346_v50  ;;  %v3405_v28 = vmul.f32 %v3344_v58, %v7146_v39  ;;  %3918 = vmatpush.msrb.mxu0 %v3859_v18  ;;  %4051 = vmatpush.msrb.mxu2 %v3888_v43  ;;  %v3886_v58 = vld [vmem:[#allocation13 + $0x138] sm:$0xff]  ;;  %v3852_v18 = vld [vmem:[#allocation13 + $0x28] sm:$0xff] }
 0x824   : > { %v3358_v49 = vmul.f32 0.5, %v3357_v46  ;;  %4116 = vmatpush.msrb.mxu3 %v3904_v52  ;;  %v3880_v43 = vld [vmem:[#allocation13 + $0x108] sm:$0xff] }
 0x825   : > { %v3348_v56 = vmul.f32 0.5, %v3347_v21  ;;  %v3424_v39 = vmul.f32 %v7122_v60, %v3405_v28  ;;  %3919 = vmatpush.msrb.mxu0 %v3858_v25  ;;  %v3903_v21 = vld [vmem:[#allocation13 + $0x1c0] sm:$0xff]  ;;  %4052 = vmatpush.msrb.mxu2 %v3887_v4  ;;  %v3853_v28 = vld [vmem:[#allocation13 + $0x30] sm:$0xff]  ;;  %v3848_v4 = vld [vmem:[#allocation13 + $0x8] sm:$0xff] }
 0x826   : > { %v3359_v19 = vsub.f32 1.5, %v3358_v49  ;;  %4117 = vmatpush.msrb.mxu3 %v3903_v21  ;;  %v3851_v25 = vld [vmem:[#allocation13 + $0x20] sm:$0xff] }
 0x827   : > { %v3349_v26 = vsub.f32 1.5, %v3348_v56  ;;  %v7368_v17 = vpop.eup %5161  ;;  %v7388_v5 = vadd.f32 %v7135_v0, %v3424_v39  ;;  %3920 = vmatpush.msrb.mxu0 %v3857_v22  ;;  %4053 = vmatpush.msrb.mxu2 %v3886_v58  ;;  %v3881_v22 = vld [vmem:[#allocation13 + $0x110] sm:$0xff]  ;;  %v3847_v21 = vld [vmem:[#allocation13] sm:$0xff]  ;;  %v3540_v58 = vpop.f32.mrf.mxu0 }
 0x828   : > { %v3366_v1 = vmul.f32 %v7368_v17, %v7346_v61  ;;  %v3360_v53 = vmul.f32 %v7337_v13, %v3359_v19  ;;  %vm3372_vm2 = vweird.f32 %v7368_v17  ;;  %v3885_v61 = vld [vmem:[#allocation13 + $0x130] sm:$0xff]  ;;  %4118 = vmatpush.msrb.mxu3 %v3902_v31  ;;  %v3895_v31 = vld [vmem:[#allocation13 + $0x180] sm:$0xff]  ;;  %v3670_v56 = vpop.f32.mrf.mxu2 }
 0x829   : > { %v3350_v12 = vmul.f32 %v5160_v42, %v3349_v26  ;;  %3566 = vmatmul.f32.gmra.mxu0 %v7366_v23  ;;  %3631 = vmatmul.f32.gmra.mxu1 %v7366_v23  ;;  %vm7410_vm3 = vmor %vm3371_vm1, %vm3372_vm2  ;;  %v3901_v26 = vld [vmem:[#allocation13 + $0x1b0] sm:$0xff] }
 0x82a   : > { %3696 = vmatmul.f32.gmra.mxu2 %v7366_v23  ;;  %3761 = vmatmul.f32.gmra.mxu3 %v7366_v23  ;;  %v3367_v36 = vmul.f32 %v7368_v17, %v3366_v1  ;;  %v3364_v59 = vsel %vm7391_vm15, %v7337_v13, %v3360_v53  ;;  %v3898_v53 = vld [vmem:[#allocation13 + $0x198] sm:$0xff] }
 0x82b   : > { %v3354_v10 = vsel %vm7370_vm12, %v5160_v42, %v3350_v12  ;;  %3921 = vmatpush.msrb.mxu0 %v3856_v27  ;;  %v3407_v46 = vmul.f32 %v3364_v59, %v7180_v40  ;;  %v3870_v40 = vld [vmem:[#allocation13 + $0xb8] sm:$0xff]  ;;  %4054 = vmatpush.msrb.mxu2 %v3885_v61  ;;  %v3896_v59 = vld [vmem:[#allocation13 + $0x188] sm:$0xff] }
 0x82c   : > { %v3406_v57 = vmul.f32 %v3354_v10, %v7193_v34  ;;  %v3368_v16 = vmul.f32 0.5, %v3367_v36  ;;  %v3873_v34 = vld [vmem:[#allocation13 + $0xd0] sm:$0xff]  ;;  %4119 = vmatpush.msrb.mxu3 %v3901_v26 }
 0x82d   : > { %3985 = vmatpush.msrb.mxu1 %v3873_v34  ;;  %3922 = vmatpush.msrb.mxu0 %v3855_v6  ;;  %v3426_v49 = vmul.f32 %v7122_v60, %v3407_v46  ;;  %v3865_v34 = vld [vmem:[#allocation13 + $0x90] sm:$0xff]  ;;  %v3605_v46 = vpop.f32.mrf.mxu1 }
 0x82e   : > { %v3425_v42 = vmul.f32 %v7122_v60, %v3406_v57  ;;  %v3369_v50 = vsub.f32 1.5, %v3368_v16  ;;  %4055 = vmatpush.msrb.mxu2 %v3884_v51  ;;  %4120 = vmatpush.msrb.mxu3 %v3900_v7  ;;  %v3850_v57 = vld [vmem:[#allocation13 + $0x18] sm:$0xff] }
 0x82f   : > { %3986 = vmatpush.msrb.mxu1 %v3872_v62  ;;  %3923 = vmatpush.msrb.mxu0 %v3854_v37  ;;  %v7424_v1 = vadd.f32 %v7135_v0, %v3426_v49  ;;  %v3866_v16 = vld [vmem:[#allocation13 + $0x98] sm:$0xff]  ;;  %v3879_v37 = vld [vmem:[#allocation13 + $0x100] sm:$0xff] }
 0x830   : > { %v7407_v35 = vadd.f32 %v7135_v0, %v3425_v42  ;;  %v3370_v13 = vmul.f32 %v7368_v17, %v3369_v50  ;;  %4056 = vmatpush.msrb.mxu2 %v3883_v63  ;;  %4121 = vmatpush.msrb.mxu3 %v3899_v29  ;;  %v3864_v50 = vld [vmem:[#allocation13 + $0x88] sm:$0xff]  ;;  %v3673_v7 = vpop.f32.mrf.mxu2 }
 0x831   : > { %3569 = vmatmul.f32.gmra.mxu0 %v7388_v5  ;;  %3634 = vmatmul.f32.gmra.mxu1 %v7388_v5 }
 0x832   : > { %3699 = vmatmul.f32.gmra.mxu2 %v7388_v5  ;;  %3764 = vmatmul.f32.gmra.mxu3 %v7388_v5  ;;  %v3374_v12 = vsel %vm7410_vm3, %v7368_v17, %v3370_v13 }
 0x833   : > { %3987 = vmatpush.msrb.mxu1 %v3871_v55  ;;  %3924 = vmatpush.msrb.mxu0 %v3853_v28  ;;  %v3408_v15 = vmul.f32 %v3374_v12, %v7221_v48  ;;  %v3869_v48 = vld [vmem:[#allocation13 + $0xb0] sm:$0xff]  ;;  %v3863_v55 = vld [vmem:[#allocation13 + $0x80] sm:$0xff] }
 0x834   : > { %4057 = vmatpush.msrb.mxu2 %v3882_v45  ;;  %4122 = vmatpush.msrb.mxu3 %v3898_v53 }
 0x835   : > { %3988 = vmatpush.msrb.mxu1 %v3870_v40  ;;  %v3427_v39 = vmul.f32 %v7122_v60, %v3408_v15  ;;  %3925 = vmatpush.msrb.mxu0 %v3852_v18  ;;  %v3735_v40 = vpop.f32.mrf.mxu3  ;;  %v3608_v51 = vpop.f32.mrf.mxu1 }
 0x836   : > { %4058 = vmatpush.msrb.mxu2 %v3881_v22  ;;  %4123 = vmatpush.msrb.mxu3 %v3897_v47 }
 0x837   : > { %v7432_v17 = vadd.f32 %v7135_v0, %v3427_v39  ;;  %3989 = vmatpush.msrb.mxu1 %v3869_v48  ;;  %3926 = vmatpush.msrb.mxu0 %v3851_v25  ;;  %v3543_v48 = vpop.f32.mrf.mxu0 }
 0x838   : > { %4059 = vmatpush.msrb.mxu2 %v3880_v43  ;;  %4124 = vmatpush.msrb.mxu3 %v3896_v59  ;;  %v3676_v53 = vpop.f32.mrf.mxu2 }
 0x839   : > { %3572 = vmatmul.f32.gmra.mxu0 %v7407_v35  ;;  %3637 = vmatmul.f32.gmra.mxu1 %v7407_v35 }
 0x83a   : > { %3702 = vmatmul.f32.gmra.mxu2 %v7407_v35  ;;  %3767 = vmatmul.f32.gmra.mxu3 %v7407_v35 }
 0x83b   : > { %3990 = vmatpush.msrb.mxu1 %v3868_v9  ;;  %3927 = vmatpush.msrb.mxu0 %v3850_v57 }
 0x83c   : > { %4060 = vmatpush.msrb.mxu2 %v3879_v37  ;;  %4125 = vmatpush.msrb.mxu3 %v3895_v31 }
 0x83d   : > { %3991 = vmatpush.msrb.mxu1 %v3867_v24  ;;  %3928 = vmatpush.msrb.mxu0 %v3849_v54  ;;  %v3513_v24 = vld [vmem:[%s8001_s30] sm:$0xf]  ;;  %v3611_v57 = vpop.f32.mrf.mxu1 }
 0x83e   : > { %v7454_v54 = vperm.slane %v3513_v24, 0  ;;  %v7456_v47 = vperm.slane %v3513_v24, 1  ;;  %v7461_v43 = vperm.slane %v3513_v24, 2 }
 0x83f   : > { %3992 = vmatpush.msrb.mxu1 %v3866_v16  ;;  %3929 = vmatpush.msrb.mxu0 %v3848_v4  ;;  %v3546_v45 = vpop.f32.mrf.mxu0 }
 0x841   : > { %3575 = vmatmul.f32.gmra.mxu0 %v7424_v1  ;;  %3640 = vmatmul.f32.gmra.mxu1 %v7424_v1 }
 0x842   : > { %3705 = vmatmul.f32.gmra.mxu2 %v7424_v1  ;;  %3770 = vmatmul.f32.gmra.mxu3 %v7424_v1 }
 0x843   : > { %3993 = vmatpush.msrb.mxu1 %v3865_v34  ;;  %3930 = vmatpush.msrb.mxu0 %v3847_v21 }
 0x845   : > { %3994 = vmatpush.msrb.mxu1 %v3864_v50  ;;  %v3679_v50 = vpop.f32.mrf.mxu2 }
 0x847   : > { %3995 = vmatpush.msrb.mxu1 %v3863_v55 }
 0x849   : > { %3578 = vmatmul.f32.gmra.mxu0 %v7432_v17  ;;  %3643 = vmatmul.f32.gmra.mxu1 %v7432_v17 }
 0x84a   : > { %3708 = vmatmul.f32.gmra.mxu2 %v7432_v17  ;;  %3773 = vmatmul.f32.gmra.mxu3 %v7432_v17 }
 0x87e   : > { %v3200_v19 = vpop.xlane.xlu0 %3199 }
 0x87f   : > { %v3217_v10 = vmul.f32 %v3200_v19, %v7005_v41  ;;  %v3738_v19 = vpop.f32.mrf.mxu3 }
 0x881   : > { %v3233_v36 = vadd.f32 1e-05, %v3217_v10 }
 0x883   : > { %5163 = vrsqrt.f32 %v3233_v36  ;;  %vm3381_vm5 = vweird.f32 %v3233_v36 }
 0x886   : > { %v3202_v27 = vpop.xlane.xlu1 %3201 }
 0x887   : > { %v3218_v42 = vmul.f32 %v3202_v27, %v7005_v41  ;;  %v3741_v16 = vpop.f32.mrf.mxu3  ;;  %v3606_v27 = vadd.f32 %v3605_v46, %v7456_v47  ;;  %v3609_v46 = vadd.f32 %v3608_v51, %v7456_v47 }
 0x889   : > { %v5164_v52 = vpop.eup %5163  ;;  %v3234_v6 = vadd.f32 1e-05, %v3218_v42  ;;  %v3549_v42 = vpop.f32.mrf.mxu0  ;;  %v3784_v59 = vmax.f32 %v3606_v27, 0.0 }
 0x88a   : > { %v3376_v62 = vmul.f32 %v5164_v52, %v3233_v36  ;;  %vm3382_vm4 = vweird.f32 %v5164_v52 }
 0x88b   : > { %5165 = vrsqrt.f32 %v3234_v6  ;;  %vm3383_vm6 = vmor %vm3381_vm5, %vm3382_vm4  ;;  %vm3391_vm8 = vweird.f32 %v3234_v6 }
 0x88c   : > { %v3377_v13 = vmul.f32 %v5164_v52, %v3376_v62  ;;  %v3614_v62 = vpop.f32.mrf.mxu1 }
 0x88e   : > { %v3378_v61 = vmul.f32 0.5, %v3377_v13  ;;  %v3674_v13 = vadd.f32 %v3673_v7, %v7461_v43 }
 0x890   : > { %v3379_v28 = vsub.f32 1.5, %v3378_v61 }
 0x891   : > { %v5166_v49 = vpop.eup %5165 }
 0x892   : > { %v3380_v26 = vmul.f32 %v5164_v52, %v3379_v28  ;;  %v3386_v15 = vmul.f32 %v5166_v49, %v3234_v6  ;;  %vm3392_vm7 = vweird.f32 %v5166_v49  ;;  %v3744_v6 = vpop.f32.mrf.mxu3  ;;  %v3789_v28 = vmax.f32 %v3674_v13, 0.0 }
 0x893   : > { %vm3393_vm0 = vmor %vm3391_vm8, %vm3392_vm7 }
 0x894   : > { %v3384_v12 = vsel %vm3383_vm6, %v5164_v52, %v3380_v26  ;;  %v3387_v18 = vmul.f32 %v5166_v49, %v3386_v15  ;;  %v3671_v52 = vadd.f32 %v3670_v56, %v7461_v43  ;;  %v3788_v56 = vmax.f32 %v3609_v46, 0.0  ;;  %v3617_v61 = vpop.f32.mrf.mxu1 }
 0x895   : > { %v3409_v39 = vmul.f32 %v3384_v12, %v7279_v11  ;;  %v3547_v15 = vadd.f32 %v3546_v45, %v7454_v54  ;;  %v3680_v45 = vadd.f32 %v3679_v50, %v7461_v43 }
 0x896   : > { %v3388_v9 = vmul.f32 0.5, %v3387_v18  ;;  %v3785_v21 = vmax.f32 %v3671_v52, 0.0  ;;  %v3618_v52 = vadd.f32 %v3617_v61, %v7456_v47 }
 0x897   : > { %v3428_v10 = vmul.f32 %v7122_v60, %v3409_v39  ;;  %v3612_v39 = vadd.f32 %v3611_v57, %v7456_v47  ;;  %v3791_v18 = vmax.f32 %v3547_v15, 0.0 }
 0x898   : > { %v3389_v25 = vsub.f32 1.5, %v3388_v9 }
 0x899   : > { %v7443_v63 = vadd.f32 %v7135_v0, %v3428_v10  ;;  %v3792_v7 = vmax.f32 %v3612_v39, 0.0 }
 0x89a   : > { %v3390_v36 = vmul.f32 %v5166_v49, %v3389_v25  ;;  %v3747_v12 = vpop.f32.mrf.mxu3 }
 0x89b   : > { %3581 = vmatmul.f32.gmra.mxu0 %v7443_v63  ;;  %3646 = vmatmul.f32.gmra.mxu1 %v7443_v63 }
 0x89c   : > { %3711 = vmatmul.f32.gmra.mxu2 %v7443_v63  ;;  %3776 = vmatmul.f32.gmra.mxu3 %v7443_v63  ;;  %v3394_v11 = vsel %vm3393_vm0, %v5166_v49, %v3390_v36  ;;  %v3682_v49 = vpop.f32.mrf.mxu2  ;;  %v3620_v25 = vpop.f32.mrf.mxu1  ;;  %v3550_v36 = vadd.f32 %v3549_v42, %v7454_v54 }
 0x89d   : > { %v3410_v29 = vmul.f32 %v3394_v11, %v7292_v38  ;;  %v7463_v38 = vperm.slane %v3513_v24, 3  ;;  %v3615_v11 = vadd.f32 %v3614_v62, %v7456_v47  ;;  %v3621_v13 = vadd.f32 %v3620_v25, %v7456_v47 }
 0x89f   : > { %v3429_v22 = vmul.f32 %v7122_v60, %v3410_v29  ;;  %v3541_v60 = vadd.f32 %v3540_v58, %v7454_v54  ;;  %v3544_v58 = vadd.f32 %v3543_v48, %v7454_v54  ;;  %v3739_v37 = vadd.f32 %v3738_v19, %v7463_v38 }
 0x8a0   : > { %v3677_v48 = vadd.f32 %v3676_v53, %v7461_v43  ;;  %v3742_v51 = vadd.f32 %v3741_v16, %v7463_v38  ;;  %v3745_v57 = vadd.f32 %v3744_v6, %v7463_v38  ;;  %v3795_v53 = vmax.f32 %v3550_v36, 0.0 }
 0x8a1   : > { %v7459_v34 = vadd.f32 %v7135_v0, %v3429_v22  ;;  %v3736_v0 = vadd.f32 %v3735_v40, %v7463_v38  ;;  %v3783_v4 = vmax.f32 %v3541_v60, 0.0  ;;  %v3787_v31 = vmax.f32 %v3544_v58, 0.0  ;;  %v3552_v40 = vpop.f32.mrf.mxu0 }
 0x8a2   : > { %v3790_v26 = vmax.f32 %v3739_v37, 0.0  ;;  %v3793_v19 = vmax.f32 %v3677_v48, 0.0  ;;  %v3794_v10 = vmax.f32 %v3742_v51, 0.0  ;;  %v3750_v24 = vpop.f32.mrf.mxu3  ;;  %v3796_v16 = vmax.f32 %v3615_v11, 0.0 }
 0x8a3   : > { %3584 = vmatmul.f32.gmra.mxu0 %v7459_v34  ;;  %3649 = vmatmul.f32.gmra.mxu1 %v7459_v34  ;;  %v3786_v55 = vmax.f32 %v3736_v0, 0.0  ;;  %v3797_v22 = vmax.f32 %v3680_v45, 0.0  ;;  %v3798_v60 = vmax.f32 %v3745_v57, 0.0  ;;  %v3553_v27 = vadd.f32 %v3552_v40, %v7454_v54 }
 0x8a4   : > { %3714 = vmatmul.f32.gmra.mxu2 %v7459_v34  ;;  %3779 = vmatmul.f32.gmra.mxu3 %v7459_v34  ;;  %v3685_v29 = vpop.f32.mrf.mxu2  ;;  %v3683_v0 = vadd.f32 %v3682_v49, %v7461_v43  ;;  %v3748_v42 = vadd.f32 %v3747_v12, %v7463_v38  ;;  %v3804_v49 = vmax.f32 %v3621_v13, 0.0 }
 0x8a5   : > { %v3799_v6 = vmax.f32 %v3553_v27, 0.0  ;;  %v3686_v37 = vadd.f32 %v3685_v29, %v7461_v43 }
 0x8a6   : > { %v3802_v58 = vmax.f32 %v3748_v42, 0.0 }
 0x8a7   : > { %v3805_v12 = vmax.f32 %v3686_v37, 0.0 }
 0x8a9   : > { %v3555_v9 = vpop.f32.mrf.mxu0 }
 0x8aa   : > { %v3753_v50 = vpop.f32.mrf.mxu3  ;;  %v3556_v46 = vadd.f32 %v3555_v9, %v7454_v54 }
 0x8ab   : > { %3931 = vmatmul.f32.vlgmr.msrb.gmra.mxu0 %v3783_v4  ;;  %3996 = vmatmul.f32.vlgmr.msrb.gmra.mxu1 %v3784_v59  ;;  %v3623_v4 = vpop.f32.mrf.mxu1 }
 0x8ac   : > { %4061 = vmatmul.f32.vlgmr.msrb.gmra.mxu2 %v3785_v21  ;;  %4126 = vmatmul.f32.vlgmr.msrb.gmra.mxu3 %v3786_v55  ;;  %v3688_v59 = vpop.f32.mrf.mxu2  ;;  %v3800_v21 = vmax.f32 %v3618_v52, 0.0  ;;  %v3801_v55 = vmax.f32 %v3683_v0, 0.0  ;;  %v3624_v48 = vadd.f32 %v3623_v4, %v7456_v47 }
 0x8ad   : > { %v3689_v51 = vadd.f32 %v3688_v59, %v7461_v43 }
 0x8ae   : > { %v3808_v36 = vmax.f32 %v3624_v48, 0.0 }
 0x8af   : > { %v3809_v11 = vmax.f32 %v3689_v51, 0.0 }
 0x8b1   : > { %v3558_v62 = vpop.f32.mrf.mxu0 }
 0x8b2   : > { %v3559_v39 = vadd.f32 %v3558_v62, %v7454_v54 }
 0x8b3   : > { %3934 = vmatmul.f32.gmra.mxu0 %v3787_v31  ;;  %3999 = vmatmul.f32.gmra.mxu1 %v3788_v56  ;;  %v3751_v31 = vadd.f32 %v3750_v24, %v7463_v38  ;;  %v3626_v40 = vpop.f32.mrf.mxu1 }
 0x8b4   : > { %4064 = vmatmul.f32.gmra.mxu2 %v3789_v28  ;;  %4129 = vmatmul.f32.gmra.mxu3 %v3790_v26  ;;  %v3691_v61 = vpop.f32.mrf.mxu2  ;;  %v3756_v28 = vpop.f32.mrf.mxu3  ;;  %v3803_v26 = vmax.f32 %v3556_v46, 0.0  ;;  %v3807_v25 = vmax.f32 %v3559_v39, 0.0  ;;  %v3627_v45 = vadd.f32 %v3626_v40, %v7456_v47 }
 0x8b5   : > { %v3806_v15 = vmax.f32 %v3751_v31, 0.0  ;;  %v3692_v57 = vadd.f32 %v3691_v61, %v7461_v43 }
 0x8b7   : > { %v3813_v52 = vmax.f32 %v3692_v57, 0.0 }
 0x8b9   : > { %v3561_v56 = vpop.f32.mrf.mxu0 }
 0x8ba   : > { %v3562_v24 = vadd.f32 %v3561_v56, %v7454_v54 }
 0x8bb   : > { %3937 = vmatmul.f32.gmra.mxu0 %v3791_v18  ;;  %4002 = vmatmul.f32.gmra.mxu1 %v3792_v7  ;;  %v3754_v18 = vadd.f32 %v3753_v50, %v7463_v38 }
 0x8bc   : > { %4067 = vmatmul.f32.gmra.mxu2 %v3793_v19  ;;  %4132 = vmatmul.f32.gmra.mxu3 %v3794_v10  ;;  %v3629_v19 = vpop.f32.mrf.mxu1  ;;  %v3694_v10 = vpop.f32.mrf.mxu2 }
 0x8bd   : > { %v3759_v9 = vpop.f32.mrf.mxu3  ;;  %v3810_v29 = vmax.f32 %v3754_v18, 0.0  ;;  %v3630_v59 = vadd.f32 %v3629_v19, %v7456_v47  ;;  %v3695_v50 = vadd.f32 %v3694_v10, %v7461_v43 }
 0x8c1   : > { %v3564_v7 = vpop.f32.mrf.mxu0 }
 0x8c2   : > { %v3565_v4 = vadd.f32 %v3564_v7, %v7454_v54 }
 0x8c3   : > { %3940 = vmatmul.f32.gmra.mxu0 %v3795_v53  ;;  %4005 = vmatmul.f32.gmra.mxu1 %v3796_v16  ;;  %v3757_v53 = vadd.f32 %v3756_v28, %v7463_v38  ;;  %v3811_v16 = vmax.f32 %v3562_v24, 0.0 }
 0x8c4   : > { %4070 = vmatmul.f32.gmra.mxu2 %v3797_v22  ;;  %4135 = vmatmul.f32.gmra.mxu3 %v3798_v60  ;;  %v3812_v22 = vmax.f32 %v3627_v45, 0.0  ;;  %v3632_v27 = vpop.f32.mrf.mxu1  ;;  %v3697_v42 = vpop.f32.mrf.mxu2 }
 0x8c5   : > { %v3814_v0 = vmax.f32 %v3757_v53, 0.0  ;;  %v3762_v62 = vpop.f32.mrf.mxu3  ;;  %v3633_v56 = vadd.f32 %v3632_v27, %v7456_v47  ;;  %v3698_v28 = vadd.f32 %v3697_v42, %v7461_v43 }
 0x8c9   : > { %v3567_v60 = vpop.f32.mrf.mxu0 }
 0x8ca   : > { %v3568_v31 = vadd.f32 %v3567_v60, %v7454_v54 }
 0x8cb   : > { %3943 = vmatmul.f32.gmra.mxu0 %v3799_v6  ;;  %4008 = vmatmul.f32.gmra.mxu1 %v3800_v21  ;;  %v3760_v6 = vadd.f32 %v3759_v9, %v7463_v38  ;;  %v3815_v21 = vmax.f32 %v3565_v4, 0.0 }
 0x8cc   : > { %4073 = vmatmul.f32.gmra.mxu2 %v3801_v55  ;;  %4138 = vmatmul.f32.gmra.mxu3 %v3802_v58  ;;  %v3816_v55 = vmax.f32 %v3630_v59, 0.0  ;;  %v3817_v58 = vmax.f32 %v3695_v50, 0.0  ;;  %v3635_v37 = vpop.f32.mrf.mxu1  ;;  %v3700_v40 = vpop.f32.mrf.mxu2 }
 0x8cd   : > { %v3818_v46 = vmax.f32 %v3760_v6, 0.0  ;;  %v3765_v61 = vpop.f32.mrf.mxu3  ;;  %v3636_v51 = vadd.f32 %v3635_v37, %v7456_v47  ;;  %v3701_v18 = vadd.f32 %v3700_v40, %v7461_v43 }
 0x8ce   : > { %v3766_v7 = vadd.f32 %v3765_v61, %v7463_v38 }
 0x8d0   : > { %v3826_v24 = vmax.f32 %v3766_v7, 0.0 }
 0x8d1   : > { %v3570_v13 = vpop.f32.mrf.mxu0 }
 0x8d2   : > { %v3571_v48 = vadd.f32 %v3570_v13, %v7454_v54 }
 0x8d3   : > { %3946 = vmatmul.f32.gmra.mxu0 %v3803_v26  ;;  %4011 = vmatmul.f32.gmra.mxu1 %v3804_v49  ;;  %v3763_v26 = vadd.f32 %v3762_v62, %v7463_v38  ;;  %v3819_v49 = vmax.f32 %v3568_v31, 0.0 }
 0x8d4   : > { %4076 = vmatmul.f32.gmra.mxu2 %v3805_v12  ;;  %4141 = vmatmul.f32.gmra.mxu3 %v3806_v15  ;;  %v3820_v12 = vmax.f32 %v3633_v56, 0.0  ;;  %v3821_v15 = vmax.f32 %v3698_v28, 0.0  ;;  %v3638_v10 = vpop.f32.mrf.mxu1  ;;  %v3703_v9 = vpop.f32.mrf.mxu2 }
 0x8d5   : > { %v3822_v39 = vmax.f32 %v3763_v26, 0.0  ;;  %v3639_v57 = vadd.f32 %v3638_v10, %v7456_v47  ;;  %v3704_v53 = vadd.f32 %v3703_v9, %v7461_v43 }
 0x8d7   : > { %v3829_v62 = vmax.f32 %v3704_v53, 0.0 }
 0x8d9   : > { %v3573_v19 = vpop.f32.mrf.mxu0 }
 0x8da   : > { %v3574_v45 = vadd.f32 %v3573_v19, %v7454_v54 }
 0x8db   : > { %3949 = vmatmul.f32.gmra.mxu0 %v3807_v25  ;;  %4014 = vmatmul.f32.gmra.mxu1 %v3808_v36  ;;  %v3768_v25 = vpop.f32.mrf.mxu3  ;;  %v3823_v36 = vmax.f32 %v3571_v48, 0.0 }
 0x8dc   : > { %4079 = vmatmul.f32.gmra.mxu2 %v3809_v11  ;;  %4144 = vmatmul.f32.gmra.mxu3 %v3810_v29  ;;  %v3824_v11 = vmax.f32 %v3636_v51, 0.0  ;;  %v3825_v29 = vmax.f32 %v3701_v18, 0.0  ;;  %v3641_v60 = vpop.f32.mrf.mxu1  ;;  %v3827_v27 = vmax.f32 %v3574_v45, 0.0 }
 0x8dd   : > { %v3642_v50 = vadd.f32 %v3641_v60, %v7456_v47 }
 0x8e3   : > { %3952 = vmatmul.f32.gmra.mxu0 %v3811_v16  ;;  %4017 = vmatmul.f32.gmra.mxu1 %v3812_v22  ;;  %v3769_v16 = vadd.f32 %v3768_v25, %v7463_v38  ;;  %v3576_v22 = vpop.f32.mrf.mxu0  ;;  %v3771_v42 = vpop.f32.mrf.mxu3 }
 0x8e4   : > { %4082 = vmatmul.f32.gmra.mxu2 %v3813_v52  ;;  %4147 = vmatmul.f32.gmra.mxu3 %v3814_v0  ;;  %v3828_v52 = vmax.f32 %v3639_v57, 0.0  ;;  %v3706_v0 = vpop.f32.mrf.mxu2  ;;  %v3577_v59 = vadd.f32 %v3576_v22, %v7454_v54  ;;  %v3644_v31 = vpop.f32.mrf.mxu1 }
 0x8e5   : > { %v3830_v4 = vmax.f32 %v3769_v16, 0.0  ;;  %v3707_v6 = vadd.f32 %v3706_v0, %v7461_v43  ;;  %v3645_v28 = vadd.f32 %v3644_v31, %v7456_v47 }
 0x8eb   : > { %3955 = vmatmul.f32.gmra.mxu0 %v3815_v21  ;;  %4020 = vmatmul.f32.gmra.mxu1 %v3816_v55  ;;  %v3772_v21 = vadd.f32 %v3771_v42, %v7463_v38  ;;  %v3831_v55 = vmax.f32 %v3577_v59, 0.0  ;;  %v3579_v37 = vpop.f32.mrf.mxu0  ;;  %v3774_v40 = vpop.f32.mrf.mxu3 }
 0x8ec   : > { %4085 = vmatmul.f32.gmra.mxu2 %v3817_v58  ;;  %4150 = vmatmul.f32.gmra.mxu3 %v3818_v46  ;;  %v3832_v58 = vmax.f32 %v3642_v50, 0.0  ;;  %v3833_v46 = vmax.f32 %v3707_v6, 0.0  ;;  %v3709_v56 = vpop.f32.mrf.mxu2  ;;  %v3580_v61 = vadd.f32 %v3579_v37, %v7454_v54 }
 0x8ed   : > { %v3834_v13 = vmax.f32 %v3772_v21, 0.0  ;;  %v3710_v26 = vadd.f32 %v3709_v56, %v7461_v43 }
 0x8f3   : > { %3958 = vmatmul.f32.gmra.mxu0 %v3819_v49  ;;  %4023 = vmatmul.f32.gmra.mxu1 %v3820_v12  ;;  %v3775_v49 = vadd.f32 %v3774_v40, %v7463_v38  ;;  %v3835_v12 = vmax.f32 %v3580_v61, 0.0 }
 0x8f4   : > { %4088 = vmatmul.f32.gmra.mxu2 %v3821_v15  ;;  %4153 = vmatmul.f32.gmra.mxu3 %v3822_v39  ;;  %v3836_v15 = vmax.f32 %v3645_v28, 0.0  ;;  %v3837_v39 = vmax.f32 %v3710_v26, 0.0 }
 0x8f5   : > { %v3838_v48 = vmax.f32 %v3775_v49, 0.0 }
 0x8fb   : > { %3961 = vmatmul.f32.gmra.mxu0 %v3823_v36  ;;  %4026 = vmatmul.f32.gmra.mxu1 %v3824_v11 }
 0x8fc   : > { %4091 = vmatmul.f32.gmra.mxu2 %v3825_v29  ;;  %4156 = vmatmul.f32.gmra.mxu3 %v3826_v24 }
 0x903   : > { %3964 = vmatmul.f32.gmra.mxu0 %v3827_v27  ;;  %4029 = vmatmul.f32.gmra.mxu1 %v3828_v52  ;;  %v7534_v52 = vld [vmem:[%s8002_s22] ss:$0 sm:$0xff] }
 0x904   : > { %4094 = vmatmul.f32.gmra.mxu2 %v3829_v62  ;;  %4159 = vmatmul.f32.gmra.mxu3 %v3830_v4 }
 0x90b   : > { %3967 = vmatmul.f32.gmra.mxu0 %v3831_v55  ;;  %4032 = vmatmul.f32.gmra.mxu1 %v3832_v58 }
 0x90c   : > { %4097 = vmatmul.f32.gmra.mxu2 %v3833_v46  ;;  %4162 = vmatmul.f32.gmra.mxu3 %v3834_v13 }
 0x913   : > { %3970 = vmatmul.f32.gmra.mxu0 %v3835_v12  ;;  %4035 = vmatmul.f32.gmra.mxu1 %v3836_v15 }
 0x914   : > { %4100 = vmatmul.f32.gmra.mxu2 %v3837_v39  ;;  %4165 = vmatmul.f32.gmra.mxu3 %v3838_v48 }
 0x918   : > { %v3582_v51 = vpop.f32.mrf.mxu0  ;;  %v3647_v18 = vpop.f32.mrf.mxu1 }
 0x919   : > { %v3583_v7 = vadd.f32 %v3582_v51, %v7454_v54  ;;  %v3648_v19 = vadd.f32 %v3647_v18, %v7456_v47 }
 0x91b   : > { %v3839_v10 = vmax.f32 %v3583_v7, 0.0  ;;  %v3840_v9 = vmax.f32 %v3648_v19, 0.0 }
 0x91d   : > { %3973 = vmatmul.f32.gmra.mxu0 %v3839_v10  ;;  %4038 = vmatmul.f32.gmra.mxu1 %v3840_v9 }
 0x91f   : > { %v3712_v25 = vpop.f32.mrf.mxu2  ;;  %v3777_v36 = vpop.f32.mrf.mxu3 }
 0x920   : > { %v3713_v11 = vadd.f32 %v3712_v25, %v7461_v43  ;;  %v3778_v29 = vadd.f32 %v3777_v36, %v7463_v38  ;;  %v3585_v57 = vpop.f32.mrf.mxu0  ;;  %v3650_v53 = vpop.f32.mrf.mxu1 }
 0x921   : > { %v3586_v16 = vadd.f32 %v3585_v57, %v7454_v54  ;;  %v3651_v22 = vadd.f32 %v3650_v53, %v7456_v47 }
 0x922   : > { %v3841_v24 = vmax.f32 %v3713_v11, 0.0  ;;  %v3842_v45 = vmax.f32 %v3778_v29, 0.0 }
 0x923   : > { %v3843_v60 = vmax.f32 %v3586_v16, 0.0  ;;  %v3844_v27 = vmax.f32 %v3651_v22, 0.0 }
 0x924   : > { %4103 = vmatmul.f32.gmra.mxu2 %v3841_v24  ;;  %4168 = vmatmul.f32.gmra.mxu3 %v3842_v45 }
 0x925   : > { %3976 = vmatmul.f32.gmra.mxu0 %v3843_v60  ;;  %4041 = vmatmul.f32.gmra.mxu1 %v3844_v27 }
 0x927   : > { %v3715_v0 = vpop.f32.mrf.mxu2  ;;  %v3780_v42 = vpop.f32.mrf.mxu3 }
 0x928   : > { %v3716_v62 = vadd.f32 %v3715_v0, %v7461_v43  ;;  %v3781_v4 = vadd.f32 %v3780_v42, %v7463_v38  ;;  %v3932_v54 = vpop.f32.mrf.mxu0  ;;  %v3997_v59 = vpop.f32.mrf.mxu1 }
 0x929   : > { %v3933_v6 = vadd.f32 %v7534_v52, %v3932_v54 }
 0x92a   : > { %v3845_v47 = vmax.f32 %v3716_v62, 0.0  ;;  %v3846_v50 = vmax.f32 %v3781_v4, 0.0 }
 0x92b   : > { %v3998_v21 = vadd.f32 %v3997_v59, %v3933_v6 }
 0x92c   : > { %4106 = vmatmul.f32.gmra.mxu2 %v3845_v47  ;;  %4171 = vmatmul.f32.gmra.mxu3 %v3846_v50 }
 0x92f   : > { %v4062_v55 = vpop.f32.mrf.mxu2  ;;  %v4127_v58 = vpop.f32.mrf.mxu3 }
 0x930   : > { %v4063_v46 = vadd.f32 %v4062_v55, %v3998_v21  ;;  %v3935_v13 = vpop.f32.mrf.mxu0  ;;  %v4000_v37 = vpop.f32.mrf.mxu1 }
 0x931   : > { %v3936_v56 = vadd.f32 %v7534_v52, %v3935_v13 }
 0x932   : > { %v4128_v31 = vadd.f32 %v4127_v58, %v4063_v46 }
 0x933   : > { %v4001_v38 = vadd.f32 %v4000_v37, %v3936_v56 }
 0x934   : > { %v7541_v43 = vadd.f32 %v4128_v31, %v7155_v20 }
 0x936   : > { %4193 = vadd.xlane.f32.xlu2 %v7541_v43 }
 0x937   : > { %v4065_v40 = vpop.f32.mrf.mxu2  ;;  %v4130_v61 = vpop.f32.mrf.mxu3 }
 0x938   : > { %v4066_v28 = vadd.f32 %v4065_v40, %v4001_v38  ;;  %v3938_v26 = vpop.f32.mrf.mxu0  ;;  %v4003_v49 = vpop.f32.mrf.mxu1 }
 0x939   : > { %v3939_v15 = vadd.f32 %v7534_v52, %v3938_v26 }
 0x93a   : > { %v4131_v12 = vadd.f32 %v4130_v61, %v4066_v28 }
 0x93b   : > { %v4004_v48 = vadd.f32 %v4003_v49, %v3939_v15 }
 0x93c   : > { %v7546_v39 = vadd.f32 %v4131_v12, %v7196_v2 }
 0x93e   : > { %4195 = vadd.xlane.f32.xlu0 %v7546_v39 }
 0x93f   : > { %v4068_v51 = vpop.f32.mrf.mxu2  ;;  %v4133_v20 = vpop.f32.mrf.mxu3 }
 0x940   : > { %v4069_v18 = vadd.f32 %v4068_v51, %v4004_v48  ;;  %v3941_v7 = vpop.f32.mrf.mxu0  ;;  %v4006_v19 = vpop.f32.mrf.mxu1 }
 0x941   : > { %v3942_v9 = vadd.f32 %v7534_v52, %v3941_v7 }
 0x942   : > { %v4134_v10 = vadd.f32 %v4133_v20, %v4069_v18 }
 0x943   : > { %v4007_v36 = vadd.f32 %v4006_v19, %v3942_v9 }
 0x944   : > { %v7551_v25 = vadd.f32 %v4134_v10, %v7225_v44 }
 0x946   : > { %4197 = vadd.xlane.f32.xlu1 %v7551_v25 }
 0x947   : > { %v4071_v11 = vpop.f32.mrf.mxu2  ;;  %v4136_v2 = vpop.f32.mrf.mxu3 }
 0x948   : > { %v4072_v29 = vadd.f32 %v4071_v11, %v4007_v36  ;;  %v3944_v24 = vpop.f32.mrf.mxu0  ;;  %v4009_v45 = vpop.f32.mrf.mxu1 }
 0x949   : > { %v3945_v53 = vadd.f32 %v7534_v52, %v3944_v24 }
 0x94a   : > { %v4137_v57 = vadd.f32 %v4136_v2, %v4072_v29 }
 0x94b   : > { %v4010_v22 = vadd.f32 %v4009_v45, %v3945_v53 }
 0x94c   : > { %v7556_v16 = vadd.f32 %v4137_v57, %v7239_v3 }
 0x94e   : > { %4199 = vadd.xlane.f32.xlu2 %v7556_v16 }
 0x94f   : > { %v4074_v60 = vpop.f32.mrf.mxu2  ;;  %v4139_v44 = vpop.f32.mrf.mxu3 }
 0x950   : > { %v4075_v27 = vadd.f32 %v4074_v60, %v4010_v22  ;;  %v3947_v0 = vpop.f32.mrf.mxu0  ;;  %v4012_v42 = vpop.f32.mrf.mxu1 }
 0x951   : > { %v3948_v4 = vadd.f32 %v7534_v52, %v3947_v0 }
 0x952   : > { %v4140_v62 = vadd.f32 %v4139_v44, %v4075_v27 }
 0x953   : > { %v4013_v59 = vadd.f32 %v4012_v42, %v3948_v4 }
 0x954   : > { %v7561_v54 = vadd.f32 %v4140_v62, %v7251_v30 }
 0x956   : > { %4201 = vadd.xlane.f32.xlu0 %v7561_v54 }
 0x957   : > { %v4077_v47 = vpop.f32.mrf.mxu2  ;;  %v4142_v3 = vpop.f32.mrf.mxu3 }
 0x958   : > { %v4078_v50 = vadd.f32 %v4077_v47, %v4013_v59  ;;  %v3950_v6 = vpop.f32.mrf.mxu0  ;;  %v4015_v21 = vpop.f32.mrf.mxu1 }
 0x959   : > { %v3951_v58 = vadd.f32 %v7534_v52, %v3950_v6 }
 0x95a   : > { %v4143_v55 = vadd.f32 %v4142_v3, %v4078_v50 }
 0x95b   : > { %v4016_v13 = vadd.f32 %v4015_v21, %v3951_v58 }
 0x95c   : > { %v7566_v46 = vadd.f32 %v4143_v55, %v7260_v14 }
 0x95e   : > { %4203 = vadd.xlane.f32.xlu1 %v7566_v46 }
 0x95f   : > { %v4080_v37 = vpop.f32.mrf.mxu2  ;;  %v4145_v30 = vpop.f32.mrf.mxu3 }
 0x960   : > { %v4081_v31 = vadd.f32 %v4080_v37, %v4016_v13  ;;  %v3953_v56 = vpop.f32.mrf.mxu0  ;;  %v4018_v38 = vpop.f32.mrf.mxu1 }
 0x961   : > { %v3954_v61 = vadd.f32 %v7534_v52, %v3953_v56 }
 0x962   : > { %v4146_v40 = vadd.f32 %v4145_v30, %v4081_v31 }
 0x963   : > { %v4019_v26 = vadd.f32 %v4018_v38, %v3954_v61 }
 0x964   : > { %v7571_v28 = vadd.f32 %v4146_v40, %v7268_v32 }
 0x966   : > { %4205 = vadd.xlane.f32.xlu2 %v7571_v28 }
 0x967   : > { %v4083_v49 = vpop.f32.mrf.mxu2  ;;  %v4148_v14 = vpop.f32.mrf.mxu3 }
 0x968   : > { %v4084_v12 = vadd.f32 %v4083_v49, %v4019_v26  ;;  %v3956_v15 = vpop.f32.mrf.mxu0  ;;  %v4021_v48 = vpop.f32.mrf.mxu1 }
 0x969   : > { %v3957_v20 = vadd.f32 %v7534_v52, %v3956_v15 }
 0x96a   : > { %v4149_v51 = vadd.f32 %v4148_v14, %v4084_v12 }
 0x96b   : > { %v4022_v7 = vadd.f32 %v4021_v48, %v3957_v20 }
 0x96c   : > { %v7576_v18 = vadd.f32 %v4149_v51, %v7303_v8 }
 0x96e   : > { %4207 = vadd.xlane.f32.xlu0 %v7576_v18 }
 0x96f   : > { %v4086_v19 = vpop.f32.mrf.mxu2  ;;  %v4151_v32 = vpop.f32.mrf.mxu3 }
 0x970   : > { %v4087_v10 = vadd.f32 %v4086_v19, %v4022_v7  ;;  %v3959_v9 = vpop.f32.mrf.mxu0  ;;  %v4024_v36 = vpop.f32.mrf.mxu1 }
 0x971   : > { %v3960_v2 = vadd.f32 %v7534_v52, %v3959_v9 }
 0x972   : > { %v4152_v11 = vadd.f32 %v4151_v32, %v4087_v10 }
 0x973   : > { %v4025_v24 = vadd.f32 %v4024_v36, %v3960_v2 }
 0x974   : > { %v7581_v29 = vadd.f32 %v4152_v11, %v7341_v33 }
 0x976   : > { %4209 = vadd.xlane.f32.xlu1 %v7581_v29 }
 0x977   : > { %v4089_v45 = vpop.f32.mrf.mxu2  ;;  %v4154_v8 = vpop.f32.mrf.mxu3 }
 0x978   : > { %v4090_v57 = vadd.f32 %v4089_v45, %v4025_v24  ;;  %v3962_v53 = vpop.f32.mrf.mxu0  ;;  %v4027_v22 = vpop.f32.mrf.mxu1 }
 0x979   : > { %v3963_v44 = vadd.f32 %v7534_v52, %v3962_v53 }
 0x97a   : > { %v4155_v60 = vadd.f32 %v4154_v8, %v4090_v57 }
 0x97b   : > { %v4028_v0 = vadd.f32 %v4027_v22, %v3963_v44 }
 0x97c   : > { %v7586_v27 = vadd.f32 %v4155_v60, %v7366_v23 }
 0x97e   : > { %4211 = vadd.xlane.f32.xlu2 %v7586_v27 }
 0x97f   : > { %v4092_v42 = vpop.f32.mrf.mxu2  ;;  %v4157_v33 = vpop.f32.mrf.mxu3 }
 0x980   : > { %v4093_v62 = vadd.f32 %v4092_v42, %v4028_v0  ;;  %v3965_v4 = vpop.f32.mrf.mxu0  ;;  %v4030_v59 = vpop.f32.mrf.mxu1 }
 0x981   : > { %v3966_v3 = vadd.f32 %v7534_v52, %v3965_v4 }
 0x982   : > { %v4158_v47 = vadd.f32 %v4157_v33, %v4093_v62 }
 0x983   : > { %v4031_v6 = vadd.f32 %v4030_v59, %v3966_v3 }
 0x984   : > { %v7591_v50 = vadd.f32 %v4158_v47, %v7388_v5 }
 0x986   : > { %4213 = vadd.xlane.f32.xlu0 %v7591_v50 }
 0x987   : > { %v4095_v21 = vpop.f32.mrf.mxu2  ;;  %v4160_v23 = vpop.f32.mrf.mxu3 }
 0x988   : > { %v4096_v55 = vadd.f32 %v4095_v21, %v4031_v6  ;;  %v3968_v58 = vpop.f32.mrf.mxu0  ;;  %v4033_v30 = vpop.f32.mrf.mxu1 }
 0x989   : > { %v3969_v37 = vadd.f32 %v7534_v52, %v3968_v58 }
 0x98a   : > { %v4161_v13 = vadd.f32 %v4160_v23, %v4096_v55 }
 0x98b   : > { %v4034_v56 = vadd.f32 %v4033_v30, %v3969_v37 }
 0x98c   : > { %v7596_v31 = vadd.f32 %v4161_v13, %v7407_v35 }
 0x98e   : > { %4215 = vadd.xlane.f32.xlu1 %v7596_v31 }
 0x98f   : > { %v4098_v38 = vpop.f32.mrf.mxu2  ;;  %v4163_v5 = vpop.f32.mrf.mxu3 }
 0x990   : > { %v4099_v40 = vadd.f32 %v4098_v38, %v4034_v56  ;;  %v3971_v61 = vpop.f32.mrf.mxu0  ;;  %v4036_v12 = vpop.f32.mrf.mxu1 }
 0x991   : > { %v3972_v49 = vadd.f32 %v7534_v52, %v3971_v61 }
 0x992   : > { %v4164_v26 = vadd.f32 %v4163_v5, %v4099_v40 }
 0x993   : > { %v4037_v15 = vadd.f32 %v4036_v12, %v3972_v49 }
 0x994   : > { %v7601_v14 = vadd.f32 %v4164_v26, %v7424_v1 }
 0x996   : > { %4217 = vadd.xlane.f32.xlu2 %v7601_v14 }
 0x997   : > { %v4101_v48 = vpop.f32.mrf.mxu2  ;;  %v4166_v51 = vpop.f32.mrf.mxu3 }
 0x998   : > { %v4102_v35 = vadd.f32 %v4101_v48, %v4037_v15 }
 0x99a   : > { %v4167_v20 = vadd.f32 %v4166_v51, %v4102_v35  ;;  %v3974_v19 = vpop.f32.mrf.mxu0  ;;  %v4039_v10 = vpop.f32.mrf.mxu1 }
 0x99b   : > { %v3975_v32 = vadd.f32 %v7534_v52, %v3974_v19 }
 0x99c   : > { %v7605_v7 = vadd.f32 %v4167_v20, %v7432_v17 }
 0x99d   : > { %v4040_v9 = vadd.f32 %v4039_v10, %v3975_v32 }
 0x99e   : > { %4219 = vadd.xlane.f32.xlu0 %v7605_v7 }
 0x9a2   : > { %v3977_v11 = vpop.f32.mrf.mxu0  ;;  %v4042_v22 = vpop.f32.mrf.mxu1 }
 0x9a3   : > { %v3978_v8 = vadd.f32 %v7534_v52, %v3977_v11 }
 0x9a5   : > { %v4043_v60 = vadd.f32 %v4042_v22, %v3978_v8 }
 0x9a7   : > { %v4104_v1 = vpop.f32.mrf.mxu2  ;;  %v4169_v2 = vpop.f32.mrf.mxu3 }
 0x9a8   : > { %v4105_v36 = vadd.f32 %v4104_v1, %v4040_v9 }
 0x9a9   : > { %v4194_v45 = vpop.xlane.xlu2 %4193 }
 0x9aa   : > { %v4170_v24 = vadd.f32 %v4169_v2, %v4105_v36  ;;  %v4225_v57 = vmul.f32 %v4194_v45, %v7005_v41 }
 0x9ac   : > { %v7612_v17 = vadd.f32 %v4170_v24, %v7443_v63  ;;  %v7615_v53 = vsub.f32 %v7541_v43, %v4225_v57 }
 0x9ae   : > { %4221 = vadd.xlane.f32.xlu1 %v7612_v17  ;;  %v4257_v44 = vmul.f32 %v7615_v53, %v7615_v53 }
 0x9af   : > { %v4107_v0 = vpop.f32.mrf.mxu2  ;;  %v4172_v33 = vpop.f32.mrf.mxu3 }
 0x9b0   : > { %v4108_v42 = vadd.f32 %v4107_v0, %v4043_v60  ;;  %4273 = vadd.xlane.f32.xlu0 %v4257_v44 }
 0x9b1   : > { %v4196_v52 = vpop.xlane.xlu0 %4195 }
 0x9b2   : > { %v4173_v62 = vadd.f32 %v4172_v33, %v4108_v42  ;;  %v4226_v4 = vmul.f32 %v4196_v52, %v7005_v41 }
 0x9b4   : > { %v7622_v63 = vsub.f32 %v7546_v39, %v4226_v4  ;;  %v7625_v43 = vadd.f32 %v4173_v62, %v7459_v34 }
 0x9b6   : > { %4223 = vadd.xlane.f32.xlu2 %v7625_v43  ;;  %v4258_v59 = vmul.f32 %v7622_v63, %v7622_v63 }
 0x9b8   : > { %4275 = vadd.xlane.f32.xlu1 %v4258_v59 }
 0x9b9   : > { %v4198_v47 = vpop.xlane.xlu1 %4197 }
 0x9ba   : > { %v4227_v3 = vmul.f32 %v4198_v47, %v7005_v41 }
 0x9bc   : > { %v7632_v6 = vsub.f32 %v7551_v25, %v4227_v3 }
 0x9be   : > { %v4259_v21 = vmul.f32 %v7632_v6, %v7632_v6 }
 0x9c0   : > { %4277 = vadd.xlane.f32.xlu2 %v4259_v21 }
 0x9c1   : > { %v4200_v39 = vpop.xlane.xlu2 %4199 }
 0x9c2   : > { %v4228_v34 = vmul.f32 %v4200_v39, %v7005_v41 }
 0x9c4   : > { %v7638_v23 = vsub.f32 %v7556_v16, %v4228_v34 }
 0x9c6   : > { %v4260_v55 = vmul.f32 %v7638_v23, %v7638_v23 }
 0x9c8   : > { %4279 = vadd.xlane.f32.xlu0 %v4260_v55 }
 0x9c9   : > { %v4202_v58 = vpop.xlane.xlu0 %4201 }
 0x9ca   : > { %v4229_v13 = vmul.f32 %v4202_v58, %v7005_v41 }
 0x9cc   : > { %v7644_v25 = vsub.f32 %v7561_v54, %v4229_v13 }
 0x9ce   : > { %v4261_v37 = vmul.f32 %v7644_v25, %v7644_v25 }
 0x9d0   : > { %4281 = vadd.xlane.f32.xlu1 %v4261_v37 }
 0x9d1   : > { %v4204_v30 = vpop.xlane.xlu1 %4203 }
 0x9d2   : > { %v4230_v56 = vmul.f32 %v4204_v30, %v7005_v41 }
 0x9d4   : > { %v7650_v16 = vsub.f32 %v7566_v46, %v4230_v56 }
 0x9d6   : > { %v4262_v38 = vmul.f32 %v7650_v16, %v7650_v16 }
 0x9d8   : > { %4283 = vadd.xlane.f32.xlu2 %v4262_v38 }
 0x9d9   : > { %v4206_v5 = vpop.xlane.xlu2 %4205 }
 0x9da   : > { %v4231_v40 = vmul.f32 %v4206_v5, %v7005_v41  ;;  %v7720_v5 = vld [vmem:[%s8003_s1] ss:$0 sm:$0xff] }
 0x9dc   : > { %v7656_v54 = vsub.f32 %v7571_v28, %v4231_v40 }
 0x9de   : > { %v4263_v61 = vmul.f32 %v7656_v54, %v7656_v54 }
 0x9e0   : > { %4285 = vadd.xlane.f32.xlu0 %v4263_v61 }
 0x9e1   : > { %v4208_v26 = vpop.xlane.xlu0 %4207 }
 0x9e2   : > { %v4232_v49 = vmul.f32 %v4208_v26, %v7005_v41  ;;  %v7725_v26 = vld [vmem:[%s8004_s4] ss:$0 sm:$0xff] }
 0x9e4   : > { %v7662_v46 = vsub.f32 %v7576_v18, %v4232_v49 }
 0x9e6   : > { %v4264_v12 = vmul.f32 %v7662_v46, %v7662_v46 }
 0x9e8   : > { %4287 = vadd.xlane.f32.xlu1 %v4264_v12 }
 0x9e9   : > { %v4210_v15 = vpop.xlane.xlu1 %4209 }
 0x9ea   : > { %v4233_v48 = vmul.f32 %v4210_v15, %v7005_v41 }
 0x9ec   : > { %v7668_v28 = vsub.f32 %v7581_v29, %v4233_v48 }
 0x9ee   : > { %v4265_v35 = vmul.f32 %v7668_v28, %v7668_v28 }
 0x9f0   : > { %4289 = vadd.xlane.f32.xlu2 %v4265_v35 }
 0x9f1   : > { %v4212_v51 = vpop.xlane.xlu2 %4211 }
 0x9f2   : > { %v4234_v20 = vmul.f32 %v4212_v51, %v7005_v41 }
 0x9f4   : > { %v7674_v18 = vsub.f32 %v7586_v27, %v4234_v20 }
 0x9f6   : > { %v4266_v19 = vmul.f32 %v7674_v18, %v7674_v18 }
 0x9f8   : > { %4291 = vadd.xlane.f32.xlu0 %v4266_v19 }
 0x9f9   : > { %v4214_v32 = vpop.xlane.xlu0 %4213 }
 0x9fa   : > { %v4235_v10 = vmul.f32 %v4214_v32, %v7005_v41 }
 0x9fc   : > { %v7680_v29 = vsub.f32 %v7591_v50, %v4235_v10 }
 0x9fe   : > { %v4267_v9 = vmul.f32 %v7680_v29, %v7680_v29 }
 0xa00   : > { %4293 = vadd.xlane.f32.xlu1 %v4267_v9 }
 0xa01   : > { %v4216_v1 = vpop.xlane.xlu1 %4215 }
 0xa02   : > { %v4236_v36 = vmul.f32 %v4216_v1, %v7005_v41 }
 0xa04   : > { %v7686_v27 = vsub.f32 %v7596_v31, %v4236_v36 }
 0xa06   : > { %v4268_v11 = vmul.f32 %v7686_v27, %v7686_v27 }
 0xa08   : > { %4295 = vadd.xlane.f32.xlu2 %v4268_v11 }
 0xa09   : > { %v4218_v2 = vpop.xlane.xlu2 %4217 }
 0xa0a   : > { %v4237_v24 = vmul.f32 %v4218_v2, %v7005_v41 }
 0xa0c   : > { %v7692_v50 = vsub.f32 %v7601_v14, %v4237_v24 }
 0xa0e   : > { %v4269_v45 = vmul.f32 %v7692_v50, %v7692_v50 }
 0xa10   : > { %4297 = vadd.xlane.f32.xlu0 %v4269_v45 }
 0xa11   : > { %v4220_v8 = vpop.xlane.xlu0 %4219 }
 0xa12   : > { %v4238_v57 = vmul.f32 %v4220_v8, %v7005_v41 }
 0xa14   : > { %v7698_v31 = vsub.f32 %v7605_v7, %v4238_v57 }
 0xa16   : > { %v4270_v22 = vmul.f32 %v7698_v31, %v7698_v31 }
 0xa18   : > { %4299 = vadd.xlane.f32.xlu1 %v4270_v22 }
 0xa21   : > { %v4222_v60 = vpop.xlane.xlu1 %4221 }
 0xa22   : > { %v4239_v44 = vmul.f32 %v4222_v60, %v7005_v41 }
 0xa23   : > { %v4274_v0 = vpop.xlane.xlu0 %4273 }
 0xa24   : > { %v7704_v14 = vsub.f32 %v7612_v17, %v4239_v44  ;;  %v4305_v42 = vmul.f32 %v4274_v0, %v7005_v41 }
 0xa26   : > { %v4271_v33 = vmul.f32 %v7704_v14, %v7704_v14  ;;  %v4321_v52 = vadd.f32 1e-05, %v4305_v42 }
 0xa28   : > { %4301 = vadd.xlane.f32.xlu2 %v4271_v33  ;;  %5167 = vrsqrt.f32 %v4321_v52  ;;  %vm4343_vm10 = vweird.f32 %v4321_v52 }
 0xa29   : > { %v4224_v7 = vpop.xlane.xlu2 %4223 }
 0xa2a   : > { %v4240_v62 = vmul.f32 %v4224_v7, %v7005_v41 }
 0xa2b   : > { %v4276_v4 = vpop.xlane.xlu1 %4275 }
 0xa2c   : > { %v7711_v59 = vsub.f32 %v7625_v43, %v4240_v62  ;;  %v4306_v47 = vmul.f32 %v4276_v4, %v7005_v41 }
 0xa2e   : > { %v5168_v17 = vpop.eup %5167  ;;  %v4322_v3 = vadd.f32 1e-05, %v4306_v47  ;;  %v4272_v21 = vmul.f32 %v7711_v59, %v7711_v59 }
 0xa2f   : > { %v4338_v39 = vmul.f32 %v5168_v17, %v4321_v52  ;;  %vm4344_vm9 = vweird.f32 %v5168_v17 }
 0xa30   : > { %5169 = vrsqrt.f32 %v4322_v3  ;;  %4303 = vadd.xlane.f32.xlu0 %v4272_v21  ;;  %vm4345_vm11 = vmor %vm4343_vm10, %vm4344_vm9  ;;  %vm4353_vm13 = vweird.f32 %v4322_v3 }
 0xa31   : > { %v4339_v34 = vmul.f32 %v5168_v17, %v4338_v39 }
 0xa33   : > { %v4340_v55 = vmul.f32 0.5, %v4339_v34  ;;  %v4278_v58 = vpop.xlane.xlu2 %4277 }
 0xa34   : > { %v4307_v13 = vmul.f32 %v4278_v58, %v7005_v41 }
 0xa35   : > { %v4341_v37 = vsub.f32 1.5, %v4340_v55 }
 0xa36   : > { %v5170_v30 = vpop.eup %5169  ;;  %v4323_v43 = vadd.f32 1e-05, %v4307_v13 }
 0xa37   : > { %v4342_v56 = vmul.f32 %v5168_v17, %v4341_v37  ;;  %v4348_v38 = vmul.f32 %v5170_v30, %v4322_v3  ;;  %vm4354_vm12 = vweird.f32 %v5170_v30 }
 0xa38   : > { %5171 = vrsqrt.f32 %v4323_v43  ;;  %vm4355_vm14 = vmor %vm4353_vm13, %vm4354_vm12  ;;  %vm4363_vm1 = vweird.f32 %v4323_v43 }
 0xa39   : > { %v4346_v40 = vsel %vm4345_vm11, %v5168_v17, %v4342_v56  ;;  %v4349_v61 = vmul.f32 %v5170_v30, %v4348_v38 }
 0xa3a   : > { %v4497_v49 = vmul.f32 %v4346_v40, %v7615_v53 }
 0xa3b   : > { %v4350_v12 = vmul.f32 0.5, %v4349_v61  ;;  %v4280_v15 = vpop.xlane.xlu0 %4279 }
 0xa3c   : > { %v4516_v48 = vmul.f32 %v7720_v5, %v4497_v49  ;;  %v4308_v35 = vmul.f32 %v4280_v15, %v7005_v41 }
 0xa3d   : > { %v4351_v51 = vsub.f32 1.5, %v4350_v12 }
 0xa3e   : > { %v5172_v20 = vpop.eup %5171  ;;  %v4535_v19 = vadd.f32 %v7725_v26, %v4516_v48  ;;  %v4324_v32 = vadd.f32 1e-05, %v4308_v35 }
 0xa3f   : > { %v4352_v10 = vmul.f32 %v5170_v30, %v4351_v51  ;;  %v4358_v9 = vmul.f32 %v5172_v20, %v4323_v43  ;;  %vm4364_vm15 = vweird.f32 %v5172_v20 }
 0xa40   : > { %4551 = vst [vmem:[%s5845_s23] sm:$0xff] %v4535_v19  ;;  %5173 = vrsqrt.f32 %v4324_v32  ;;  %vm4365_vm2 = vmor %vm4363_vm1, %vm4364_vm15  ;;  %vm4373_vm4 = vweird.f32 %v4324_v32 }
 0xa41   : > { %v4356_v53 = vsel %vm4355_vm14, %v5170_v30, %v4352_v10  ;;  %v4359_v1 = vmul.f32 %v5172_v20, %v4358_v9 }
 0xa42   : > { %v4498_v36 = vmul.f32 %v4356_v53, %v7622_v63 }
 0xa43   : > { %v4360_v11 = vmul.f32 0.5, %v4359_v1  ;;  %v4282_v2 = vpop.xlane.xlu1 %4281 }
 0xa44   : > { %v4517_v24 = vmul.f32 %v7720_v5, %v4498_v36  ;;  %v4309_v45 = vmul.f32 %v4282_v2, %v7005_v41 }
 0xa45   : > { %v4361_v8 = vsub.f32 1.5, %v4360_v11 }
 0xa46   : > { %v5174_v57 = vpop.eup %5173  ;;  %v4536_v22 = vadd.f32 %v7725_v26, %v4517_v24  ;;  %v4325_v60 = vadd.f32 1e-05, %v4309_v45 }
 0xa47   : > { %v4362_v44 = vmul.f32 %v5172_v20, %v4361_v8  ;;  %v4368_v0 = vmul.f32 %v5174_v57, %v4324_v32  ;;  %vm4374_vm3 = vweird.f32 %v5174_v57 }
 0xa48   : > { %4552 = vst [vmem:[%s5845_s23 + $0x8] sm:$0xff] %v4536_v22  ;;  %5175 = vrsqrt.f32 %v4325_v60  ;;  %vm4375_vm5 = vmor %vm4373_vm4, %vm4374_vm3  ;;  %vm4383_vm7 = vweird.f32 %v4325_v60 }
 0xa49   : > { %v4366_v63 = vsel %vm4365_vm2, %v5172_v20, %v4362_v44  ;;  %v4369_v42 = vmul.f32 %v5174_v57, %v4368_v0 }
 0xa4a   : > { %v4499_v33 = vmul.f32 %v4366_v63, %v7632_v6 }
 0xa4b   : > { %v4370_v52 = vmul.f32 0.5, %v4369_v42  ;;  %v4284_v7 = vpop.xlane.xlu2 %4283 }
 0xa4c   : > { %v4518_v62 = vmul.f32 %v7720_v5, %v4499_v33  ;;  %v4310_v4 = vmul.f32 %v4284_v7, %v7005_v41 }
 0xa4d   : > { %v4371_v47 = vsub.f32 1.5, %v4370_v52 }
 0xa4e   : > { %v5176_v17 = vpop.eup %5175  ;;  %v4537_v3 = vadd.f32 %v7725_v26, %v4518_v62  ;;  %v4326_v21 = vadd.f32 1e-05, %v4310_v4 }
 0xa4f   : > { %v4372_v39 = vmul.f32 %v5174_v57, %v4371_v47  ;;  %v4378_v34 = vmul.f32 %v5176_v17, %v4325_v60  ;;  %vm4384_vm6 = vweird.f32 %v5176_v17 }
 0xa50   : > { %4553 = vst [vmem:[%s5845_s23 + $0x10] sm:$0xff] %v4537_v3  ;;  %5177 = vrsqrt.f32 %v4326_v21  ;;  %vm4385_vm8 = vmor %vm4383_vm7, %vm4384_vm6  ;;  %vm4393_vm9 = vweird.f32 %v4326_v21 }
 0xa51   : > { %v4376_v6 = vsel %vm4375_vm5, %v5174_v57, %v4372_v39  ;;  %v4379_v55 = vmul.f32 %v5176_v17, %v4378_v34 }
 0xa52   : > { %v4500_v58 = vmul.f32 %v4376_v6, %v7638_v23 }
 0xa53   : > { %v4380_v13 = vmul.f32 0.5, %v4379_v55  ;;  %v4286_v37 = vpop.xlane.xlu0 %4285 }
 0xa54   : > { %v4519_v30 = vmul.f32 %v7720_v5, %v4500_v58  ;;  %v4311_v43 = vmul.f32 %v4286_v37, %v7005_v41 }
 0xa55   : > { %v4381_v56 = vsub.f32 1.5, %v4380_v13 }
 0xa56   : > { %v5178_v38 = vpop.eup %5177  ;;  %v4538_v40 = vadd.f32 %v7725_v26, %v4519_v30  ;;  %v4327_v61 = vadd.f32 1e-05, %v4311_v43 }
 0xa57   : > { %v4382_v49 = vmul.f32 %v5176_v17, %v4381_v56  ;;  %v4388_v12 = vmul.f32 %v5178_v38, %v4326_v21  ;;  %vm4394_vm0 = vweird.f32 %v5178_v38 }
 0xa58   : > { %4554 = vst [vmem:[%s5845_s23 + $0x18] sm:$0xff] %v4538_v40  ;;  %5179 = vrsqrt.f32 %v4327_v61  ;;  %vm4395_vm10 = vmor %vm4393_vm9, %vm4394_vm0  ;;  %vm4403_vm12 = vweird.f32 %v4327_v61 }
 0xa59   : > { %v4386_v23 = vsel %vm4385_vm8, %v5176_v17, %v4382_v49  ;;  %v4389_v15 = vmul.f32 %v5178_v38, %v4388_v12 }
 0xa5a   : > { %v4501_v48 = vmul.f32 %v4386_v23, %v7644_v25 }
 0xa5b   : > { %v4390_v35 = vmul.f32 0.5, %v4389_v15  ;;  %v4288_v51 = vpop.xlane.xlu1 %4287 }
 0xa5c   : > { %v4520_v20 = vmul.f32 %v7720_v5, %v4501_v48  ;;  %v4312_v19 = vmul.f32 %v4288_v51, %v7005_v41 }
 0xa5d   : > { %v4391_v32 = vsub.f32 1.5, %v4390_v35 }
 0xa5e   : > { %v5180_v10 = vpop.eup %5179  ;;  %v4539_v9 = vadd.f32 %v7725_v26, %v4520_v20  ;;  %v4328_v53 = vadd.f32 1e-05, %v4312_v19 }
 0xa5f   : > { %v4392_v1 = vmul.f32 %v5178_v38, %v4391_v32  ;;  %v4398_v36 = vmul.f32 %v5180_v10, %v4327_v61  ;;  %vm4404_vm11 = vweird.f32 %v5180_v10 }
 0xa60   : > { %4555 = vst [vmem:[%s5845_s23 + $0x20] sm:$0xff] %v4539_v9  ;;  %5181 = vrsqrt.f32 %v4328_v53  ;;  %vm4405_vm13 = vmor %vm4403_vm12, %vm4404_vm11  ;;  %vm4413_vm15 = vweird.f32 %v4328_v53 }
 0xa61   : > { %v4396_v25 = vsel %vm4395_vm10, %v5178_v38, %v4392_v1  ;;  %v4399_v11 = vmul.f32 %v5180_v10, %v4398_v36 }
 0xa62   : > { %v4502_v2 = vmul.f32 %v4396_v25, %v7650_v16 }
 0xa63   : > { %v4400_v24 = vmul.f32 0.5, %v4399_v11  ;;  %v4290_v45 = vpop.xlane.xlu2 %4289 }
 0xa64   : > { %v4521_v8 = vmul.f32 %v7720_v5, %v4502_v2  ;;  %v4313_v57 = vmul.f32 %v4290_v45, %v7005_v41 }
 0xa65   : > { %v4401_v22 = vsub.f32 1.5, %v4400_v24 }
 0xa66   : > { %v5182_v60 = vpop.eup %5181  ;;  %v4540_v44 = vadd.f32 %v7725_v26, %v4521_v8  ;;  %v4329_v0 = vadd.f32 1e-05, %v4313_v57 }
 0xa67   : > { %v4402_v63 = vmul.f32 %v5180_v10, %v4401_v22  ;;  %v4408_v42 = vmul.f32 %v5182_v60, %v4328_v53  ;;  %vm4414_vm14 = vweird.f32 %v5182_v60 }
 0xa68   : > { %4556 = vst [vmem:[%s5845_s23 + $0x28] sm:$0xff] %v4540_v44  ;;  %5183 = vrsqrt.f32 %v4329_v0  ;;  %vm4415_vm1 = vmor %vm4413_vm15, %vm4414_vm14  ;;  %vm4423_vm3 = vweird.f32 %v4329_v0 }
 0xa69   : > { %v4406_v16 = vsel %vm4405_vm13, %v5180_v10, %v4402_v63  ;;  %v4409_v33 = vmul.f32 %v5182_v60, %v4408_v42 }
 0xa6a   : > { %v4503_v52 = vmul.f32 %v4406_v16, %v7656_v54 }
 0xa6b   : > { %v4410_v7 = vmul.f32 0.5, %v4409_v33  ;;  %v4292_v62 = vpop.xlane.xlu0 %4291 }
 0xa6c   : > { %v4522_v4 = vmul.f32 %v7720_v5, %v4503_v52  ;;  %v4314_v47 = vmul.f32 %v4292_v62, %v7005_v41 }
 0xa6d   : > { %v4411_v17 = vsub.f32 1.5, %v4410_v7 }
 0xa6e   : > { %v5184_v3 = vpop.eup %5183  ;;  %v4541_v21 = vadd.f32 %v7725_v26, %v4522_v4  ;;  %v4330_v39 = vadd.f32 1e-05, %v4314_v47 }
 0xa6f   : > { %v4412_v34 = vmul.f32 %v5182_v60, %v4411_v17  ;;  %v4418_v6 = vmul.f32 %v5184_v3, %v4329_v0  ;;  %vm4424_vm2 = vweird.f32 %v5184_v3 }
 0xa70   : > { %4557 = vst [vmem:[%s5845_s23 + $0x30] sm:$0xff] %v4541_v21  ;;  %5185 = vrsqrt.f32 %v4330_v39  ;;  %vm4425_vm4 = vmor %vm4423_vm3, %vm4424_vm2  ;;  %vm4433_vm6 = vweird.f32 %v4330_v39 }
 0xa71   : > { %v4416_v54 = vsel %vm4415_vm1, %v5182_v60, %v4412_v34  ;;  %v4419_v55 = vmul.f32 %v5184_v3, %v4418_v6 }
 0xa72   : > { %v4504_v58 = vmul.f32 %v4416_v54, %v7662_v46 }
 0xa73   : > { %v4420_v13 = vmul.f32 0.5, %v4419_v55  ;;  %v4294_v37 = vpop.xlane.xlu1 %4293 }
 0xa74   : > { %v4523_v30 = vmul.f32 %v7720_v5, %v4504_v58  ;;  %v4315_v43 = vmul.f32 %v4294_v37, %v7005_v41 }
 0xa75   : > { %v4421_v56 = vsub.f32 1.5, %v4420_v13 }
 0xa76   : > { %v5186_v38 = vpop.eup %5185  ;;  %v4542_v40 = vadd.f32 %v7725_v26, %v4523_v30  ;;  %v4331_v61 = vadd.f32 1e-05, %v4315_v43 }
 0xa77   : > { %v4422_v49 = vmul.f32 %v5184_v3, %v4421_v56  ;;  %v4428_v12 = vmul.f32 %v5186_v38, %v4330_v39  ;;  %vm4434_vm5 = vweird.f32 %v5186_v38 }
 0xa78   : > { %4558 = vst [vmem:[%s5845_s23 + $0x38] sm:$0xff] %v4542_v40  ;;  %5187 = vrsqrt.f32 %v4331_v61  ;;  %vm4435_vm7 = vmor %vm4433_vm6, %vm4434_vm5  ;;  %vm4443_vm0 = vweird.f32 %v4331_v61 }
 0xa79   : > { %v4426_v46 = vsel %vm4425_vm4, %v5184_v3, %v4422_v49  ;;  %v4429_v23 = vmul.f32 %v5186_v38, %v4428_v12 }
 0xa7a   : > { %v4505_v15 = vmul.f32 %v4426_v46, %v7668_v28 }
 0xa7b   : > { %v4430_v48 = vmul.f32 0.5, %v4429_v23  ;;  %v4296_v35 = vpop.xlane.xlu2 %4295 }
 0xa7c   : > { %v4524_v51 = vmul.f32 %v7720_v5, %v4505_v15  ;;  %v4316_v20 = vmul.f32 %v4296_v35, %v7005_v41 }
 0xa7d   : > { %v4431_v19 = vsub.f32 1.5, %v4430_v48 }
 0xa7e   : > { %v5188_v32 = vpop.eup %5187  ;;  %v4543_v10 = vadd.f32 %v7725_v26, %v4524_v51  ;;  %v4332_v9 = vadd.f32 1e-05, %v4316_v20 }
 0xa7f   : > { %v4432_v53 = vmul.f32 %v5186_v38, %v4431_v19  ;;  %v4438_v1 = vmul.f32 %v5188_v32, %v4331_v61  ;;  %vm4444_vm8 = vweird.f32 %v5188_v32 }
 0xa80   : > { %4559 = vst [vmem:[%s5845_s23 + $0x40] sm:$0xff] %v4543_v10  ;;  %5189 = vrsqrt.f32 %v4332_v9  ;;  %vm4445_vm9 = vmor %vm4443_vm0, %vm4444_vm8  ;;  %vm4453_vm11 = vweird.f32 %v4332_v9 }
 0xa81   : > { %v4436_v28 = vsel %vm4435_vm7, %v5186_v38, %v4432_v53  ;;  %v4439_v36 = vmul.f32 %v5188_v32, %v4438_v1 }
 0xa82   : > { %v4506_v25 = vmul.f32 %v4436_v28, %v7674_v18 }
 0xa83   : > { %v4440_v11 = vmul.f32 0.5, %v4439_v36  ;;  %v4298_v2 = vpop.xlane.xlu0 %4297 }
 0xa84   : > { %v4525_v24 = vmul.f32 %v7720_v5, %v4506_v25  ;;  %v4317_v45 = vmul.f32 %v4298_v2, %v7005_v41 }
 0xa85   : > { %v4441_v8 = vsub.f32 1.5, %v4440_v11 }
 0xa86   : > { %v5190_v57 = vpop.eup %5189  ;;  %v4544_v22 = vadd.f32 %v7725_v26, %v4525_v24  ;;  %v4333_v60 = vadd.f32 1e-05, %v4317_v45 }
 0xa87   : > { %v4442_v44 = vmul.f32 %v5188_v32, %v4441_v8  ;;  %v4448_v0 = vmul.f32 %v5190_v57, %v4332_v9  ;;  %vm4454_vm10 = vweird.f32 %v5190_v57 }
 0xa88   : > { %4560 = vst [vmem:[%s5845_s23 + $0x48] sm:$0xff] %v4544_v22  ;;  %5191 = vrsqrt.f32 %v4333_v60  ;;  %vm4455_vm12 = vmor %vm4453_vm11, %vm4454_vm10  ;;  %vm4463_vm14 = vweird.f32 %v4333_v60 }
 0xa89   : > { %v4446_v18 = vsel %vm4445_vm9, %v5188_v32, %v4442_v44  ;;  %v4449_v63 = vmul.f32 %v5190_v57, %v4448_v0 }
 0xa8a   : > { %v4507_v42 = vmul.f32 %v4446_v18, %v7680_v29 }
 0xa8b   : > { %v4450_v16 = vmul.f32 0.5, %v4449_v63  ;;  %v4300_v33 = vpop.xlane.xlu1 %4299 }
 0xa8c   : > { %v4526_v52 = vmul.f32 %v7720_v5, %v4507_v42  ;;  %v4318_v7 = vmul.f32 %v4300_v33, %v7005_v41 }
 0xa8d   : > { %v4451_v62 = vsub.f32 1.5, %v4450_v16 }
 0xa8e   : > { %v5192_v4 = vpop.eup %5191  ;;  %v4545_v47 = vadd.f32 %v7725_v26, %v4526_v52  ;;  %v4334_v17 = vadd.f32 1e-05, %v4318_v7 }
 0xa8f   : > { %v4452_v3 = vmul.f32 %v5190_v57, %v4451_v62  ;;  %v4458_v21 = vmul.f32 %v5192_v4, %v4333_v60  ;;  %vm4464_vm13 = vweird.f32 %v5192_v4 }
 0xa90   : > { %4561 = vst [vmem:[%s5845_s23 + $0x50] sm:$0xff] %v4545_v47  ;;  %5193 = vrsqrt.f32 %v4334_v17  ;;  %vm4465_vm15 = vmor %vm4463_vm14, %vm4464_vm13  ;;  %vm4473_vm2 = vweird.f32 %v4334_v17 }
 0xa91   : > { %v4456_v29 = vsel %vm4455_vm12, %v5190_v57, %v4452_v3  ;;  %v4459_v39 = vmul.f32 %v5192_v4, %v4458_v21 }
 0xa92   : > { %v4508_v34 = vmul.f32 %v4456_v29, %v7686_v27 }
 0xa93   : > { %v4460_v6 = vmul.f32 0.5, %v4459_v39 }
 0xa94   : > { %v4527_v54 = vmul.f32 %v7720_v5, %v4508_v34 }
 0xa95   : > { %v4461_v55 = vsub.f32 1.5, %v4460_v6 }
 0xa96   : > { %v5194_v58 = vpop.eup %5193  ;;  %v4546_v13 = vadd.f32 %v7725_v26, %v4527_v54 }
 0xa97   : > { %v4462_v37 = vmul.f32 %v5192_v4, %v4461_v55  ;;  %v4468_v30 = vmul.f32 %v5194_v58, %v4334_v17  ;;  %vm4474_vm1 = vweird.f32 %v5194_v58 }
 0xa98   : > { %4562 = vst [vmem:[%s5845_s23 + $0x58] sm:$0xff] %v4546_v13  ;;  %vm4475_vm3 = vmor %vm4473_vm2, %vm4474_vm1 }
 0xa99   : > { %v4466_v43 = vsel %vm4465_vm15, %v5192_v4, %v4462_v37  ;;  %v4469_v56 = vmul.f32 %v5194_v58, %v4468_v30 }
 0xa9a   : > { %v4509_v40 = vmul.f32 %v4466_v43, %v7692_v50 }
 0xa9b   : > { %v4302_v38 = vpop.xlane.xlu2 %4301  ;;  %v4470_v61 = vmul.f32 0.5, %v4469_v56 }
 0xa9c   : > { %v4319_v27 = vmul.f32 %v4302_v38, %v7005_v41  ;;  %v4528_v49 = vmul.f32 %v7720_v5, %v4509_v40 }
 0xa9d   : > { %v4471_v46 = vsub.f32 1.5, %v4470_v61 }
 0xa9e   : > { %v4335_v12 = vadd.f32 1e-05, %v4319_v27  ;;  %v4547_v23 = vadd.f32 %v7725_v26, %v4528_v49 }
 0xa9f   : > { %v4472_v15 = vmul.f32 %v5194_v58, %v4471_v46 }
 0xaa0   : > { %5195 = vrsqrt.f32 %v4335_v12  ;;  %4563 = vst [vmem:[%s5845_s23 + $0x60] sm:$0xff] %v4547_v23  ;;  %vm4483_vm5 = vweird.f32 %v4335_v12 }
 0xaa1   : > { %v4476_v48 = vsel %vm4475_vm3, %v5194_v58, %v4472_v15 }
 0xaa2   : > { %v4510_v35 = vmul.f32 %v4476_v48, %v7698_v31 }
 0xaa3   : > { %v4304_v50 = vpop.xlane.xlu0 %4303 }
 0xaa4   : > { %v4529_v20 = vmul.f32 %v7720_v5, %v4510_v35  ;;  %v4320_v19 = vmul.f32 %v4304_v50, %v7005_v41 }
 0xaa6   : > { %v5196_v51 = vpop.eup %5195  ;;  %v4548_v10 = vadd.f32 %v7725_v26, %v4529_v20  ;;  %v4336_v9 = vadd.f32 1e-05, %v4320_v19 }
 0xaa7   : > { %v4478_v32 = vmul.f32 %v5196_v51, %v4335_v12  ;;  %vm4484_vm4 = vweird.f32 %v5196_v51 }
 0xaa8   : > { %4564 = vst [vmem:[%s5845_s23 + $0x68] sm:$0xff] %v4548_v10  ;;  %5197 = vrsqrt.f32 %v4336_v9  ;;  %vm4485_vm6 = vmor %vm4483_vm5, %vm4484_vm4  ;;  %vm4493_vm8 = vweird.f32 %v4336_v9 }
 0xaa9   : > { %v4479_v53 = vmul.f32 %v5196_v51, %v4478_v32 }
 0xaab   : > { %v4480_v1 = vmul.f32 0.5, %v4479_v53 }
 0xaad   : > { %v4481_v28 = vsub.f32 1.5, %v4480_v1 }
 0xaae   : > { %v5198_v31 = vpop.eup %5197 }
 0xaaf   : > { %v4482_v36 = vmul.f32 %v5196_v51, %v4481_v28  ;;  %v4488_v11 = vmul.f32 %v5198_v31, %v4336_v9  ;;  %vm4494_vm7 = vweird.f32 %v5198_v31 }
 0xab0   : > { %vm4495_vm0 = vmor %vm4493_vm8, %vm4494_vm7 }
 0xab1   : > { %v4486_v25 = vsel %vm4485_vm6, %v5196_v51, %v4482_v36  ;;  %v4489_v2 = vmul.f32 %v5198_v31, %v4488_v11 }
 0xab2   : > { %v4511_v41 = vmul.f32 %v4486_v25, %v7704_v14 }
 0xab3   : > { %v4490_v45 = vmul.f32 0.5, %v4489_v2 }
 0xab4   : > { %v4530_v24 = vmul.f32 %v7720_v5, %v4511_v41 }
 0xab5   : > { %v4491_v57 = vsub.f32 1.5, %v4490_v45 }
 0xab6   : > { %v4549_v8 = vadd.f32 %v7725_v26, %v4530_v24 }
 0xab7   : > { %v4492_v22 = vmul.f32 %v5198_v31, %v4491_v57 }
 0xab8   : > { %4565 = vst [vmem:[%s5845_s23 + $0x70] sm:$0xff] %v4549_v8 }
 0xab9   : > { %v4496_v60 = vsel %vm4495_vm0, %v5198_v31, %v4492_v22 }
 0xaba   : > { %v4512_v44 = vmul.f32 %v4496_v60, %v7711_v59 }
 0xabc   : > { %v4531_v0 = vmul.f32 %v7720_v5, %v4512_v44 }
 0xabe   : > { %v4550_v18 = vadd.f32 %v7725_v26, %v4531_v0 }
 0xac0   : > { %4566 = vst [vmem:[%s5845_s23 + $0x78] sm:$0xff] %v4550_v18 }
 0xac1 PF: > { %s8005_s19 = sld [smem:[#allocation26_spill]]  ;;  %s4580_s9 = sshll.u32 %s5845_s23, 4  ;;  %s4581_s9 = int_to_ptr.vmem [resolvable:$true] %s4580_s9 }
 0xac2   : > { %s8006_s5 = sld [smem:[#allocation60_spill]]  ;;  %s4568_s28 = scalar_lea.sflag [#allocation6], %s5811_s11 }
 0xac7   : > { %s4813_s14 = sshll.u32 %s8005_s19, 7 }
 0xac8   : > { %s4579_s17 = scalar_lea.hbm %s8006_s5, %s4813_s14  ;;  %s5399_s21 = scalar_lea.hbm %s8006_s5, 256 }
 0xac9   : > { %s4582_s0 = sshll.u32 %s4579_s17, 4  ;;  %s4583_s0 = int_to_ptr.hbm [resolvable:$true] %s4582_s0 }
 0xaca   : > { %s5393_s8 = sshra.s32 %s4583_s0, 4  ;;  %s5394_s8 = int_to_ptr.hbm [resolvable:$true] %s5393_s8 }
 0xacb   : > { %s5395_s20 = scalar_lea.hbm %s5394_s8, 128  ;;  %p5400_p12 = scmp.lt.s32.totalorder %s5394_s8, %s8006_s5 }
 0xacc   : > { %p5396_p4 = scmp.ne.s32.totalorder %s5394_s8, %s5395_s20  ;;  %p5401_p0 = scmp.lt.s32.totalorder %s5399_s21, %s5395_s20 }
 0xace   : > { %p5397_p7 = pnand %p5396_p4, %p5762_p9  ;;  %p5402_p1 = por %p5401_p0, %p5400_p12 }
 0xad0   : > { %p5398_p10 = pneg %p5397_p7 }
 0xad2   : > { %p5403_p2 = pnand %p5402_p1, %p5398_p10 }
 0xad4   : > { %5406 = shalt.err (!%p5403_p2)
}
 0xad5   : > { %s5530_s11 = smov 128   ;;  %s5531_s23 = smov 8  }
 0xad6   : > { %4866 = dma.vmem_to_hbm [thread:$0]  (%p5762_p9), %s4581_s9, 2048, %s4583_s0, %s4568_s28, %s5530_s11, %s5530_s11, %s5531_s23  }
 0xad7 PF: > { %s8007_s13 = sld [smem:[#allocation23_spill]]  ;;  %p4897_p6 = scmp.ge.s32.totalorder %s5517_s18, 2 }
 0xad9   : > { %p4889_p11 = pnand %p4897_p6, %p5774_p8 }
 0xadb   : > { %p4890_p13 = pneg %p4889_p11 }
 0xadd   : > { %s4597_s1 = sand.u32 1, %s8007_s13  }
 0xade   : > { %s4598_s6 = scalar_lea.sflag [#allocation6], %s4597_s1 }
 0xadf   : > { %5472 = dma.done.wait (%p4890_p13), %s4598_s6, 2048  }
 0xae0   : > { %5474 = vsyncadd (%p4890_p13), %s4598_s6, 4294965248  ;;  %s36_s18 = sadd.s32 1, %s5517_s18   ;;  %s8009_s15 = sld [smem:[#allocation22_spill]] }
 0xae1   : > { %p33_p3 = scmp.ge.s32.totalorder %s36_s18, 6   ;;  %s8010_s27 = sld [smem:[#allocation31_spill]] }
 0xae2   : > { %s8011_s7 = sld [smem:[#allocation24_spill]]  ;;  %s8016_s25 = smov %s5481_s26 }
 0xae3   : > { %s8012_s30 = sld [smem:[#allocation32_spill]]  ;;  %s8018_s28 = smov %s5493_s29 }
 0xae4   : > { %s8013_s4 = sld [smem:[#allocation27_spill]]  ;;  %s8020_s14 = smov %s5509_s16 }
 0xae5   : > { %s8014_s19 = sld [smem:[#allocation29_spill]] }
 0xae6   : > { %s8015_s17 = sld [smem:[#allocation30_spill]]  ;;  %s8017_s26 = smov %s8009_s15 }
 0xae7   :  { %35 = sbr.rel (!%p33_p3) target bundleno = 27 (0x1b), region = 170 }
 0xae8   : > { %s8019_s29 = smov %s8011_s7 }
 0xaea   : > { %s8021_s15 = smov %s8013_s4 }
 0xaeb   : > { %s8022_s16 = smov %s8014_s19 }
 0xaec   :  { %4604 = vsyncpa [#allocation5], 1 }
 0xaed   :  { %4606 = vsyncpa [#allocation5 + $0x1], 1 }
 0xaee   :  { %4607 = vsyncpa [#allocation8], 1 }
 0xaef   :  { %4609 = vsyncpa [#allocation8 + $0x1], 1 }
 0xaf0   :  { %4610 = vsyncpa [#allocation11], 1 }
 0xaf1   :  { %4612 = vsyncpa [#allocation11 + $0x1], 1 }
 0xaf2   :  { %4613 = vsyncpa [#allocation14], 1 }
 0xaf3   :  { %4614 = vsyncpa [#allocation6], 1 }
 0xaf4   :  { %4616 = vsyncpa [#allocation6 + $0x1], 1 }

</bundles_post_ra>
